<compile_context>
chip_gen: v5e
topology: v5e:2x2
jax: 0.10.0
libtpu: 0.0.40
codegen_flags: <defaults>
</compile_context>

<pallas_src>
import functools

import jax
import jax.numpy as jnp
from jax.experimental import pallas as pl
from jax.experimental.pallas import tpu as pltpu

# Encoder / decoder layer sizes, as implied by the PyTorch module.
ENC_DIMS = [784, 512, 256, 128, 3]
DEC_DIMS = [3, 128, 256, 512, 784]
LATENT = ENC_DIMS[-1]      # 3
LATENT_PAD = 128           # lane-dense padded latent width


def _round_up(x, m):
    return (x + m - 1) // m * m


# ----------------------------------------------------------------------------
# Kernel
# ----------------------------------------------------------------------------
def _endecoder_kernel(x_ref,
                      ew0, eb0, ew1, eb1, ew2, eb2, ew3, eb3,
                      dw0, db0, dw1, db1, dw2, db2, dw3, db3,
                      enc_ref, dec_ref):
    """Fused 8-layer autoencoder forward for one (TB, 784) batch tile.

    Weights are VMEM-resident across all grid steps (constant index_map).
    All matmuls hit the MXU (bf16 inputs, f32 accumulation); tanh/sigmoid run
    on the EUP in f32.  The 3-wide latent lives in a 128-lane zero-padded
    buffer so every matmul / store is lane-dense (no masked vst.msk)."""
    cdt = ew0.dtype  # compute (weight) dtype, e.g. bfloat16

    def layer(h, w_ref, b_ref, act):
        y = jnp.dot(h.astype(cdt), w_ref[...],
                    preferred_element_type=jnp.float32) + b_ref[...]
        return act(y)

    h = x_ref[...]
    # ---- Encoder: Linear + Tanh  x4 ----
    h = layer(h, ew0, eb0, jnp.tanh)
    h = layer(h, ew1, eb1, jnp.tanh)
    h = layer(h, ew2, eb2, jnp.tanh)
    enc = layer(h, ew3, eb3, jnp.tanh)          # (TB, 128); lanes 3.. are exactly 0
    enc_ref[...] = enc

    # ---- Decoder: Linear + Tanh x3, Linear + Sigmoid ----
    d = layer(enc, dw0, db0, jnp.tanh)          # padded rows of dw0 are zero
    d = layer(d, dw1, db1, jnp.tanh)
    d = layer(d, dw2, db2, jnp.tanh)
    dec_ref[...] = layer(d, dw3, db3, jax.nn.sigmoid)


# ----------------------------------------------------------------------------
# Parameters
# ----------------------------------------------------------------------------
def init_params(key):
    """Deterministic init mimicking PyTorch nn.Linear defaults
    (uniform(-1/sqrt(fan_in), 1/sqrt(fan_in))).  Weights stored (in, out),
    biases (1, out) so the in-kernel bias add is a free sublane broadcast."""
    params = []
    for dims in (ENC_DIMS, DEC_DIMS):
        for fan_in, fan_out in zip(dims[:-1], dims[1:]):
            key, kw, kb = jax.random.split(key, 3)
            bound = 1.0 / jnp.sqrt(float(fan_in))
            w = jax.random.uniform(kw, (fan_in, fan_out), jnp.float32, -bound, bound)
            b = jax.random.uniform(kb, (1, fan_out), jnp.float32, -bound, bound)
            params.append(w)
            params.append(b)
    return params  # 16 arrays: ew0,eb0,...,dw3,db3


def prepare_params(params, compute_dtype=jnp.bfloat16):
    """Cast weights to the MXU compute dtype (bf16 by default; biases stay
    f32) and zero-pad the latent-adjacent arrays (ew3, eb3, dw0) to a 128-lane
    latent so the kernel never touches a lane-width-3 layout.  Zero padding
    leaves the numerics unchanged."""
    (ew0, eb0, ew1, eb1, ew2, eb2, ew3, eb3,
     dw0, db0, dw1, db1, dw2, db2, dw3, db3) = params
    pad = LATENT_PAD - LATENT
    ew3p = jnp.pad(ew3, ((0, 0), (0, pad)))
    eb3p = jnp.pad(eb3, ((0, 0), (0, pad)))
    dw0p = jnp.pad(dw0, ((0, pad), (0, 0)))
    packed = [ew0, eb0, ew1, eb1, ew2, eb2, ew3p, eb3p,
              dw0p, db0, dw1, db1, dw2, db2, dw3, db3]
    out = []
    for i, p in enumerate(packed):
        if i % 2 == 0:                       # weights -> compute dtype
            out.append(p.astype(compute_dtype))
        else:                                # biases stay f32 (post-acc add)
            out.append(p.astype(jnp.float32))
    return out


# ----------------------------------------------------------------------------
# Wrapper
# ----------------------------------------------------------------------------
def endecoder_forward(x, kernel_params, *, tb=512):
    """Run the fused autoencoder.  `kernel_params` must come from
    prepare_params().  Returns (encoder [B,3], decoder [B,784]) in f32."""
    B, F = x.shape
    assert F == ENC_DIMS[0], f"expected {ENC_DIMS[0]} input features, got {F}"

    # Batch tile: multiple of the f32 sublane (8); capped at `tb`.
    TB = min(tb, _round_up(B, 8))
    B_pad = _round_up(B, TB)
    if B_pad != B:
        x = jnp.pad(x, ((0, B_pad - B), (0, 0)))
    grid = (B_pad // TB,)

    # x / enc / dec: tiled over batch.  Weights/biases: full-array blocks with
    # a constant index_map -> DMA'd once, resident in VMEM for all grid steps.
    in_specs = [pl.BlockSpec((TB, ENC_DIMS[0]), lambda i: (i, 0))]
    in_specs += [pl.BlockSpec(p.shape, lambda i: (0, 0)) for p in kernel_params]
    out_specs = (
        pl.BlockSpec((TB, LATENT_PAD), lambda i: (i, 0)),
        pl.BlockSpec((TB, DEC_DIMS[-1]), lambda i: (i, 0)),
    )

    # Advisory cost estimate for XLA's scheduler.
    layer_dims = list(zip(ENC_DIMS[:-1], ENC_DIMS[1:])) + \
                 list(zip(DEC_DIMS[:-1], DEC_DIMS[1:]))
    flops = 2 * B_pad * sum(i * o for i, o in layer_dims)
    transcendentals = B_pad * (sum(ENC_DIMS[1:]) + sum(DEC_DIMS[1:]))
    weight_bytes = sum(p.size * p.dtype.itemsize for p in kernel_params)
    bytes_accessed = int(weight_bytes + x.size * 4
                         + B_pad * (LATENT_PAD + DEC_DIMS[-1]) * 4)

    enc_pad, dec = pl.pallas_call(
        _endecoder_kernel,
        out_shape=(
            jax.ShapeDtypeStruct((B_pad, LATENT_PAD), jnp.float32),
            jax.ShapeDtypeStruct((B_pad, DEC_DIMS[-1]), jnp.float32),
        ),
        grid=grid,
        in_specs=in_specs,
        out_specs=out_specs,
        compiler_params=pltpu.CompilerParams(
            dimension_semantics=("parallel",),   # shard batch blocks across TCs (v7x)
            vmem_limit_bytes=64 << 20,
        ),
        cost_estimate=pl.CostEstimate(
            flops=int(flops),
            transcendentals=int(transcendentals),
            bytes_accessed=bytes_accessed,
        ),
    )(x, *kernel_params)

    return enc_pad[:B, :LATENT], dec[:B]


# ----------------------------------------------------------------------------
# Pure-JAX reference (mirrors the kernel's bf16 weight / f32-accumulate casts)
# ----------------------------------------------------------------------------
def endecoder_reference(x, params, compute_dtype=jnp.bfloat16):
    (ew0, eb0, ew1, eb1, ew2, eb2, ew3, eb3,
     dw0, db0, dw1, db1, dw2, db2, dw3, db3) = params

    def layer(h, w, b, act):
        y = jnp.dot(h.astype(compute_dtype), w.astype(compute_dtype),
                    preferred_element_type=jnp.float32) + b
        return act(y)

    h = layer(x, ew0, eb0, jnp.tanh)
    h = layer(h, ew1, eb1, jnp.tanh)
    h = layer(h, ew2, eb2, jnp.tanh)
    enc = layer(h, ew3, eb3, jnp.tanh)
    d = layer(enc, dw0, db0, jnp.tanh)
    d = layer(d, dw1, db1, jnp.tanh)
    d = layer(d, dw2, db2, jnp.tanh)
    dec = layer(d, dw3, db3, jax.nn.sigmoid)
    return enc, dec


if __name__ == "__main__":
    key = jax.random.PRNGKey(0)
    key, kx = jax.random.split(key)

    # Small MNIST-like batch; B deliberately not a multiple of the batch tile
    # so the padding / multi-step grid paths are exercised.
    B = 45
    x = jax.random.uniform(kx, (B, ENC_DIMS[0]), jnp.float32)

    params = init_params(key)                                  # f32 logical params
    kparams = prepare_params(params, jnp.bfloat16)             # bf16, latent-padded

    fwd = jax.jit(functools.partial(endecoder_forward, tb=16))  # tiny tile for the demo
    enc, dec = fwd(x, kparams)
    enc, dec = jax.block_until_ready((enc, dec))

    # sanity-check against a pure-JAX reference with matching bf16 weights
    enc_ref, dec_ref = endecoder_reference(x, params, jnp.bfloat16)
    assert enc.shape == (B, LATENT) and dec.shape == (B, DEC_DIMS[-1])
    assert jnp.allclose(enc, enc_ref, atol=2e-3, rtol=2e-3)
    assert jnp.allclose(dec, dec_ref, atol=2e-3, rtol=2e-3)

    print("KERNEL_OK")
</pallas_src>

<mosaic_0001>
module attributes {stable_mosaic.version = 11 : i64} {
  func.func @_endecoder_kernel(%arg0: i32, %arg1: memref<16x784xf32, #tpu.memory_space<vmem>>, %arg2: memref<784x512xbf16, #tpu.memory_space<vmem>>, %arg3: memref<1x512xf32, #tpu.memory_space<vmem>>, %arg4: memref<512x256xbf16, #tpu.memory_space<vmem>>, %arg5: memref<1x256xf32, #tpu.memory_space<vmem>>, %arg6: memref<256x128xbf16, #tpu.memory_space<vmem>>, %arg7: memref<1x128xf32, #tpu.memory_space<vmem>>, %arg8: memref<128x128xbf16, #tpu.memory_space<vmem>>, %arg9: memref<1x128xf32, #tpu.memory_space<vmem>>, %arg10: memref<128x128xbf16, #tpu.memory_space<vmem>>, %arg11: memref<1x128xf32, #tpu.memory_space<vmem>>, %arg12: memref<128x256xbf16, #tpu.memory_space<vmem>>, %arg13: memref<1x256xf32, #tpu.memory_space<vmem>>, %arg14: memref<256x512xbf16, #tpu.memory_space<vmem>>, %arg15: memref<1x512xf32, #tpu.memory_space<vmem>>, %arg16: memref<512x784xbf16, #tpu.memory_space<vmem>>, %arg17: memref<1x784xf32, #tpu.memory_space<vmem>>, %arg18: memref<16x128xf32, #tpu.memory_space<vmem>>, %arg19: memref<16x784xf32, #tpu.memory_space<vmem>>) attributes {dimension_semantics = [#tpu.dimension_semantics<parallel>], iteration_bounds = array<i64: 3>, scalar_prefetch = 0 : i64, scratch_operands = 0 : i64, tpu.core_type = #tpu.core_type<tc>, window_params = [{transform_indices = @transform_0, window_bounds = array<i64: 16, 784>}, {pipeline_mode = #tpu.pipeline_mode<synchronous>, transform_indices = @transform_1, window_bounds = array<i64: 784, 512>}, {pipeline_mode = #tpu.pipeline_mode<synchronous>, transform_indices = @transform_2, window_bounds = array<i64: 1, 512>}, {pipeline_mode = #tpu.pipeline_mode<synchronous>, transform_indices = @transform_3, window_bounds = array<i64: 512, 256>}, {pipeline_mode = #tpu.pipeline_mode<synchronous>, transform_indices = @transform_4, window_bounds = array<i64: 1, 256>}, {pipeline_mode = #tpu.pipeline_mode<synchronous>, transform_indices = @transform_5, window_bounds = array<i64: 256, 128>}, {pipeline_mode = #tpu.pipeline_mode<synchronous>, transform_indices = @transform_6, window_bounds = array<i64: 1, 128>}, {pipeline_mode = #tpu.pipeline_mode<synchronous>, transform_indices = @transform_7, window_bounds = array<i64: 128, 128>}, {pipeline_mode = #tpu.pipeline_mode<synchronous>, transform_indices = @transform_8, window_bounds = array<i64: 1, 128>}, {pipeline_mode = #tpu.pipeline_mode<synchronous>, transform_indices = @transform_9, window_bounds = array<i64: 128, 128>}, {pipeline_mode = #tpu.pipeline_mode<synchronous>, transform_indices = @transform_10, window_bounds = array<i64: 1, 128>}, {pipeline_mode = #tpu.pipeline_mode<synchronous>, transform_indices = @transform_11, window_bounds = array<i64: 128, 256>}, {pipeline_mode = #tpu.pipeline_mode<synchronous>, transform_indices = @transform_12, window_bounds = array<i64: 1, 256>}, {pipeline_mode = #tpu.pipeline_mode<synchronous>, transform_indices = @transform_13, window_bounds = array<i64: 256, 512>}, {pipeline_mode = #tpu.pipeline_mode<synchronous>, transform_indices = @transform_14, window_bounds = array<i64: 1, 512>}, {pipeline_mode = #tpu.pipeline_mode<synchronous>, transform_indices = @transform_15, window_bounds = array<i64: 512, 784>}, {pipeline_mode = #tpu.pipeline_mode<synchronous>, transform_indices = @transform_16, window_bounds = array<i64: 1, 784>}, {transform_indices = @transform_17, window_bounds = array<i64: 16, 128>}, {transform_indices = @transform_18, window_bounds = array<i64: 16, 784>}]} {
    %c0 = arith.constant 0 : index
    %c0_0 = arith.constant 0 : index
    %0 = vector.load %arg1[%c0, %c0_0] : memref<16x784xf32, #tpu.memory_space<vmem>>, vector<16x784xf32>
    %1 = arith.truncf %0 : vector<16x784xf32> to vector<16x784xbf16>
    %c0_1 = arith.constant 0 : index
    %c0_2 = arith.constant 0 : index
    %2 = vector.load %arg2[%c0_1, %c0_2] : memref<784x512xbf16, #tpu.memory_space<vmem>>, vector<784x512xbf16>
    %cst = arith.constant dense<0.000000e+00> : vector<16x512xf32>
    %3 = tpu.matmul %1, %2, %cst {dimension_numbers = #tpu.dot_dimension_numbers<[1], [0], [0], [1], [0, 0, 1, 1], [], []>} : vector<16x784xbf16>, vector<784x512xbf16>, vector<16x512xf32> -> vector<16x512xf32>
    %c0_3 = arith.constant 0 : index
    %c0_4 = arith.constant 0 : index
    %4 = vector.load %arg3[%c0_3, %c0_4] : memref<1x512xf32, #tpu.memory_space<vmem>>, vector<1x512xf32>
    %5 = vector.broadcast %4 : vector<1x512xf32> to vector<16x512xf32>
    %6 = arith.addf %3, %5 : vector<16x512xf32>
    %7 = math.tanh %6 : vector<16x512xf32>
    %8 = arith.truncf %7 : vector<16x512xf32> to vector<16x512xbf16>
    %c0_5 = arith.constant 0 : index
    %c0_6 = arith.constant 0 : index
    %9 = vector.load %arg4[%c0_5, %c0_6] : memref<512x256xbf16, #tpu.memory_space<vmem>>, vector<512x256xbf16>
    %cst_7 = arith.constant dense<0.000000e+00> : vector<16x256xf32>
    %10 = tpu.matmul %8, %9, %cst_7 {dimension_numbers = #tpu.dot_dimension_numbers<[1], [0], [0], [1], [0, 0, 1, 1], [], []>} : vector<16x512xbf16>, vector<512x256xbf16>, vector<16x256xf32> -> vector<16x256xf32>
    %c0_8 = arith.constant 0 : index
    %c0_9 = arith.constant 0 : index
    %11 = vector.load %arg5[%c0_8, %c0_9] : memref<1x256xf32, #tpu.memory_space<vmem>>, vector<1x256xf32>
    %12 = vector.broadcast %11 : vector<1x256xf32> to vector<16x256xf32>
    %13 = arith.addf %10, %12 : vector<16x256xf32>
    %14 = math.tanh %13 : vector<16x256xf32>
    %15 = arith.truncf %14 : vector<16x256xf32> to vector<16x256xbf16>
    %c0_10 = arith.constant 0 : index
    %c0_11 = arith.constant 0 : index
    %16 = vector.load %arg6[%c0_10, %c0_11] : memref<256x128xbf16, #tpu.memory_space<vmem>>, vector<256x128xbf16>
    %cst_12 = arith.constant dense<0.000000e+00> : vector<16x128xf32>
    %17 = tpu.matmul %15, %16, %cst_12 {dimension_numbers = #tpu.dot_dimension_numbers<[1], [0], [0], [1], [0, 0, 1, 1], [], []>} : vector<16x256xbf16>, vector<256x128xbf16>, vector<16x128xf32> -> vector<16x128xf32>
    %c0_13 = arith.constant 0 : index
    %c0_14 = arith.constant 0 : index
    %18 = vector.load %arg7[%c0_13, %c0_14] : memref<1x128xf32, #tpu.memory_space<vmem>>, vector<1x128xf32>
    %19 = vector.broadcast %18 : vector<1x128xf32> to vector<16x128xf32>
    %20 = arith.addf %17, %19 : vector<16x128xf32>
    %21 = math.tanh %20 : vector<16x128xf32>
    %22 = arith.truncf %21 : vector<16x128xf32> to vector<16x128xbf16>
    %c0_15 = arith.constant 0 : index
    %c0_16 = arith.constant 0 : index
    %23 = vector.load %arg8[%c0_15, %c0_16] : memref<128x128xbf16, #tpu.memory_space<vmem>>, vector<128x128xbf16>
    %cst_17 = arith.constant dense<0.000000e+00> : vector<16x128xf32>
    %24 = tpu.matmul %22, %23, %cst_17 {dimension_numbers = #tpu.dot_dimension_numbers<[1], [0], [0], [1], [0, 0, 1, 1], [], []>} : vector<16x128xbf16>, vector<128x128xbf16>, vector<16x128xf32> -> vector<16x128xf32>
    %c0_18 = arith.constant 0 : index
    %c0_19 = arith.constant 0 : index
    %25 = vector.load %arg9[%c0_18, %c0_19] : memref<1x128xf32, #tpu.memory_space<vmem>>, vector<1x128xf32>
    %26 = vector.broadcast %25 : vector<1x128xf32> to vector<16x128xf32>
    %27 = arith.addf %24, %26 : vector<16x128xf32>
    %28 = math.tanh %27 : vector<16x128xf32>
    %c0_20 = arith.constant 0 : index
    %c0_21 = arith.constant 0 : index
    %29 = vector.load %arg18[%c0_20, %c0_21] : memref<16x128xf32, #tpu.memory_space<vmem>>, vector<16x128xf32>
    tpu.vector_store %arg18[%c0_20, %c0_21], %28 {strides = array<i32>} : memref<16x128xf32, #tpu.memory_space<vmem>>, vector<16x128xf32>,
    %30 = arith.truncf %28 : vector<16x128xf32> to vector<16x128xbf16>
    %c0_22 = arith.constant 0 : index
    %c0_23 = arith.constant 0 : index
    %31 = vector.load %arg10[%c0_22, %c0_23] : memref<128x128xbf16, #tpu.memory_space<vmem>>, vector<128x128xbf16>
    %cst_24 = arith.constant dense<0.000000e+00> : vector<16x128xf32>
    %32 = tpu.matmul %30, %31, %cst_24 {dimension_numbers = #tpu.dot_dimension_numbers<[1], [0], [0], [1], [0, 0, 1, 1], [], []>} : vector<16x128xbf16>, vector<128x128xbf16>, vector<16x128xf32> -> vector<16x128xf32>
    %c0_25 = arith.constant 0 : index
    %c0_26 = arith.constant 0 : index
    %33 = vector.load %arg11[%c0_25, %c0_26] : memref<1x128xf32, #tpu.memory_space<vmem>>, vector<1x128xf32>
    %34 = vector.broadcast %33 : vector<1x128xf32> to vector<16x128xf32>
    %35 = arith.addf %32, %34 : vector<16x128xf32>
    %36 = math.tanh %35 : vector<16x128xf32>
    %37 = arith.truncf %36 : vector<16x128xf32> to vector<16x128xbf16>
    %c0_27 = arith.constant 0 : index
    %c0_28 = arith.constant 0 : index
    %38 = vector.load %arg12[%c0_27, %c0_28] : memref<128x256xbf16, #tpu.memory_space<vmem>>, vector<128x256xbf16>
    %cst_29 = arith.constant dense<0.000000e+00> : vector<16x256xf32>
    %39 = tpu.matmul %37, %38, %cst_29 {dimension_numbers = #tpu.dot_dimension_numbers<[1], [0], [0], [1], [0, 0, 1, 1], [], []>} : vector<16x128xbf16>, vector<128x256xbf16>, vector<16x256xf32> -> vector<16x256xf32>
    %c0_30 = arith.constant 0 : index
    %c0_31 = arith.constant 0 : index
    %40 = vector.load %arg13[%c0_30, %c0_31] : memref<1x256xf32, #tpu.memory_space<vmem>>, vector<1x256xf32>
    %41 = vector.broadcast %40 : vector<1x256xf32> to vector<16x256xf32>
    %42 = arith.addf %39, %41 : vector<16x256xf32>
    %43 = math.tanh %42 : vector<16x256xf32>
    %44 = arith.truncf %43 : vector<16x256xf32> to vector<16x256xbf16>
    %c0_32 = arith.constant 0 : index
    %c0_33 = arith.constant 0 : index
    %45 = vector.load %arg14[%c0_32, %c0_33] : memref<256x512xbf16, #tpu.memory_space<vmem>>, vector<256x512xbf16>
    %cst_34 = arith.constant dense<0.000000e+00> : vector<16x512xf32>
    %46 = tpu.matmul %44, %45, %cst_34 {dimension_numbers = #tpu.dot_dimension_numbers<[1], [0], [0], [1], [0, 0, 1, 1], [], []>} : vector<16x256xbf16>, vector<256x512xbf16>, vector<16x512xf32> -> vector<16x512xf32>
    %c0_35 = arith.constant 0 : index
    %c0_36 = arith.constant 0 : index
    %47 = vector.load %arg15[%c0_35, %c0_36] : memref<1x512xf32, #tpu.memory_space<vmem>>, vector<1x512xf32>
    %48 = vector.broadcast %47 : vector<1x512xf32> to vector<16x512xf32>
    %49 = arith.addf %46, %48 : vector<16x512xf32>
    %50 = math.tanh %49 : vector<16x512xf32>
    %51 = arith.truncf %50 : vector<16x512xf32> to vector<16x512xbf16>
    %c0_37 = arith.constant 0 : index
    %c0_38 = arith.constant 0 : index
    %52 = vector.load %arg16[%c0_37, %c0_38] : memref<512x784xbf16, #tpu.memory_space<vmem>>, vector<512x784xbf16>
    %cst_39 = arith.constant dense<0.000000e+00> : vector<16x784xf32>
    %53 = tpu.matmul %51, %52, %cst_39 {dimension_numbers = #tpu.dot_dimension_numbers<[1], [0], [0], [1], [0, 0, 1, 1], [], []>} : vector<16x512xbf16>, vector<512x784xbf16>, vector<16x784xf32> -> vector<16x784xf32>
    %c0_40 = arith.constant 0 : index
    %c0_41 = arith.constant 0 : index
    %54 = vector.load %arg17[%c0_40, %c0_41] : memref<1x784xf32, #tpu.memory_space<vmem>>, vector<1x784xf32>
    %55 = vector.broadcast %54 : vector<1x784xf32> to vector<16x784xf32>
    %56 = arith.addf %53, %55 : vector<16x784xf32>
    %57 = arith.negf %56 : vector<16x784xf32>
    %58 = math.exp %57 : vector<16x784xf32>
    %cst_42 = arith.constant 1.000000e+00 : f32
    %59 = vector.broadcast %cst_42 : f32 to vector<16x784xf32>
    %60 = arith.addf %59, %58 : vector<16x784xf32>
    %61 = arith.divf %59, %60 : vector<16x784xf32>
    %c0_43 = arith.constant 0 : index
    %c0_44 = arith.constant 0 : index
    %62 = vector.load %arg19[%c0_43, %c0_44] : memref<16x784xf32, #tpu.memory_space<vmem>>, vector<16x784xf32>
    tpu.vector_store %arg19[%c0_43, %c0_44], %61 {strides = array<i32>} : memref<16x784xf32, #tpu.memory_space<vmem>>, vector<16x784xf32>,
    return
  }
  func.func @transform_0(%arg0: i32) -> (i32, i32) {
    %c0_i32 = arith.constant 0 : i32
    %c0_i32_0 = arith.constant 0 : i32
    return %arg0, %c0_i32 : i32, i32
  }
  func.func @transform_1(%arg0: i32) -> (i32, i32) {
    %c0_i32 = arith.constant 0 : i32
    %c0_i32_0 = arith.constant 0 : i32
    %c0_i32_1 = arith.constant 0 : i32
    return %c0_i32, %c0_i32_0 : i32, i32
  }
  func.func @transform_2(%arg0: i32) -> (i32, i32) {
    %c0_i32 = arith.constant 0 : i32
    %c0_i32_0 = arith.constant 0 : i32
    %c0_i32_1 = arith.constant 0 : i32
    return %c0_i32, %c0_i32_0 : i32, i32
  }
  func.func @transform_3(%arg0: i32) -> (i32, i32) {
    %c0_i32 = arith.constant 0 : i32
    %c0_i32_0 = arith.constant 0 : i32
    %c0_i32_1 = arith.constant 0 : i32
    return %c0_i32, %c0_i32_0 : i32, i32
  }
  func.func @transform_4(%arg0: i32) -> (i32, i32) {
    %c0_i32 = arith.constant 0 : i32
    %c0_i32_0 = arith.constant 0 : i32
    %c0_i32_1 = arith.constant 0 : i32
    return %c0_i32, %c0_i32_0 : i32, i32
  }
  func.func @transform_5(%arg0: i32) -> (i32, i32) {
    %c0_i32 = arith.constant 0 : i32
    %c0_i32_0 = arith.constant 0 : i32
    %c0_i32_1 = arith.constant 0 : i32
    return %c0_i32, %c0_i32_0 : i32, i32
  }
  func.func @transform_6(%arg0: i32) -> (i32, i32) {
    %c0_i32 = arith.constant 0 : i32
    %c0_i32_0 = arith.constant 0 : i32
    %c0_i32_1 = arith.constant 0 : i32
    return %c0_i32, %c0_i32_0 : i32, i32
  }
  func.func @transform_7(%arg0: i32) -> (i32, i32) {
    %c0_i32 = arith.constant 0 : i32
    %c0_i32_0 = arith.constant 0 : i32
    %c0_i32_1 = arith.constant 0 : i32
    return %c0_i32, %c0_i32_0 : i32, i32
  }
  func.func @transform_8(%arg0: i32) -> (i32, i32) {
    %c0_i32 = arith.constant 0 : i32
    %c0_i32_0 = arith.constant 0 : i32
    %c0_i32_1 = arith.constant 0 : i32
    return %c0_i32, %c0_i32_0 : i32, i32
  }
  func.func @transform_9(%arg0: i32) -> (i32, i32) {
    %c0_i32 = arith.constant 0 : i32
    %c0_i32_0 = arith.constant 0 : i32
    %c0_i32_1 = arith.constant 0 : i32
    return %c0_i32, %c0_i32_0 : i32, i32
  }
  func.func @transform_10(%arg0: i32) -> (i32, i32) {
    %c0_i32 = arith.constant 0 : i32
    %c0_i32_0 = arith.constant 0 : i32
    %c0_i32_1 = arith.constant 0 : i32
    return %c0_i32, %c0_i32_0 : i32, i32
  }
  func.func @transform_11(%arg0: i32) -> (i32, i32) {
    %c0_i32 = arith.constant 0 : i32
    %c0_i32_0 = arith.constant 0 : i32
    %c0_i32_1 = arith.constant 0 : i32
    return %c0_i32, %c0_i32_0 : i32, i32
  }
  func.func @transform_12(%arg0: i32) -> (i32, i32) {
    %c0_i32 = arith.constant 0 : i32
    %c0_i32_0 = arith.constant 0 : i32
    %c0_i32_1 = arith.constant 0 : i32
    return %c0_i32, %c0_i32_0 : i32, i32
  }
  func.func @transform_13(%arg0: i32) -> (i32, i32) {
    %c0_i32 = arith.constant 0 : i32
    %c0_i32_0 = arith.constant 0 : i32
    %c0_i32_1 = arith.constant 0 : i32
    return %c0_i32, %c0_i32_0 : i32, i32
  }
  func.func @transform_14(%arg0: i32) -> (i32, i32) {
    %c0_i32 = arith.constant 0 : i32
    %c0_i32_0 = arith.constant 0 : i32
    %c0_i32_1 = arith.constant 0 : i32
    return %c0_i32, %c0_i32_0 : i32, i32
  }
  func.func @transform_15(%arg0: i32) -> (i32, i32) {
    %c0_i32 = arith.constant 0 : i32
    %c0_i32_0 = arith.constant 0 : i32
    %c0_i32_1 = arith.constant 0 : i32
    return %c0_i32, %c0_i32_0 : i32, i32
  }
  func.func @transform_16(%arg0: i32) -> (i32, i32) {
    %c0_i32 = arith.constant 0 : i32
    %c0_i32_0 = arith.constant 0 : i32
    %c0_i32_1 = arith.constant 0 : i32
    return %c0_i32, %c0_i32_0 : i32, i32
  }
  func.func @transform_17(%arg0: i32) -> (i32, i32) {
    %c0_i32 = arith.constant 0 : i32
    %c0_i32_0 = arith.constant 0 : i32
    return %arg0, %c0_i32 : i32, i32
  }
  func.func @transform_18(%arg0: i32) -> (i32, i32) {
    %c0_i32 = arith.constant 0 : i32
    %c0_i32_0 = arith.constant 0 : i32
    return %arg0, %c0_i32 : i32, i32
  }
}

</mosaic_0001>

<bundles_post_ra>
// kernel: endecoder_forward.1
= control target key start
LH: loop header
LB: loop body
LE: loop exit
PB: predicated region body
PF: predicated region fallthrough
CT: control target
= control target key end

     0   :  { %s12992_s0 = inlined_call_operand.vmem [shape: f32[48,784], index: 0, kind: input, shape index: {}]   ;;  %s12993_s1 = inlined_call_operand.vmem [shape: bf16[784,512], index: 1, kind: input, shape index: {}]   ;;  %s12994_s2 = inlined_call_operand.vmem [shape: f32[1,512], index: 2, kind: input, shape index: {}]   ;;  %s12995_s3 = inlined_call_operand.vmem [shape: bf16[512,256], index: 3, kind: input, shape index: {}]   ;;  %s12996_s4 = inlined_call_operand.vmem [shape: f32[1,256], index: 4, kind: input, shape index: {}]   ;;  %s12997_s5 = inlined_call_operand.vmem [shape: bf16[256,128], index: 5, kind: input, shape index: {}]   ;;  %s12998_s6 = inlined_call_operand.vmem [shape: f32[1,128], index: 6, kind: input, shape index: {}]   ;;  %s12999_s7 = inlined_call_operand.vmem [shape: bf16[128,128], index: 7, kind: input, shape index: {}]   ;;  %s13000_s8 = inlined_call_operand.vmem [shape: f32[1,128], index: 8, kind: input, shape index: {}]   ;;  %s13001_s9 = inlined_call_operand.vmem [shape: bf16[128,128], index: 9, kind: input, shape index: {}]   ;;  %s13002_s10 = inlined_call_operand.vmem [shape: f32[1,128], index: 10, kind: input, shape index: {}]   ;;  %s13003_s11 = inlined_call_operand.vmem [shape: bf16[128,256], index: 11, kind: input, shape index: {}]   ;;  %s13004_s12 = inlined_call_operand.vmem [shape: f32[1,256], index: 12, kind: input, shape index: {}]   ;;  %s13005_s13 = inlined_call_operand.vmem [shape: bf16[256,512], index: 13, kind: input, shape index: {}]   ;;  %s13006_s14 = inlined_call_operand.vmem [shape: f32[1,512], index: 14, kind: input, shape index: {}]   ;;  %s13007_s15 = inlined_call_operand.vmem [shape: bf16[512,784], index: 15, kind: input, shape index: {}]   ;;  %s13008_s16 = inlined_call_operand.vmem [shape: f32[1,784], index: 16, kind: input, shape index: {}]   ;;  %s13009_s17 = inlined_call_operand.vmem [shape: f32[48,128], index: 17, kind: output, shape index: {0}]   ;;  %s13010_s18 = inlined_call_operand.hbm [shape: f32[48,784], index: 18, kind: output, shape index: {1}]  }
   0x1   :  { %13022 = sst [smem:[#allocation13_spill]] %s12992_s0 }
   0x2   :  { %13023 = sst [smem:[#allocation14_spill]] %s12993_s1 }
   0x3   :  { %13024 = sst [smem:[#allocation15_spill]] %s12994_s2 }
   0x4   :  { %13025 = sst [smem:[#allocation16_spill]] %s12995_s3 }
   0x5   :  { %13026 = sst [smem:[#allocation17_spill]] %s12996_s4 }
   0x6   :  { %13027 = sst [smem:[#allocation18_spill]] %s12997_s5 }
   0x7   :  { %13028 = sst [smem:[#allocation19_spill]] %s13010_s18 }
   0x8   :  { %24 = vsyncpa [#allocation3], 0 }
   0x9   :  { %26 = vsyncpa [#allocation3 + $0x1], 0  ;;  %s9251_s27 = smov 0   ;;  %s9253_s28 = smov 0  }
   0xa   :  { %s9255_s29 = smov 0   ;;  %s9257_s30 = smov 0  }
   0xb LB: > { %13029 = sst [smem:[#allocation5_spill]] %s9140_s27  ;;  %s9272_s0 = sadd.s32 4294967295, %s9152_s30   ;;  %s9152_s30 = sphi %s9257_s30, %s13051_s30   ;;  %s9148_s29 = sphi %s9255_s29, %s13053_s29   ;;  %s9144_s28 = sphi %s9253_s28, %s13055_s28   ;;  %s9140_s27 = sphi %s9251_s27, %s13054_s27  }
   0xc   : > { %13030 = sst [smem:[#allocation6_spill]] %s9148_s29  ;;  %s5916_s19 = sadd.s32 4294967294, %s9152_s30  }
   0xd   : > { %13031 = sst [smem:[#allocation7_spill]] %s9152_s30  ;;  %s9276_s1 = sadd.s32 1, %s9152_s30  }
   0xe   : > { %13032 = sst [smem:[#allocation8_spill]] %s9272_s0  ;;  %s427_s20 = sadd.s32 1, %s9148_s29 }
   0xf   : > { %13033 = sst [smem:[#allocation9_spill]] %s9276_s1  ;;  %s424_s21 = ssub.s32 %s9152_s30, %s9276_s1 }
  0x10   : > { %p437_p0 = scmp.ne.s32.totalorder %s9148_s29, %s9144_s28  ;;  %p425_p1 = scmp.eq.s32.totalorder %s424_s21, 0 }
  0x11   : > { %p438_p2 = scmp.eq.s32.totalorder %s9272_s0, 2  ;;  %p443_p3 = scmp.ne.s32.totalorder %s9144_s28, %s9140_s27 }
  0x12   : > { %p444_p4 = scmp.eq.s32.totalorder %s5916_s19, 2  ;;  %p5919_p7 = scmp.ge.s32.totalorder %s9152_s30, 1 }
  0x13   : > { %s9287_s22 = scalar_select %p425_p1, %s9148_s29, %s427_s20  }
  0x14   : > { %p9289_p5 = por %p438_p2, %p437_p0  ;;  %p9293_p6 = por %p444_p4, %p443_p3 }
  0x15   : > { %13034 = sst [smem:[#allocation10_spill]] %s9287_s22  ;;  %p520_p8 = scmp.lt.s32.totalorder %s9152_s30, 4 }
  0x16   : > { %s13035_s2 = scalar_select %p9289_p5, 1, 0 }
  0x17   : > { %s13037_s23 = scalar_select %p9293_p6, 1, 0 }
  0x18   : > { %13036 = sst [smem:[#allocation11_spill]] %s13035_s2  ;;  %p521_p9 = pnand %p5919_p7, %p520_p8 }
  0x19   : > { %13038 = sst [smem:[#allocation12_spill]] %s13037_s23  ;;  %s5920_s2 = sshll.u32 (!%p521_p9), %s9272_s0, 1 }
  0x1a   : > { %524 = sbr.rel (%p521_p9) target bundleno = 1659 (0x67b), region = 88  ;;  %s13039_s26 = sld [smem:[#allocation14_spill]] (!%p521_p9) }
  0x1b   : > { %p581_p10 = scmp.lt.s32.totalorder (!%p521_p9), %s5920_s2, 5  ;;  %s13040_s22 = sld [smem:[#allocation13_spill]] (!%p521_p9) }
  0x1c   : > { %s13041_s25 = sld [smem:[#allocation15_spill]] (!%p521_p9) }
  0x1d   : > { %s13042_s3 = sld [smem:[#allocation16_spill]] (!%p521_p9) }
  0x1e   : > { %s13043_s5 = sld [smem:[#allocation18_spill]] (!%p521_p9) }
  0x1f   : > { %s13057_s2 = smov (!%p581_p10, %s5920_s2), 5  ;;  %vm1802_vm0 = vcmask 130048   ;;  %s13044_s4 = sld [smem:[#allocation17_spill]] }
  0x20   : > { %v6038_v0 = vld [vmem:[%s13039_s26 + $0xe0] sm:$0xf]  ;;  %v8361_v1 = vld [vmem:[%s13039_s26 + $0xec] sm:$0xf0]  ;;  %s8928_s24 = smul.u32 56, %s13057_s2  ;;  %s5923_s23 = sshll.u32 %s13057_s2, 3 }
  0x21   : > { %v6166_v2 = vld [vmem:[%s13039_s26 + $0x1e0] sm:$0xf]  ;;  %v6039_v3 = vor.u32 %v8361_v1, %v6038_v0  ;;  %v8393_v4 = vld [vmem:[%s13039_s26 + $0x1ec] sm:$0xf0]  ;;  %s591_s0 = scalar_lea.vmem %s13009_s17, %s5923_s23  ;;  %s577_s23 = sand.u32 1, %s9144_s28  }
  0x22   : > { %v6294_v5 = vld [vmem:[%s13039_s26 + $0x2e0] sm:$0xf]  ;;  %v8425_v6 = vld [vmem:[%s13039_s26 + $0x2ec] sm:$0xf0]  ;;  %v6167_v7 = vor.u32 %v8393_v4, %v6166_v2  ;;  %s9537_s19 = scalar_lea.vmem %s13040_s22, %s8928_s24  ;;  %s5809_s1 = scalar_lea.sflag [#allocation3], %s577_s23 }
  0x23   : > { %v6295_v8 = vor.u32 %v8425_v6, %v6294_v5  ;;  %v6422_v9 = vld [vmem:[%s13039_s26 + $0x3e0] sm:$0xf]  ;;  %v8457_v10 = vld [vmem:[%s13039_s26 + $0x3ec] sm:$0xf0]  ;;  %1806 = vmatpush.bf16.msra.mxu0 %v6039_v3 }
  0x24   : > { %v6022_v11 = vld [vmem:[%s13039_s26 + $0xc0] sm:$0xf]  ;;  %v6423_v12 = vor.u32 %v8457_v10, %v6422_v9  ;;  %v8357_v13 = vld [vmem:[%s13039_s26 + $0xcc] sm:$0xf0]  ;;  %1820 = vmatpush.bf16.msra.mxu1 %v6167_v7 }
  0x25   : > { %v6150_v14 = vld [vmem:[%s13039_s26 + $0x1c0] sm:$0xf]  ;;  %v8389_v15 = vld [vmem:[%s13039_s26 + $0x1cc] sm:$0xf0]  ;;  %1834 = vmatpush.bf16.msra.mxu2 %v6295_v8  ;;  %v6023_v16 = vor.u32 %v8357_v13, %v6022_v11 }
  0x26   : > { %v6151_v17 = vor.u32 %v8389_v15, %v6150_v14  ;;  %v6278_v18 = vld [vmem:[%s13039_s26 + $0x2c0] sm:$0xf]  ;;  %v8421_v19 = vld [vmem:[%s13039_s26 + $0x2cc] sm:$0xf0]  ;;  %1848 = vmatpush.bf16.msra.mxu3 %v6423_v12 }
  0x27   : > { %v6406_v20 = vld [vmem:[%s13039_s26 + $0x3c0] sm:$0xf]  ;;  %v6279_v21 = vor.u32 %v8421_v19, %v6278_v18  ;;  %v8453_v22 = vld [vmem:[%s13039_s26 + $0x3cc] sm:$0xf0]  ;;  %1807 = vmatpush.bf16.msra.mxu0 %v6023_v16 }
  0x28   : > { %v6006_v23 = vld [vmem:[%s13039_s26 + $0xa0] sm:$0xf]  ;;  %v8353_v24 = vld [vmem:[%s13039_s26 + $0xac] sm:$0xf0]  ;;  %v6407_v25 = vor.u32 %v8453_v22, %v6406_v20  ;;  %1821 = vmatpush.bf16.msra.mxu1 %v6151_v17 }
  0x29   : > { %v6134_v26 = vld [vmem:[%s13039_s26 + $0x1a0] sm:$0xf]  ;;  %v8385_v27 = vld [vmem:[%s13039_s26 + $0x1ac] sm:$0xf0]  ;;  %v6007_v29 = vor.u32 %v8353_v24, %v6006_v23  ;;  %1835 = vmatpush.bf16.msra.mxu2 %v6279_v21 }
  0x2a   : > { %v6262_v28 = vld [vmem:[%s13039_s26 + $0x2a0] sm:$0xf]  ;;  %v8417_v30 = vld [vmem:[%s13039_s26 + $0x2ac] sm:$0xf0]  ;;  %v6135_v33 = vor.u32 %v8385_v27, %v6134_v26  ;;  %1849 = vmatpush.bf16.msra.mxu3 %v6407_v25 }
  0x2b   : > { %v6390_v31 = vld [vmem:[%s13039_s26 + $0x3a0] sm:$0xf]  ;;  %v8449_v32 = vld [vmem:[%s13039_s26 + $0x3ac] sm:$0xf0]  ;;  %v6263_v34 = vor.u32 %v8417_v30, %v6262_v28  ;;  %1808 = vmatpush.bf16.msra.mxu0 %v6007_v29 }
  0x2c   : > { %v5990_v35 = vld [vmem:[%s13039_s26 + $0x80] sm:$0xf]  ;;  %v8349_v36 = vld [vmem:[%s13039_s26 + $0x8c] sm:$0xf0]  ;;  %v6391_v38 = vor.u32 %v8449_v32, %v6390_v31  ;;  %1822 = vmatpush.bf16.msra.mxu1 %v6135_v33  ;;  %v8359_v32 = vld [vmem:[%s13039_s26 + $0xe4] sm:$0xf] }
  0x2d   : > { %v6118_v37 = vld [vmem:[%s13039_s26 + $0x180] sm:$0xf]  ;;  %v8381_v39 = vld [vmem:[%s13039_s26 + $0x18c] sm:$0xf0]  ;;  %v5991_v44 = vor.u32 %v8349_v36, %v5990_v35  ;;  %1836 = vmatpush.bf16.msra.mxu2 %v6263_v34  ;;  %v6040_v34 = vld [vmem:[%s13039_s26 + $0xf0] sm:$0xf0] }
  0x2e   : > { %v6246_v40 = vld [vmem:[%s13039_s26 + $0x280] sm:$0xf]  ;;  %v8413_v41 = vld [vmem:[%s13039_s26 + $0x28c] sm:$0xf0]  ;;  %v6119_v45 = vor.u32 %v8381_v39, %v6118_v37  ;;  %1850 = vmatpush.bf16.msra.mxu3 %v6391_v38  ;;  %v8391_v39 = vld [vmem:[%s13039_s26 + $0x1e4] sm:$0xf] }
  0x2f   : > { %v6374_v42 = vld [vmem:[%s13039_s26 + $0x380] sm:$0xf]  ;;  %v8445_v43 = vld [vmem:[%s13039_s26 + $0x38c] sm:$0xf0]  ;;  %v6247_v46 = vor.u32 %v8413_v41, %v6246_v40  ;;  %1809 = vmatpush.bf16.msra.mxu0 %v5991_v44  ;;  %v6168_v40 = vld [vmem:[%s13039_s26 + $0x1f0] sm:$0xf0] }
  0x30   : > { %v5974_v47 = vld [vmem:[%s13039_s26 + $0x60] sm:$0xf]  ;;  %v8345_v48 = vld [vmem:[%s13039_s26 + $0x6c] sm:$0xf0]  ;;  %v6375_v50 = vor.u32 %v8445_v43, %v6374_v42  ;;  %1823 = vmatpush.bf16.msra.mxu1 %v6119_v45 }
  0x31   : > { %v6102_v49 = vld [vmem:[%s13039_s26 + $0x160] sm:$0xf]  ;;  %v8377_v51 = vld [vmem:[%s13039_s26 + $0x16c] sm:$0xf0]  ;;  %v5975_v56 = vor.u32 %v8345_v48, %v5974_v47  ;;  %1837 = vmatpush.bf16.msra.mxu2 %v6247_v46  ;;  %v6043_v47 = vor.u32 %v8359_v32, %v6040_v34  ;;  %v8343_v34 = vld [vmem:[%s13039_s26 + $0x64] sm:$0xf] }
  0x32   : > { %v6230_v52 = vld [vmem:[%s13039_s26 + $0x260] sm:$0xf]  ;;  %v8409_v53 = vld [vmem:[%s13039_s26 + $0x26c] sm:$0xf0]  ;;  %v6103_v57 = vor.u32 %v8377_v51, %v6102_v49  ;;  %1851 = vmatpush.bf16.msra.mxu3 %v6375_v50  ;;  %v8355_v49 = vld [vmem:[%s13039_s26 + $0xc4] sm:$0xf] }
  0x33   : > { %v6358_v54 = vld [vmem:[%s13039_s26 + $0x360] sm:$0xf]  ;;  %v8441_v55 = vld [vmem:[%s13039_s26 + $0x36c] sm:$0xf0]  ;;  %v6231_v58 = vor.u32 %v8409_v53, %v6230_v52  ;;  %1810 = vmatpush.bf16.msra.mxu0 %v5975_v56  ;;  %v6024_v50 = vld [vmem:[%s13039_s26 + $0xd0] sm:$0xf0]  ;;  %v6171_v56 = vor.u32 %v8391_v39, %v6168_v40 }
  0x34   : > { %v5958_v59 = vld [vmem:[%s13039_s26 + $0x40] sm:$0xf]  ;;  %v8341_v60 = vld [vmem:[%s13039_s26 + $0x4c] sm:$0xf0]  ;;  %v6359_v62 = vor.u32 %v8441_v55, %v6358_v54  ;;  %1824 = vmatpush.bf16.msra.mxu1 %v6103_v57  ;;  %v604_v52 = vld [vmem:[%s9537_s19 + $0x48] sm:$0xff] }
  0x35   : > { %v6086_v61 = vld [vmem:[%s13039_s26 + $0x140] sm:$0xf]  ;;  %v8373_v63 = vld [vmem:[%s13039_s26 + $0x14c] sm:$0xf0]  ;;  %v5959_v4 = vor.u32 %v8341_v60, %v5958_v59  ;;  %1838 = vmatpush.bf16.msra.mxu2 %v6231_v58  ;;  %v602_v57 = vld [vmem:[%s9537_s19 + $0x38] sm:$0xff] }
  0x36   : > { %v6214_v0 = vld [vmem:[%s13039_s26 + $0x240] sm:$0xf]  ;;  %v8405_v1 = vld [vmem:[%s13039_s26 + $0x24c] sm:$0xf0]  ;;  %v6087_v6 = vor.u32 %v8373_v63, %v6086_v61  ;;  %1852 = vmatpush.bf16.msra.mxu3 %v6359_v62  ;;  %v598_v58 = vld [vmem:[%s9537_s19 + $0x18] sm:$0xff] }
  0x37   : > { %v6342_v2 = vld [vmem:[%s13039_s26 + $0x340] sm:$0xf]  ;;  %v8437_v3 = vld [vmem:[%s13039_s26 + $0x34c] sm:$0xf0]  ;;  %v6215_v7 = vor.u32 %v8405_v1, %v6214_v0  ;;  %1811 = vmatpush.bf16.msra.mxu0 %v5959_v4  ;;  %v8387_v60 = vld [vmem:[%s13039_s26 + $0x1c4] sm:$0xf]  ;;  %v6027_v4 = vor.u32 %v8355_v49, %v6024_v50 }
  0x38   : > { %v5942_v5 = vld [vmem:[%s13039_s26 + $0x20] sm:$0xf]  ;;  %v8337_v8 = vld [vmem:[%s13039_s26 + $0x2c] sm:$0xf0]  ;;  %v6343_v11 = vor.u32 %v8437_v3, %v6342_v2  ;;  %1825 = vmatpush.bf16.msra.mxu1 %v6087_v6  ;;  %v596_v0 = vld [vmem:[%s9537_s19 + $0x8] sm:$0xff] }
  0x39   : > { %v6070_v9 = vld [vmem:[%s13039_s26 + $0x120] sm:$0xf]  ;;  %v8369_v10 = vld [vmem:[%s13039_s26 + $0x12c] sm:$0xf0]  ;;  %v5943_v18 = vor.u32 %v8337_v8, %v5942_v5  ;;  %1839 = vmatpush.bf16.msra.mxu2 %v6215_v7  ;;  %v6152_v2 = vld [vmem:[%s13039_s26 + $0x1d0] sm:$0xf0] }
  0x3a   : > { %v6198_v12 = vld [vmem:[%s13039_s26 + $0x220] sm:$0xf]  ;;  %v8401_v13 = vld [vmem:[%s13039_s26 + $0x22c] sm:$0xf0]  ;;  %v6071_v23 = vor.u32 %v8369_v10, %v6070_v9  ;;  %1853 = vmatpush.bf16.msra.mxu3 %v6343_v11  ;;  %v8351_v10 = vld [vmem:[%s13039_s26 + $0xa4] sm:$0xf] }
  0x3b   : > { %v6326_v14 = vld [vmem:[%s13039_s26 + $0x320] sm:$0xf]  ;;  %v8433_v15 = vld [vmem:[%s13039_s26 + $0x32c] sm:$0xf0]  ;;  %v6199_v24 = vor.u32 %v8401_v13, %v6198_v12  ;;  %1812 = vmatpush.bf16.msra.mxu0 %v5943_v18  ;;  %v6008_v11 = vld [vmem:[%s13039_s26 + $0xb0] sm:$0xf0]  ;;  %v6155_v12 = vor.u32 %v8387_v60, %v6152_v2 }
  0x3c   : > { %v5926_v16 = vld [vmem:[%s13039_s26] sm:$0xf]  ;;  %v8333_v17 = vld [vmem:[%s13039_s26 + $0xc] sm:$0xf0]  ;;  %v6327_v27 = vor.u32 %v8433_v15, %v6326_v14  ;;  %1826 = vmatpush.bf16.msra.mxu1 %v6071_v23  ;;  %v8383_v14 = vld [vmem:[%s13039_s26 + $0x1a4] sm:$0xf] }
  0x3d   : > { %v6054_v19 = vld [vmem:[%s13039_s26 + $0x100] sm:$0xf]  ;;  %v8365_v20 = vld [vmem:[%s13039_s26 + $0x10c] sm:$0xf0]  ;;  %v5927_v33 = vor.u32 %v8333_v17, %v5926_v16  ;;  %1840 = vmatpush.bf16.msra.mxu2 %v6199_v24  ;;  %v6136_v15 = vld [vmem:[%s13039_s26 + $0x1b0] sm:$0xf0]  ;;  %v6011_v17 = vor.u32 %v8351_v10, %v6008_v11 }
  0x3e   : > { %v6182_v21 = vld [vmem:[%s13039_s26 + $0x200] sm:$0xf]  ;;  %v8397_v22 = vld [vmem:[%s13039_s26 + $0x20c] sm:$0xf0]  ;;  %v6055_v37 = vor.u32 %v8365_v20, %v6054_v19  ;;  %1854 = vmatpush.bf16.msra.mxu3 %v6327_v27  ;;  %v5992_v23 = vld [vmem:[%s13039_s26 + $0x90] sm:$0xf0]  ;;  %v6139_v24 = vor.u32 %v8383_v14, %v6136_v15 }
  0x3f   : > { %v6310_v25 = vld [vmem:[%s13039_s26 + $0x300] sm:$0xf]  ;;  %v8429_v26 = vld [vmem:[%s13039_s26 + $0x30c] sm:$0xf0]  ;;  %v6183_v38 = vor.u32 %v8397_v22, %v6182_v21  ;;  %1813 = vmatpush.bf16.msra.mxu0 %v5927_v33  ;;  %v8347_v22 = vld [vmem:[%s13039_s26 + $0x84] sm:$0xf] }
  0x40   : > { %v6550_v28 = vld [vmem:[%s13039_s26 + $0x4e0] sm:$0xf]  ;;  %v8489_v29 = vld [vmem:[%s13039_s26 + $0x4ec] sm:$0xf0]  ;;  %v6311_v41 = vor.u32 %v8429_v26, %v6310_v25  ;;  %1827 = vmatpush.bf16.msra.mxu1 %v6055_v37  ;;  %v8379_v26 = vld [vmem:[%s13039_s26 + $0x184] sm:$0xf] }
  0x41   : > { %v6678_v30 = vld [vmem:[%s13039_s26 + $0x5e0] sm:$0xf]  ;;  %v8521_v31 = vld [vmem:[%s13039_s26 + $0x5ec] sm:$0xf0]  ;;  %v6551_v42 = vor.u32 %v8489_v29, %v6550_v28  ;;  %1841 = vmatpush.bf16.msra.mxu2 %v6183_v38  ;;  %v6120_v27 = vld [vmem:[%s13039_s26 + $0x190] sm:$0xf0]  ;;  %v5995_v29 = vor.u32 %v8347_v22, %v5992_v23 }
  0x42   : > { %v6694_v35 = vld [vmem:[%s13039_s26 + $0x600] sm:$0xf]  ;;  %v8525_v36 = vld [vmem:[%s13039_s26 + $0x60c] sm:$0xf0]  ;;  %v6679_v46 = vor.u32 %v8521_v31, %v6678_v30  ;;  %1855 = vmatpush.bf16.msra.mxu3 %v6311_v41  ;;  %v608_v37 = vld [vmem:[%s9537_s19 + $0x68] sm:$0xff]  ;;  %v6123_v38 = vor.u32 %v8379_v26, %v6120_v27 }
  0x43   : > { %v6534_v43 = vld [vmem:[%s13039_s26 + $0x4c0] sm:$0xf]  ;;  %v8485_v44 = vld [vmem:[%s13039_s26 + $0x4cc] sm:$0xf0]  ;;  %v6695_v55 = vor.u32 %v8525_v36, %v6694_v35  ;;  %1862 = vmatpush.bf16.msrb.mxu0 %v6551_v42  ;;  %v5976_v35 = vld [vmem:[%s13039_s26 + $0x70] sm:$0xf0] }
  0x44   : > { %v6662_v45 = vld [vmem:[%s13039_s26 + $0x5c0] sm:$0xf]  ;;  %v8517_v48 = vld [vmem:[%s13039_s26 + $0x5cc] sm:$0xf0]  ;;  %v6535_v63 = vor.u32 %v8485_v44, %v6534_v43  ;;  %1876 = vmatpush.bf16.msrb.mxu1 %v6679_v46  ;;  %v8375_v40 = vld [vmem:[%s13039_s26 + $0x164] sm:$0xf]  ;;  %v5979_v43 = vor.u32 %v8343_v34, %v5976_v35 }
  0x45   : > { %v597_v51 = vld [vmem:[%s9537_s19 + $0x10] sm:$0xff]  ;;  %v595_v53 = vld [vmem:[%s9537_s19] sm:$0xff]  ;;  %v6663_v3 = vor.u32 %v8517_v48, %v6662_v45  ;;  %1897 = vmatpush.bf16.msrb.mxu2 %v6695_v55 }
  0x46   : > { %v9551_v54 = vpack.c.bf16 %v604_v52, %v597_v51  ;;  %v605_v59 = vld [vmem:[%s9537_s19 + $0x50] sm:$0xff]  ;;  %v9559_v61 = vpack.c.bf16 %v602_v57, %v595_v53  ;;  %v603_v1 = vld [vmem:[%s9537_s19 + $0x40] sm:$0xff]  ;;  %1904 = vmatpush.bf16.msrb.mxu3 %v6043_v47 }
  0x47   : > { %v9561_v62 = vpack.c.bf16 %v605_v59, %v598_v58  ;;  %v6518_v5 = vld [vmem:[%s13039_s26 + $0x4a0] sm:$0xf]  ;;  %v8481_v6 = vld [vmem:[%s13039_s26 + $0x4ac] sm:$0xf0]  ;;  %v9579_v8 = vpack.c.bf16 %v603_v1, %v596_v0  ;;  %1863 = vmatpush.bf16.msrb.mxu0 %v6535_v63  ;;  %v6104_v41 = vld [vmem:[%s13039_s26 + $0x170] sm:$0xf0] }
  0x48   : > { %v6646_v7 = vld [vmem:[%s13039_s26 + $0x5a0] sm:$0xf]  ;;  %1842 = vmatmul.bf16.vlgmr.msra.gmra.mxu2 %v9551_v54  ;;  %1814 = vmatmul.bf16.vlgmr.msra.gmra.mxu0 %v9559_v61  ;;  %v8513_v9 = vld [vmem:[%s13039_s26 + $0x5ac] sm:$0xf0]  ;;  %v6519_v13 = vor.u32 %v8481_v6, %v6518_v5  ;;  %v8339_v48 = vld [vmem:[%s13039_s26 + $0x44] sm:$0xf]  ;;  %v6107_v51 = vor.u32 %v8375_v40, %v6104_v41 }
  0x49   : > { %1856 = vmatmul.bf16.vlgmr.msra.gmra.mxu3 %v9561_v62  ;;  %1918 = vmatpush.bf16.msra.mxu2 %v6171_v56  ;;  %v6647_v16 = vor.u32 %v8513_v9, %v6646_v7  ;;  %v6502_v18 = vld [vmem:[%s13039_s26 + $0x480] sm:$0xf]  ;;  %v8477_v19 = vld [vmem:[%s13039_s26 + $0x48c] sm:$0xf0]  ;;  %v5960_v49 = vld [vmem:[%s13039_s26 + $0x50] sm:$0xf0] }
  0x4a   : > { %1877 = vmatpush.bf16.msrb.mxu1 %v6663_v3  ;;  %1905 = vmatpush.bf16.msrb.mxu3 %v6027_v4  ;;  %v6630_v20 = vld [vmem:[%s13039_s26 + $0x580] sm:$0xf]  ;;  %v8509_v21 = vld [vmem:[%s13039_s26 + $0x58c] sm:$0xf0]  ;;  %v6503_v25 = vor.u32 %v8477_v19, %v6502_v18  ;;  %v8371_v53 = vld [vmem:[%s13039_s26 + $0x144] sm:$0xf]  ;;  %v5963_v57 = vor.u32 %v8339_v48, %v5960_v49 }
  0x4b   : > { %1828 = vmatmul.bf16.vlgmr.msra.gmra.mxu1 %v9579_v8  ;;  %1864 = vmatpush.bf16.msrb.mxu0 %v6519_v13  ;;  %v6631_v28 = vor.u32 %v8509_v21, %v6630_v20  ;;  %v6486_v30 = vld [vmem:[%s13039_s26 + $0x460] sm:$0xf]  ;;  %v8473_v31 = vld [vmem:[%s13039_s26 + $0x46c] sm:$0xf0]  ;;  %v6088_v55 = vld [vmem:[%s13039_s26 + $0x150] sm:$0xf0] }
  0x4c   : > { %v6614_v32 = vld [vmem:[%s13039_s26 + $0x560] sm:$0xf]  ;;  %v8505_v33 = vld [vmem:[%s13039_s26 + $0x56c] sm:$0xf0]  ;;  %v6487_v39 = vor.u32 %v8473_v31, %v6486_v30  ;;  %v8335_v0 = vld [vmem:[%s13039_s26 + $0x24] sm:$0xf]  ;;  %v6091_v4 = vor.u32 %v8371_v53, %v6088_v55 }
  0x4d   : > { %1919 = vmatpush.bf16.msra.mxu2 %v6155_v12  ;;  %v601_v36 = vld [vmem:[%s9537_s19 + $0x30] sm:$0xff]  ;;  %v6615_v42 = vor.u32 %v8505_v33, %v6614_v32  ;;  %v6470_v44 = vld [vmem:[%s13039_s26 + $0x440] sm:$0xf]  ;;  %v8367_v2 = vld [vmem:[%s13039_s26 + $0x124] sm:$0xf] }
  0x4e   : > { %1878 = vmatpush.bf16.msrb.mxu1 %v6647_v16  ;;  %1906 = vmatpush.bf16.msrb.mxu3 %v6011_v17  ;;  %v8469_v45 = vld [vmem:[%s13039_s26 + $0x44c] sm:$0xf0]  ;;  %v6598_v46 = vld [vmem:[%s13039_s26 + $0x540] sm:$0xf]  ;;  %v9666_v50 = vpack.c.bf16 %v608_v37, %v601_v36  ;;  %v5944_v1 = vld [vmem:[%s13039_s26 + $0x30] sm:$0xf0] }
  0x4f   : > { %1865 = vmatpush.bf16.msrb.mxu0 %v6503_v25  ;;  %v8501_v47 = vld [vmem:[%s13039_s26 + $0x54c] sm:$0xf0]  ;;  %v6471_v52 = vor.u32 %v8469_v45, %v6470_v44  ;;  %v6454_v58 = vld [vmem:[%s13039_s26 + $0x420] sm:$0xf]  ;;  %v6072_v3 = vld [vmem:[%s13039_s26 + $0x130] sm:$0xf0]  ;;  %v5947_v11 = vor.u32 %v8335_v0, %v5944_v1 }
  0x50   : > { %v6599_v56 = vor.u32 %v8501_v47, %v6598_v46  ;;  %v8465_v59 = vld [vmem:[%s13039_s26 + $0x42c] sm:$0xf0]  ;;  %v6582_v60 = vld [vmem:[%s13039_s26 + $0x520] sm:$0xf]  ;;  %v8331_v13 = vld [vmem:[%s13039_s26 + $0x4] sm:$0xf]  ;;  %v6075_v21 = vor.u32 %v8367_v2, %v6072_v3 }
  0x51   : > { %1920 = vmatpush.bf16.msra.mxu2 %v6139_v24  ;;  %v8497_v63 = vld [vmem:[%s13039_s26 + $0x52c] sm:$0xf0]  ;;  %v6455_v5 = vor.u32 %v8465_v59, %v6454_v58  ;;  %v6438_v6 = vld [vmem:[%s13039_s26 + $0x400] sm:$0xf]  ;;  %v5928_v14 = vld [vmem:[%s13039_s26 + $0x10] sm:$0xf0] }
  0x52   : > { %1879 = vmatpush.bf16.msrb.mxu1 %v6631_v28  ;;  %1907 = vmatpush.bf16.msrb.mxu3 %v5995_v29  ;;  %v8461_v7 = vld [vmem:[%s13039_s26 + $0x40c] sm:$0xf0]  ;;  %v6566_v9 = vld [vmem:[%s13039_s26 + $0x500] sm:$0xf]  ;;  %v6583_v10 = vor.u32 %v8497_v63, %v6582_v60  ;;  %v8423_v15 = vld [vmem:[%s13039_s26 + $0x2e4] sm:$0xf]  ;;  %v5931_v27 = vor.u32 %v8331_v13, %v5928_v14 }
  0x53   : > { %1866 = vmatpush.bf16.msrb.mxu0 %v6487_v39  ;;  %v8493_v12 = vld [vmem:[%s13039_s26 + $0x50c] sm:$0xf0]  ;;  %v6296_v16 = vld [vmem:[%s13039_s26 + $0x2f0] sm:$0xf0]  ;;  %v8455_v17 = vld [vmem:[%s13039_s26 + $0x3e4] sm:$0xf]  ;;  %v6439_v22 = vor.u32 %v8461_v7, %v6438_v6 }
  0x54   : > { %v6424_v18 = vld [vmem:[%s13039_s26 + $0x3f0] sm:$0xf0]  ;;  %v8487_v19 = vld [vmem:[%s13039_s26 + $0x4e4] sm:$0xf]  ;;  %v606_v24 = vld [vmem:[%s9537_s19 + $0x58] sm:$0xff]  ;;  %v6567_v26 = vor.u32 %v8493_v12, %v6566_v9  ;;  %v6299_v31 = vor.u32 %v8423_v15, %v6296_v16 }
  0x55   : > { %1921 = vmatpush.bf16.msra.mxu2 %v6123_v38  ;;  %v6552_v20 = vld [vmem:[%s13039_s26 + $0x4f0] sm:$0xf0]  ;;  %v599_v23 = vld [vmem:[%s9537_s19 + $0x20] sm:$0xff]  ;;  %v600_v29 = vld [vmem:[%s9537_s19 + $0x28] sm:$0xff]  ;;  %v6427_v32 = vor.u32 %v8455_v17, %v6424_v18 }
  0x56   : > { %1880 = vmatpush.bf16.msrb.mxu1 %v6615_v42  ;;  %1908 = vmatpush.bf16.msrb.mxu3 %v5979_v43  ;;  %v8363_v25 = vld [vmem:[%s13039_s26 + $0x104] sm:$0xf]  ;;  %v6056_v28 = vld [vmem:[%s13039_s26 + $0x110] sm:$0xf0]  ;;  %v6555_v36 = vor.u32 %v8487_v19, %v6552_v20  ;;  %v9755_v37 = vpack.c.bf16 %v606_v24, %v599_v23 }
  0x57   : > { %1867 = vmatpush.bf16.msrb.mxu0 %v6471_v52  ;;  %v607_v30 = vld [vmem:[%s9537_s19 + $0x60] sm:$0xff]  ;;  %v6680_v34 = vld [vmem:[%s13039_s26 + $0x5f0] sm:$0xf0]  ;;  %v6059_v41 = vor.u32 %v8363_v25, %v6056_v28  ;;  %s8927_s19 = smul.u32 112, %s577_s23 }
  0x58   : > { %6708 = vmatmul.msk.bf16.vlgmr.msrb.gmra.mxu2 %vm1802_vm0, %v9666_v50  ;;  %v8519_v33 = vld [vmem:[%s13039_s26 + $0x5e4] sm:$0xf]  ;;  %v6280_v38 = vld [vmem:[%s13039_s26 + $0x2d0] sm:$0xf0]  ;;  %v9766_v42 = vpack.c.bf16 %v607_v30, %v600_v29 }
  0x59   : > { %1922 = vmatpush.bf16.msra.mxu2 %v6107_v51  ;;  %v8419_v35 = vld [vmem:[%s13039_s26 + $0x2c4] sm:$0xf]  ;;  %v6408_v40 = vld [vmem:[%s13039_s26 + $0x3d0] sm:$0xf0]  ;;  %v6683_v45 = vor.u32 %v8519_v33, %v6680_v34  ;;  %s12936_s18 = scalar_lea.vmem [#allocation2], %s8927_s19 }
  0x5a   : > { %1881 = vmatpush.bf16.msrb.mxu1 %v6599_v56  ;;  %1909 = vmatpush.bf16.msrb.mxu3 %v5963_v57  ;;  %v8451_v39 = vld [vmem:[%s13039_s26 + $0x3c4] sm:$0xf]  ;;  %v6536_v44 = vld [vmem:[%s13039_s26 + $0x4d0] sm:$0xf0]  ;;  %v6283_v46 = vor.u32 %v8419_v35, %v6280_v38  ;;  %s5826_s21 = sshll.u32 %s12936_s18, 4  ;;  %s5827_s21 = int_to_ptr.vmem [resolvable:$true] %s5826_s21 }
  0x5b   : > { %1868 = vmatpush.bf16.msrb.mxu0 %v6455_v5  ;;  %v8483_v43 = vld [vmem:[%s13039_s26 + $0x4c4] sm:$0xf]  ;;  %v6411_v47 = vor.u32 %v8451_v39, %v6408_v40  ;;  %v6664_v49 = vld [vmem:[%s13039_s26 + $0x5d0] sm:$0xf0] }
  0x5c   : > { %v8515_v48 = vld [vmem:[%s13039_s26 + $0x5c4] sm:$0xf]  ;;  %v6539_v52 = vor.u32 %v8483_v43, %v6536_v44  ;;  %v6264_v53 = vld [vmem:[%s13039_s26 + $0x2b0] sm:$0xf0] }
  0x5d   : > { %1923 = vmatpush.bf16.msra.mxu2 %v6091_v4  ;;  %v8415_v51 = vld [vmem:[%s13039_s26 + $0x2a4] sm:$0xf]  ;;  %v6392_v56 = vld [vmem:[%s13039_s26 + $0x3b0] sm:$0xf0]  ;;  %v6667_v59 = vor.u32 %v8515_v48, %v6664_v49 }
  0x5e   : > { %1882 = vmatpush.bf16.msrb.mxu1 %v6583_v10  ;;  %1910 = vmatpush.bf16.msrb.mxu3 %v5947_v11  ;;  %v8447_v55 = vld [vmem:[%s13039_s26 + $0x3a4] sm:$0xf]  ;;  %v6520_v58 = vld [vmem:[%s13039_s26 + $0x4b0] sm:$0xf0]  ;;  %v6267_v60 = vor.u32 %v8415_v51, %v6264_v53 }
  0x5f   : > { %1869 = vmatpush.bf16.msrb.mxu0 %v6439_v22  ;;  %v8479_v57 = vld [vmem:[%s13039_s26 + $0x4a4] sm:$0xf]  ;;  %v6395_v63 = vor.u32 %v8447_v55, %v6392_v56  ;;  %v6648_v1 = vld [vmem:[%s13039_s26 + $0x5b0] sm:$0xf0] }
  0x60   : > { %v8511_v0 = vld [vmem:[%s13039_s26 + $0x5a4] sm:$0xf]  ;;  %v6523_v3 = vor.u32 %v8479_v57, %v6520_v58  ;;  %v6248_v4 = vld [vmem:[%s13039_s26 + $0x290] sm:$0xf0] }
  0x61   : > { %1924 = vmatpush.bf16.msra.mxu2 %v6075_v21  ;;  %v8411_v2 = vld [vmem:[%s13039_s26 + $0x284] sm:$0xf]  ;;  %v6376_v6 = vld [vmem:[%s13039_s26 + $0x390] sm:$0xf0]  ;;  %v6651_v10 = vor.u32 %v8511_v0, %v6648_v1  ;;  %v6046_v0 = vld [vmem:[%s13039_s26 + $0xe8] sm:$0xf] }
  0x62   : > { %1883 = vmatpush.bf16.msrb.mxu1 %v6567_v26  ;;  %1911 = vmatpush.bf16.msrb.mxu3 %v5931_v27  ;;  %v8443_v5 = vld [vmem:[%s13039_s26 + $0x384] sm:$0xf]  ;;  %v6504_v9 = vld [vmem:[%s13039_s26 + $0x490] sm:$0xf0]  ;;  %v6251_v11 = vor.u32 %v8411_v2, %v6248_v4  ;;  %v8362_v1 = vld [vmem:[%s13039_s26 + $0xf4] sm:$0xf0] }
  0x63   : > { %1932 = vmatpush.bf16.msra.mxu0 %v6299_v31  ;;  %v8475_v7 = vld [vmem:[%s13039_s26 + $0x484] sm:$0xf]  ;;  %v6379_v12 = vor.u32 %v8443_v5, %v6376_v6  ;;  %v6632_v14 = vld [vmem:[%s13039_s26 + $0x590] sm:$0xf0]  ;;  %v6174_v2 = vld [vmem:[%s13039_s26 + $0x1e8] sm:$0xf] }
  0x64   : > { %1870 = vmatmul.bf16.vlgmr.msrb.gmra.mxu0 %v9755_v37  ;;  %v8507_v13 = vld [vmem:[%s13039_s26 + $0x584] sm:$0xf]  ;;  %v6507_v16 = vor.u32 %v8475_v7, %v6504_v9  ;;  %v6232_v17 = vld [vmem:[%s13039_s26 + $0x270] sm:$0xf0]  ;;  %v8394_v4 = vld [vmem:[%s13039_s26 + $0x1f4] sm:$0xf0] }
  0x65   : > { %1925 = vmatpush.bf16.msra.mxu2 %v6059_v41  ;;  %1884 = vmatmul.bf16.vlgmr.msrb.gmra.mxu1 %v9766_v42  ;;  %v8407_v15 = vld [vmem:[%s13039_s26 + $0x264] sm:$0xf]  ;;  %v6360_v19 = vld [vmem:[%s13039_s26 + $0x370] sm:$0xf0]  ;;  %v6635_v22 = vor.u32 %v8507_v13, %v6632_v14  ;;  %v6047_v13 = vor.u32 %v8362_v1, %v6046_v0  ;;  %v6430_v14 = vld [vmem:[%s13039_s26 + $0x3e8] sm:$0xf] }
  0x66   : > { %1946 = vmatpush.bf16.msra.mxu1 %v6427_v32  ;;  %1960 = vmatpush.bf16.msra.mxu3 %v6555_v36  ;;  %v8439_v18 = vld [vmem:[%s13039_s26 + $0x364] sm:$0xf]  ;;  %v6488_v21 = vld [vmem:[%s13039_s26 + $0x470] sm:$0xf0]  ;;  %v6235_v23 = vor.u32 %v8407_v15, %v6232_v17  ;;  %v8458_v15 = vld [vmem:[%s13039_s26 + $0x3f4] sm:$0xf0]  ;;  %v6175_v17 = vor.u32 %v8394_v4, %v6174_v2 }
  0x67   : > { %1912 = vmatmul.bf16.vlgmr.msrb.gmra.mxu3 %v9559_v61  ;;  %1933 = vmatpush.bf16.msra.mxu0 %v6283_v46  ;;  %v8471_v20 = vld [vmem:[%s13039_s26 + $0x464] sm:$0xf]  ;;  %v6363_v24 = vor.u32 %v8439_v18, %v6360_v19  ;;  %v6616_v26 = vld [vmem:[%s13039_s26 + $0x570] sm:$0xf0]  ;;  %v8358_v18 = vld [vmem:[%s13039_s26 + $0xd4] sm:$0xf0] }
  0x68   : > { %1926 = vmatmul.bf16.vlgmr.msra.gmra.mxu2 %v9579_v8  ;;  %v8503_v25 = vld [vmem:[%s13039_s26 + $0x564] sm:$0xf]  ;;  %v6491_v28 = vor.u32 %v8471_v20, %v6488_v21  ;;  %v6216_v29 = vld [vmem:[%s13039_s26 + $0x250] sm:$0xf0]  ;;  %v6302_v20 = vld [vmem:[%s13039_s26 + $0x2e8] sm:$0xf] }
  0x69   : > { %1974 = vmatpush.bf16.msrb.mxu2 %v6683_v45  ;;  %v8403_v27 = vld [vmem:[%s13039_s26 + $0x244] sm:$0xf]  ;;  %v6344_v31 = vld [vmem:[%s13039_s26 + $0x350] sm:$0xf0]  ;;  %v6619_v34 = vor.u32 %v8503_v25, %v6616_v26  ;;  %v8426_v21 = vld [vmem:[%s13039_s26 + $0x2f4] sm:$0xf0]  ;;  %v6431_v25 = vor.u32 %v8458_v15, %v6430_v14 }
  0x6a   : > { %1947 = vmatpush.bf16.msra.mxu1 %v6411_v47  ;;  %1961 = vmatpush.bf16.msra.mxu3 %v6539_v52  ;;  %v8435_v30 = vld [vmem:[%s13039_s26 + $0x344] sm:$0xf]  ;;  %v6472_v33 = vld [vmem:[%s13039_s26 + $0x450] sm:$0xf0]  ;;  %v6219_v35 = vor.u32 %v8403_v27, %v6216_v29  ;;  %v6414_v27 = vld [vmem:[%s13039_s26 + $0x3c8] sm:$0xf] }
  0x6b   : > { %1934 = vmatpush.bf16.msra.mxu0 %v6267_v60  ;;  %v8467_v32 = vld [vmem:[%s13039_s26 + $0x444] sm:$0xf]  ;;  %v6347_v36 = vor.u32 %v8435_v30, %v6344_v31  ;;  %v6600_v39 = vld [vmem:[%s13039_s26 + $0x550] sm:$0xf0]  ;;  %v6014_v29 = vld [vmem:[%s13039_s26 + $0xa8] sm:$0xf]  ;;  %v6303_v30 = vor.u32 %v8426_v21, %v6302_v20 }
  0x6c   : > { %v8499_v38 = vld [vmem:[%s13039_s26 + $0x544] sm:$0xf]  ;;  %v6475_v41 = vor.u32 %v8467_v32, %v6472_v33  ;;  %v6200_v43 = vld [vmem:[%s13039_s26 + $0x230] sm:$0xf0]  ;;  %v8354_v32 = vld [vmem:[%s13039_s26 + $0xb4] sm:$0xf0] }
  0x6d   : > { %1975 = vmatpush.bf16.msrb.mxu2 %v6667_v59  ;;  %v8399_v40 = vld [vmem:[%s13039_s26 + $0x224] sm:$0xf]  ;;  %v6328_v45 = vld [vmem:[%s13039_s26 + $0x330] sm:$0xf0]  ;;  %v6603_v48 = vor.u32 %v8499_v38, %v6600_v39  ;;  %v6286_v33 = vld [vmem:[%s13039_s26 + $0x2c8] sm:$0xf]  ;;  %v6015_v39 = vor.u32 %v8354_v32, %v6014_v29 }
  0x6e   : > { %1948 = vmatpush.bf16.msra.mxu1 %v6395_v63  ;;  %1962 = vmatpush.bf16.msra.mxu3 %v6523_v3  ;;  %v8431_v44 = vld [vmem:[%s13039_s26 + $0x324] sm:$0xf]  ;;  %v6456_v47 = vld [vmem:[%s13039_s26 + $0x430] sm:$0xf0]  ;;  %v6203_v52 = vor.u32 %v8399_v40, %v6200_v43  ;;  %v6398_v40 = vld [vmem:[%s13039_s26 + $0x3a8] sm:$0xf] }
  0x6f   : > { %1935 = vmatpush.bf16.msra.mxu0 %v6251_v11  ;;  %v8463_v46 = vld [vmem:[%s13039_s26 + $0x424] sm:$0xf]  ;;  %v6584_v51 = vld [vmem:[%s13039_s26 + $0x530] sm:$0xf0]  ;;  %v6331_v53 = vor.u32 %v8431_v44, %v6328_v45  ;;  %v5998_v43 = vld [vmem:[%s13039_s26 + $0x88] sm:$0xf] }
  0x70   : > { %v8495_v49 = vld [vmem:[%s13039_s26 + $0x524] sm:$0xf]  ;;  %v6184_v56 = vld [vmem:[%s13039_s26 + $0x210] sm:$0xf0]  ;;  %v6459_v58 = vor.u32 %v8463_v46, %v6456_v47  ;;  %v8350_v46 = vld [vmem:[%s13039_s26 + $0x94] sm:$0xf0] }
  0x71   : > { %1976 = vmatpush.bf16.msrb.mxu2 %v6651_v10  ;;  %v8395_v55 = vld [vmem:[%s13039_s26 + $0x204] sm:$0xf]  ;;  %v6312_v59 = vld [vmem:[%s13039_s26 + $0x310] sm:$0xf0]  ;;  %v6587_v3 = vor.u32 %v8495_v49, %v6584_v51  ;;  %v6270_v47 = vld [vmem:[%s13039_s26 + $0x2a8] sm:$0xf] }
  0x72   : > { %1949 = vmatpush.bf16.msra.mxu1 %v6379_v12  ;;  %1963 = vmatpush.bf16.msra.mxu3 %v6507_v16  ;;  %v8427_v57 = vld [vmem:[%s13039_s26 + $0x304] sm:$0xf]  ;;  %v6440_v63 = vld [vmem:[%s13039_s26 + $0x410] sm:$0xf0]  ;;  %v6187_v7 = vor.u32 %v8395_v55, %v6184_v56  ;;  %v6030_v16 = vld [vmem:[%s13039_s26 + $0xc8] sm:$0xf]  ;;  %v5999_v56 = vor.u32 %v8350_v46, %v5998_v43 }
  0x73   : > { %1936 = vmatpush.bf16.msra.mxu0 %v6235_v23  ;;  %v8459_v60 = vld [vmem:[%s13039_s26 + $0x404] sm:$0xf]  ;;  %v6696_v6 = vld [vmem:[%s13039_s26 + $0x610] sm:$0xf0]  ;;  %v6315_v9 = vor.u32 %v8427_v57, %v6312_v59  ;;  %v6158_v23 = vld [vmem:[%s13039_s26 + $0x1c8] sm:$0xf]  ;;  %v6031_v26 = vor.u32 %v8358_v18, %v6030_v16 }
  0x74   : > { %v8523_v5 = vld [vmem:[%s13039_s26 + $0x604] sm:$0xf]  ;;  %v6568_v11 = vld [vmem:[%s13039_s26 + $0x510] sm:$0xf0]  ;;  %v6443_v12 = vor.u32 %v8459_v60, %v6440_v63  ;;  %v6126_v49 = vld [vmem:[%s13039_s26 + $0x188] sm:$0xf] }
  0x75   : > { %1977 = vmatpush.bf16.msrb.mxu2 %v6635_v22  ;;  %v8491_v10 = vld [vmem:[%s13039_s26 + $0x504] sm:$0xf]  ;;  %v6699_v19 = vor.u32 %v8523_v5, %v6696_v6  ;;  %v8382_v51 = vld [vmem:[%s13039_s26 + $0x194] sm:$0xf0]  ;;  %v5982_v57 = vld [vmem:[%s13039_s26 + $0x68] sm:$0xf] }
  0x76   : > { %1950 = vmatpush.bf16.msra.mxu1 %v6363_v24  ;;  %1964 = vmatpush.bf16.msra.mxu3 %v6491_v28  ;;  %v6571_v22 = vor.u32 %v8491_v10, %v6568_v11  ;;  %v8390_v24 = vld [vmem:[%s13039_s26 + $0x1d4] sm:$0xf0]  ;;  %v6254_v60 = vld [vmem:[%s13039_s26 + $0x288] sm:$0xf]  ;;  %v6127_v63 = vor.u32 %v8382_v51, %v6126_v49 }
  0x77   : > { %1937 = vmatpush.bf16.msra.mxu0 %v6219_v35  ;;  %v8454_v28 = vld [vmem:[%s13039_s26 + $0x3d4] sm:$0xf0]  ;;  %v6159_v31 = vor.u32 %v8390_v24, %v6158_v23  ;;  %v6142_v35 = vld [vmem:[%s13039_s26 + $0x1a8] sm:$0xf] }
  0x78   : > { %v6415_v38 = vor.u32 %v8454_v28, %v6414_v27  ;;  %v8446_v55 = vld [vmem:[%s13039_s26 + $0x394] sm:$0xf0]  ;;  %v6110_v1 = vld [vmem:[%s13039_s26 + $0x168] sm:$0xf] }
  0x79   : > { %1978 = vmatpush.bf16.msrb.mxu2 %v6619_v34  ;;  %v8422_v34 = vld [vmem:[%s13039_s26 + $0x2d4] sm:$0xf0]  ;;  %v6366_v4 = vld [vmem:[%s13039_s26 + $0x368] sm:$0xf] }
  0x7a   : > { %1951 = vmatpush.bf16.msra.mxu1 %v6347_v36  ;;  %1965 = vmatpush.bf16.msra.mxu3 %v6475_v41  ;;  %v8386_v36 = vld [vmem:[%s13039_s26 + $0x1b4] sm:$0xf0]  ;;  %v6287_v44 = vor.u32 %v8422_v34, %v6286_v33  ;;  %v6094_v14 = vld [vmem:[%s13039_s26 + $0x148] sm:$0xf] }
  0x7b   : > { %1938 = vmatpush.bf16.msra.mxu0 %v6203_v52  ;;  %v8450_v41 = vld [vmem:[%s13039_s26 + $0x3b4] sm:$0xf0]  ;;  %v6143_v45 = vor.u32 %v8386_v36, %v6142_v35  ;;  %v6350_v18 = vld [vmem:[%s13039_s26 + $0x348] sm:$0xf] }
  0x7c   : > { %v6399_v52 = vor.u32 %v8450_v41, %v6398_v40  ;;  %v8414_v0 = vld [vmem:[%s13039_s26 + $0x294] sm:$0xf0]  ;;  %v5950_v20 = vld [vmem:[%s13039_s26 + $0x28] sm:$0xf] }
  0x7d   : > { %1979 = vmatpush.bf16.msrb.mxu2 %v6603_v48  ;;  %v8418_v48 = vld [vmem:[%s13039_s26 + $0x2b4] sm:$0xf0]  ;;  %v6222_v24 = vld [vmem:[%s13039_s26 + $0x248] sm:$0xf] }
  0x7e   : > { %1952 = vmatpush.bf16.msra.mxu1 %v6331_v53  ;;  %1966 = vmatpush.bf16.msra.mxu3 %v6459_v58  ;;  %v6382_v53 = vld [vmem:[%s13039_s26 + $0x388] sm:$0xf]  ;;  %v8346_v58 = vld [vmem:[%s13039_s26 + $0x74] sm:$0xf0]  ;;  %v6271_v59 = vor.u32 %v8418_v48, %v6270_v47 }
  0x7f   : > { %1939 = vmatpush.bf16.msra.mxu0 %v6187_v7  ;;  %v8378_v2 = vld [vmem:[%s13039_s26 + $0x174] sm:$0xf0]  ;;  %v5983_v5 = vor.u32 %v8346_v58, %v5982_v57  ;;  %v5966_v7 = vld [vmem:[%s13039_s26 + $0x48] sm:$0xf] }
  0x80   : > { %v8442_v6 = vld [vmem:[%s13039_s26 + $0x374] sm:$0xf0]  ;;  %v6111_v10 = vor.u32 %v8378_v2, %v6110_v1  ;;  %v6334_v29 = vld [vmem:[%s13039_s26 + $0x328] sm:$0xf] }
  0x81   : > { %1980 = vmatpush.bf16.msrb.mxu2 %v6587_v3  ;;  %v6383_v3 = vor.u32 %v8446_v55, %v6382_v53  ;;  %v8342_v11 = vld [vmem:[%s13039_s26 + $0x54] sm:$0xf0]  ;;  %v6367_v16 = vor.u32 %v8442_v6, %v6366_v4  ;;  %v5934_v32 = vld [vmem:[%s13039_s26 + $0x8] sm:$0xf] }
  0x82   : > { %1953 = vmatpush.bf16.msra.mxu1 %v6315_v9  ;;  %1967 = vmatpush.bf16.msra.mxu3 %v6443_v12  ;;  %v6255_v9 = vor.u32 %v8414_v0, %v6254_v60  ;;  %v6238_v12 = vld [vmem:[%s13039_s26 + $0x268] sm:$0xf]  ;;  %v8374_v15 = vld [vmem:[%s13039_s26 + $0x154] sm:$0xf0] }
  0x83   : > { %1995 = vmatpush.bf16.msrb.mxu0 %v6699_v19  ;;  %v8438_v19 = vld [vmem:[%s13039_s26 + $0x354] sm:$0xf0]  ;;  %v6062_v36 = vld [vmem:[%s13039_s26 + $0x108] sm:$0xf] }
  0x84   : > { %1940 = vmatmul.bf16.vlgmr.msra.gmra.mxu0 %v9551_v54  ;;  %v8338_v23 = vld [vmem:[%s13039_s26 + $0x34] sm:$0xf0]  ;;  %v6351_v28 = vor.u32 %v8438_v19, %v6350_v18  ;;  %v6558_v41 = vld [vmem:[%s13039_s26 + $0x4e8] sm:$0xf] }
  0x85   : > { %1981 = vmatpush.bf16.msrb.mxu2 %v6571_v22  ;;  %1968 = vmatmul.bf16.vlgmr.msra.gmra.mxu3 %v9755_v37  ;;  %v6095_v22 = vor.u32 %v8374_v15, %v6094_v14  ;;  %v8370_v27 = vld [vmem:[%s13039_s26 + $0x134] sm:$0xf0]  ;;  %v6318_v48 = vld [vmem:[%s13039_s26 + $0x308] sm:$0xf]  ;;  %v8392_v15 = vld [vmem:[%s13039_s26 + $0x1ec] sm:$0xf] }
  0x86   : > { %2002 = vmatpush.bf16.msrb.mxu1 %v6047_v13  ;;  %2016 = vmatpush.bf16.msrb.mxu3 %v6175_v17  ;;  %v8410_v13 = vld [vmem:[%s13039_s26 + $0x274] sm:$0xf0]  ;;  %v5967_v17 = vor.u32 %v8342_v11, %v5966_v7  ;;  %v6542_v57 = vld [vmem:[%s13039_s26 + $0x4c8] sm:$0xf] }
  0x87   : > { %2030 = vmatpush.bf16.msra.mxu0 %v6303_v30  ;;  %1954 = vmatmul.bf16.vlgmr.msra.gmra.mxu1 %v9561_v62  ;;  %v6239_v21 = vor.u32 %v8410_v13, %v6238_v12  ;;  %v5951_v30 = vor.u32 %v8338_v23, %v5950_v20  ;;  %v8334_v33 = vld [vmem:[%s13039_s26 + $0x14] sm:$0xf0]  ;;  %v6670_v60 = vld [vmem:[%s13039_s26 + $0x5c8] sm:$0xf] }
  0x88   : > { %1982 = vmatmul.bf16.vlgmr.msrb.gmra.mxu2 %v9766_v42  ;;  %v8366_v40 = vld [vmem:[%s13039_s26 + $0x114] sm:$0xf0]  ;;  %v5935_v47 = vor.u32 %v8334_v33, %v5934_v32  ;;  %v6526_v11 = vld [vmem:[%s13039_s26 + $0x4a8] sm:$0xf]  ;;  %v8348_v33 = vld [vmem:[%s13039_s26 + $0x8c] sm:$0xf] }
  0x89   : > { %2044 = vmatpush.bf16.msra.mxu2 %v6431_v25  ;;  %v8406_v25 = vld [vmem:[%s13039_s26 + $0x254] sm:$0xf0]  ;;  %v6063_v53 = vor.u32 %v8366_v40, %v6062_v36  ;;  %v6494_v36 = vld [vmem:[%s13039_s26 + $0x468] sm:$0xf]  ;;  %v8384_v40 = vld [vmem:[%s13039_s26 + $0x1ac] sm:$0xf] }
  0x8a   : > { %2003 = vmatpush.bf16.msrb.mxu1 %v6031_v26  ;;  %2017 = vmatpush.bf16.msrb.mxu3 %v6159_v31  ;;  %v6078_v26 = vld [vmem:[%s13039_s26 + $0x128] sm:$0xf]  ;;  %v8434_v31 = vld [vmem:[%s13039_s26 + $0x334] sm:$0xf0]  ;;  %v6223_v34 = vor.u32 %v8406_v25, %v6222_v24 }
  0x8b   : > { %2031 = vmatpush.bf16.msra.mxu0 %v6287_v44  ;;  %v6079_v35 = vor.u32 %v8370_v27, %v6078_v26  ;;  %v8490_v43 = vld [vmem:[%s13039_s26 + $0x4f4] sm:$0xf0]  ;;  %v6335_v44 = vor.u32 %v8434_v31, %v6334_v29  ;;  %v6510_v24 = vld [vmem:[%s13039_s26 + $0x488] sm:$0xf]  ;;  %v8388_v27 = vld [vmem:[%s13039_s26 + $0x1cc] sm:$0xf] }
  0x8c   : > { %v8522_v46 = vld [vmem:[%s13039_s26 + $0x5f4] sm:$0xf0]  ;;  %v6559_v55 = vor.u32 %v8490_v43, %v6558_v41  ;;  %v6638_v29 = vld [vmem:[%s13039_s26 + $0x588] sm:$0xf]  ;;  %v6144_v41 = vld [vmem:[%s13039_s26 + $0x1b8] sm:$0xf0] }
  0x8d   : > { %2045 = vmatpush.bf16.msra.mxu2 %v6415_v38  ;;  %v6206_v38 = vld [vmem:[%s13039_s26 + $0x228] sm:$0xf]  ;;  %v8430_v49 = vld [vmem:[%s13039_s26 + $0x314] sm:$0xf0] }
  0x8e   : > { %2004 = vmatpush.bf16.msrb.mxu1 %v6015_v39  ;;  %2018 = vmatpush.bf16.msrb.mxu3 %v6143_v45  ;;  %v8402_v39 = vld [vmem:[%s13039_s26 + $0x234] sm:$0xf0]  ;;  %v6686_v45 = vld [vmem:[%s13039_s26 + $0x5e8] sm:$0xf]  ;;  %v6319_v1 = vor.u32 %v8430_v49, %v6318_v48  ;;  %v5984_v48 = vld [vmem:[%s13039_s26 + $0x78] sm:$0xf0]  ;;  %v6147_v49 = vor.u32 %v8384_v40, %v6144_v41 }
  0x8f   : > { %2032 = vmatpush.bf16.msra.mxu0 %v6271_v59  ;;  %v6207_v51 = vor.u32 %v8402_v39, %v6206_v38  ;;  %v8486_v58 = vld [vmem:[%s13039_s26 + $0x4d4] sm:$0xf0]  ;;  %v6687_v59 = vor.u32 %v8522_v46, %v6686_v45  ;;  %v6622_v43 = vld [vmem:[%s13039_s26 + $0x568] sm:$0xf]  ;;  %v6080_v40 = vld [vmem:[%s13039_s26 + $0x138] sm:$0xf0] }
  0x90   : > { %v8398_v0 = vld [vmem:[%s13039_s26 + $0x214] sm:$0xf0]  ;;  %v6543_v6 = vor.u32 %v8486_v58, %v6542_v57  ;;  %v6606_v57 = vld [vmem:[%s13039_s26 + $0x548] sm:$0xf] }
  0x91   : > { %2046 = vmatpush.bf16.msra.mxu2 %v6399_v52  ;;  %v8360_v52 = vld [vmem:[%s13039_s26 + $0xec] sm:$0xf]  ;;  %v8518_v2 = vld [vmem:[%s13039_s26 + $0x5d4] sm:$0xf0] }
  0x92   : > { %2005 = vmatpush.bf16.msrb.mxu1 %v5999_v56  ;;  %2019 = vmatpush.bf16.msrb.mxu3 %v6127_v63  ;;  %v6048_v56 = vld [vmem:[%s13039_s26 + $0xf8] sm:$0xf0]  ;;  %v6190_v63 = vld [vmem:[%s13039_s26 + $0x208] sm:$0xf]  ;;  %v8526_v4 = vld [vmem:[%s13039_s26 + $0x614] sm:$0xf0]  ;;  %v6671_v12 = vor.u32 %v8518_v2, %v6670_v60 }
  0x93   : > { %2033 = vmatpush.bf16.msra.mxu0 %v6255_v9  ;;  %v6191_v7 = vor.u32 %v8398_v0, %v6190_v63  ;;  %v8356_v9 = vld [vmem:[%s13039_s26 + $0xcc] sm:$0xf]  ;;  %v8482_v13 = vld [vmem:[%s13039_s26 + $0x4b4] sm:$0xf0]  ;;  %v5968_v0 = vld [vmem:[%s13039_s26 + $0x58] sm:$0xf0] }
  0x94   : > { %6709 = vmatmul.msk.bf16.vlgmr.msrb.gmra.mxu0 %vm1802_vm0, %v9666_v50  ;;  %v8514_v18 = vld [vmem:[%s13039_s26 + $0x5b4] sm:$0xf0]  ;;  %v6527_v20 = vor.u32 %v8482_v13, %v6526_v11  ;;  %v8340_v63 = vld [vmem:[%s13039_s26 + $0x4c] sm:$0xf]  ;;  %v6462_v2 = vld [vmem:[%s13039_s26 + $0x428] sm:$0xf] }
  0x95   : > { %2047 = vmatpush.bf16.msra.mxu2 %v6383_v3  ;;  %v6702_v3 = vld [vmem:[%s13039_s26 + $0x608] sm:$0xf]  ;;  %v8478_v26 = vld [vmem:[%s13039_s26 + $0x494] sm:$0xf0]  ;;  %v8336_v11 = vld [vmem:[%s13039_s26 + $0x2c] sm:$0xf] }
  0x96   : > { %2006 = vmatpush.bf16.msrb.mxu1 %v5983_v5  ;;  %2020 = vmatpush.bf16.msrb.mxu3 %v6111_v10  ;;  %v6051_v5 = vor.u32 %v8360_v52, %v6048_v56  ;;  %v6032_v10 = vld [vmem:[%s13039_s26 + $0xd8] sm:$0xf0]  ;;  %v6703_v14 = vor.u32 %v8526_v4, %v6702_v3  ;;  %v6511_v32 = vor.u32 %v8478_v26, %v6510_v24  ;;  %v8474_v39 = vld [vmem:[%s13039_s26 + $0x474] sm:$0xf0] }
  0x97   : > { %2034 = vmatpush.bf16.msra.mxu0 %v6239_v21  ;;  %v6035_v19 = vor.u32 %v8356_v9, %v6032_v10  ;;  %v8352_v21 = vld [vmem:[%s13039_s26 + $0xac] sm:$0xf]  ;;  %v6495_v46 = vor.u32 %v8474_v39, %v6494_v36  ;;  %v6128_v56 = vld [vmem:[%s13039_s26 + $0x198] sm:$0xf0]  ;;  %v8502_v58 = vld [vmem:[%s13039_s26 + $0x554] sm:$0xf0]  ;;  %v5971_v10 = vor.u32 %v8340_v63, %v5968_v0 }
  0x98   : > { %v6607_v3 = vor.u32 %v8502_v58, %v6606_v57  ;;  %v8466_v4 = vld [vmem:[%s13039_s26 + $0x434] sm:$0xf0]  ;;  %v5952_v13 = vld [vmem:[%s13039_s26 + $0x38] sm:$0xf0]  ;;  %v8368_v39 = vld [vmem:[%s13039_s26 + $0x12c] sm:$0xf] }
  0x99   : > { %2048 = vmatpush.bf16.msra.mxu2 %v6367_v16  ;;  %v6176_v16 = vld [vmem:[%s13039_s26 + $0x1f8] sm:$0xf0]  ;;  %v8498_v9 = vld [vmem:[%s13039_s26 + $0x534] sm:$0xf0]  ;;  %v5955_v24 = vor.u32 %v8336_v11, %v5952_v13 }
  0x9a   : > { %2007 = vmatpush.bf16.msrb.mxu1 %v5967_v17  ;;  %2021 = vmatpush.bf16.msrb.mxu3 %v6095_v22  ;;  %v6654_v17 = vld [vmem:[%s13039_s26 + $0x5a8] sm:$0xf]  ;;  %v6016_v22 = vld [vmem:[%s13039_s26 + $0xb8] sm:$0xf0]  ;;  %v6179_v23 = vor.u32 %v8392_v15, %v6176_v16  ;;  %v8462_v16 = vld [vmem:[%s13039_s26 + $0x414] sm:$0xf0] }
  0x9b   : > { %2035 = vmatpush.bf16.msra.mxu0 %v6223_v34  ;;  %v6655_v25 = vor.u32 %v8514_v18, %v6654_v17  ;;  %v6019_v31 = vor.u32 %v8352_v21, %v6016_v22  ;;  %v6000_v34 = vld [vmem:[%s13039_s26 + $0x98] sm:$0xf0]  ;;  %v6446_v15 = vld [vmem:[%s13039_s26 + $0x408] sm:$0xf]  ;;  %v8494_v21 = vld [vmem:[%s13039_s26 + $0x514] sm:$0xf0] }
  0x9c   : > { %v6003_v45 = vor.u32 %v8348_v33, %v6000_v34  ;;  %v6574_v18 = vld [vmem:[%s13039_s26 + $0x508] sm:$0xf]  ;;  %v8424_v22 = vld [vmem:[%s13039_s26 + $0x2ec] sm:$0xf]  ;;  %v6432_v26 = vld [vmem:[%s13039_s26 + $0x3f8] sm:$0xf0] }
  0x9d   : > { %2049 = vmatpush.bf16.msra.mxu2 %v6351_v28  ;;  %v6160_v28 = vld [vmem:[%s13039_s26 + $0x1d8] sm:$0xf0]  ;;  %v8488_v33 = vld [vmem:[%s13039_s26 + $0x4ec] sm:$0xf] }
  0x9e   : > { %2008 = vmatpush.bf16.msrb.mxu1 %v5951_v30  ;;  %2022 = vmatpush.bf16.msrb.mxu3 %v6079_v35  ;;  %v8510_v30 = vld [vmem:[%s13039_s26 + $0x594] sm:$0xf0]  ;;  %v6163_v35 = vor.u32 %v8388_v27, %v6160_v28  ;;  %v6447_v27 = vor.u32 %v8462_v16, %v6446_v15  ;;  %v8332_v28 = vld [vmem:[%s13039_s26 + $0xc] sm:$0xf]  ;;  %v6560_v34 = vld [vmem:[%s13039_s26 + $0x4f8] sm:$0xf0] }
  0x9f   : > { %2036 = vmatpush.bf16.msra.mxu0 %v6207_v51  ;;  %v6639_v38 = vor.u32 %v8510_v30, %v6638_v29  ;;  %v6478_v51 = vld [vmem:[%s13039_s26 + $0x448] sm:$0xf]  ;;  %v5936_v29 = vld [vmem:[%s13039_s26 + $0x18] sm:$0xf0] }
  0xa0   : > { %v5939_v41 = vor.u32 %v8332_v28, %v5936_v29  ;;  %v6064_v57 = vld [vmem:[%s13039_s26 + $0x118] sm:$0xf0] }
  0xa1   : > { %2050 = vmatpush.bf16.msra.mxu2 %v6335_v44  ;;  %v8506_v44 = vld [vmem:[%s13039_s26 + $0x574] sm:$0xf0]  ;;  %v6400_v58 = vld [vmem:[%s13039_s26 + $0x3b8] sm:$0xf0] }
  0xa2   : > { %2009 = vmatpush.bf16.msrb.mxu1 %v5935_v47  ;;  %2023 = vmatpush.bf16.msrb.mxu3 %v6063_v53  ;;  %v8344_v47 = vld [vmem:[%s13039_s26 + $0x6c] sm:$0xf]  ;;  %v6623_v52 = vor.u32 %v8506_v44, %v6622_v43  ;;  %v8470_v53 = vld [vmem:[%s13039_s26 + $0x454] sm:$0xf0]  ;;  %v6416_v44 = vld [vmem:[%s13039_s26 + $0x3d8] sm:$0xf0] }
  0xa3   : > { %2037 = vmatpush.bf16.msra.mxu0 %v6191_v7  ;;  %v6479_v60 = vor.u32 %v8470_v53, %v6478_v51  ;;  %v6590_v7 = vld [vmem:[%s13039_s26 + $0x528] sm:$0xf]  ;;  %v8452_v43 = vld [vmem:[%s13039_s26 + $0x3cc] sm:$0xf]  ;;  %v6672_v11 = vld [vmem:[%s13039_s26 + $0x5d8] sm:$0xf0] }
  0xa4   : > { %v6591_v17 = vor.u32 %v8498_v9, %v6590_v7  ;;  %v8416_v51 = vld [vmem:[%s13039_s26 + $0x2ac] sm:$0xf]  ;;  %v6419_v53 = vor.u32 %v8452_v43, %v6416_v44  ;;  %v6256_v7 = vld [vmem:[%s13039_s26 + $0x298] sm:$0xf0] }
  0xa5   : > { %2051 = vmatpush.bf16.msra.mxu2 %v6319_v1  ;;  %2010 = vmatmul.bf16.vlgmr.msrb.gmra.mxu1 %v9559_v61  ;;  %v8444_v9 = vld [vmem:[%s13039_s26 + $0x38c] sm:$0xf]  ;;  %v6512_v15 = vld [vmem:[%s13039_s26 + $0x498] sm:$0xf0] }
  0xa6   : > { %2058 = vmatpush.bf16.msra.mxu1 %v6559_v55  ;;  %2072 = vmatpush.bf16.msra.mxu3 %v6687_v59  ;;  %v8380_v55 = vld [vmem:[%s13039_s26 + $0x18c] sm:$0xf]  ;;  %v5987_v59 = vor.u32 %v8344_v47, %v5984_v48  ;;  %v6083_v48 = vor.u32 %v8368_v39, %v6080_v40  ;;  %v6480_v39 = vld [vmem:[%s13039_s26 + $0x458] sm:$0xf0] }
  0xa7   : > { %2024 = vmatmul.bf16.vlgmr.msrb.gmra.mxu3 %v9579_v8  ;;  %2093 = vmatpush.bf16.msrb.mxu0 %v6703_v14  ;;  %v6131_v1 = vor.u32 %v8380_v55, %v6128_v56  ;;  %v8448_v55 = vld [vmem:[%s13039_s26 + $0x3ac] sm:$0xf]  ;;  %v6208_v44 = vld [vmem:[%s13039_s26 + $0x238] sm:$0xf0] }
  0xa8   : > { %2052 = vmatmul.bf16.vlgmr.msra.gmra.mxu2 %v9561_v62  ;;  %2038 = vmatmul.bf16.vlgmr.msra.gmra.mxu0 %v9551_v54  ;;  %v8364_v56 = vld [vmem:[%s13039_s26 + $0x10c] sm:$0xf] }
  0xa9   : > { %2100 = vmatpush.bf16.msrb.mxu2 %v6051_v5  ;;  %v8376_v5 = vld [vmem:[%s13039_s26 + $0x16c] sm:$0xf] }
  0xaa   : > { %2059 = vmatpush.bf16.msra.mxu1 %v6543_v6  ;;  %2073 = vmatpush.bf16.msra.mxu3 %v6671_v12  ;;  %v6112_v6 = vld [vmem:[%s13039_s26 + $0x178] sm:$0xf0]  ;;  %v6463_v12 = vor.u32 %v8466_v4, %v6462_v2  ;;  %v8480_v2 = vld [vmem:[%s13039_s26 + $0x4ac] sm:$0xf]  ;;  %v6403_v4 = vor.u32 %v8448_v55, %v6400_v58 }
  0xab   : > { %2114 = vmatpush.bf16.msra.mxu0 %v6179_v23  ;;  %v6115_v14 = vor.u32 %v8376_v5, %v6112_v6  ;;  %v6304_v23 = vld [vmem:[%s13039_s26 + $0x2f8] sm:$0xf0]  ;;  %v8412_v6 = vld [vmem:[%s13039_s26 + $0x28c] sm:$0xf] }
  0xac   : > { %v6259_v13 = vor.u32 %v8412_v6, %v6256_v7  ;;  %v8400_v43 = vld [vmem:[%s13039_s26 + $0x22c] sm:$0xf]  ;;  %v6464_v55 = vld [vmem:[%s13039_s26 + $0x438] sm:$0xf0]  ;;  %v6770_v7 = vld [vmem:[%s13042_s3 + $0x70] sm:$0xf] }
  0xad   : > { %2101 = vmatpush.bf16.msrb.mxu2 %v6035_v19  ;;  %v8372_v19 = vld [vmem:[%s13039_s26 + $0x14c] sm:$0xf] }
  0xae   : > { %2060 = vmatpush.bf16.msra.mxu1 %v6527_v20  ;;  %2074 = vmatpush.bf16.msra.mxu3 %v6655_v25  ;;  %v6096_v20 = vld [vmem:[%s13039_s26 + $0x158] sm:$0xf0]  ;;  %v8456_v25 = vld [vmem:[%s13039_s26 + $0x3ec] sm:$0xf] }
  0xaf   : > { %2115 = vmatpush.bf16.msra.mxu0 %v6163_v35  ;;  %v6099_v30 = vor.u32 %v8372_v19, %v6096_v20  ;;  %v8420_v35 = vld [vmem:[%s13039_s26 + $0x2cc] sm:$0xf]  ;;  %v6435_v36 = vor.u32 %v8456_v25, %v6432_v26  ;;  %v6240_v19 = vld [vmem:[%s13039_s26 + $0x278] sm:$0xf0] }
  0xb0   : > { %v8440_v20 = vld [vmem:[%s13039_s26 + $0x36c] sm:$0xf] }
  0xb1   : > { %2102 = vmatpush.bf16.msrb.mxu2 %v6019_v31  ;;  %v6575_v31 = vor.u32 %v8494_v21, %v6574_v18  ;;  %v8408_v18 = vld [vmem:[%s13039_s26 + $0x26c] sm:$0xf]  ;;  %v6368_v21 = vld [vmem:[%s13039_s26 + $0x378] sm:$0xf0] }
  0xb2   : > { %2061 = vmatpush.bf16.msra.mxu1 %v6511_v32  ;;  %2075 = vmatpush.bf16.msra.mxu3 %v6639_v38  ;;  %v6307_v32 = vor.u32 %v8424_v22, %v6304_v23  ;;  %v6288_v38 = vld [vmem:[%s13039_s26 + $0x2d8] sm:$0xf0]  ;;  %v8512_v22 = vld [vmem:[%s13039_s26 + $0x5ac] sm:$0xf]  ;;  %v6243_v25 = vor.u32 %v8408_v18, %v6240_v19  ;;  %v6371_v28 = vor.u32 %v8440_v20, %v6368_v21 }
  0xb3   : > { %2116 = vmatpush.bf16.msra.mxu0 %v6147_v49  ;;  %v6291_v47 = vor.u32 %v8420_v35, %v6288_v38  ;;  %v6544_v49 = vld [vmem:[%s13039_s26 + $0x4d8] sm:$0xf0]  ;;  %v8472_v26 = vld [vmem:[%s13039_s26 + $0x46c] sm:$0xf] }
  0xb4   : > { %v6656_v23 = vld [vmem:[%s13039_s26 + $0x5b8] sm:$0xf0]  ;;  %v8468_v38 = vld [vmem:[%s13039_s26 + $0x44c] sm:$0xf] }
  0xb5   : > { %2103 = vmatpush.bf16.msrb.mxu2 %v6003_v45  ;;  %v6563_v45 = vor.u32 %v8488_v33, %v6560_v34  ;;  %v6659_v29 = vor.u32 %v8512_v22, %v6656_v23  ;;  %v8508_v33 = vld [vmem:[%s13039_s26 + $0x58c] sm:$0xf]  ;;  %v6640_v34 = vld [vmem:[%s13039_s26 + $0x598] sm:$0xf0]  ;;  %v8540_v22 = vld [vmem:[%s13042_s3 + $0x64] sm:$0xf0] }
  0xb6   : > { %2062 = vmatpush.bf16.msra.mxu1 %v6495_v46  ;;  %2076 = vmatpush.bf16.msra.mxu3 %v6623_v52  ;;  %v8484_v46 = vld [vmem:[%s13039_s26 + $0x4cc] sm:$0xf]  ;;  %v6272_v52 = vld [vmem:[%s13039_s26 + $0x2b8] sm:$0xf0]  ;;  %v6834_v23 = vld [vmem:[%s13042_s3 + $0xf0] sm:$0xf] }
  0xb7   : > { %2117 = vmatpush.bf16.msra.mxu0 %v6131_v1  ;;  %v6547_v63 = vor.u32 %v8484_v46, %v6544_v49  ;;  %v6275_v0 = vor.u32 %v8416_v51, %v6272_v52  ;;  %v6067_v1 = vor.u32 %v8364_v56, %v6064_v57  ;;  %v6336_v46 = vld [vmem:[%s13039_s26 + $0x338] sm:$0xf0]  ;;  %v6483_v49 = vor.u32 %v8468_v38, %v6480_v39  ;;  %v10493_v51 = vld [vmem:[%s13041_s25] sm:$0xf]  ;;  %v8496_v18 = vld [vmem:[%s13039_s26 + $0x52c] sm:$0xf] }
  0xb8   : > { %6710 = vmatmul.msk.bf16.vlgmr.msrb.gmra.mxu0 %vm1802_vm0, %v9666_v50  ;;  %v6211_v52 = vor.u32 %v8400_v43, %v6208_v44  ;;  %v6592_v19 = vld [vmem:[%s13039_s26 + $0x538] sm:$0xf0]  ;;  %v6746_v44 = vld [vmem:[%s13042_s3 + $0x40] sm:$0xf]  ;;  %s13046_s25 = sld [smem:[#allocation19_spill]] }
  0xb9   : > { %2104 = vmatpush.bf16.msrb.mxu2 %v5987_v59  ;;  %v8520_v59 = vld [vmem:[%s13039_s26 + $0x5ec] sm:$0xf] }
  0xba   : > { %2063 = vmatpush.bf16.msra.mxu1 %v6479_v60  ;;  %2077 = vmatpush.bf16.msra.mxu3 %v6607_v3  ;;  %v6688_v60 = vld [vmem:[%s13039_s26 + $0x5f8] sm:$0xf0] }
  0xbb   : > { %2118 = vmatpush.bf16.msra.mxu0 %v6115_v14  ;;  %v6528_v3 = vld [vmem:[%s13039_s26 + $0x4b8] sm:$0xf0]  ;;  %v6691_v5 = vor.u32 %v8520_v59, %v6688_v60  ;;  %v8476_v14 = vld [vmem:[%s13039_s26 + $0x48c] sm:$0xf] }
  0xbc   : > { %v8396_v59 = vld [vmem:[%s13039_s26 + $0x20c] sm:$0xf]  ;;  %v6192_v60 = vld [vmem:[%s13039_s26 + $0x218] sm:$0xf0] }
  0xbd   : > { %2105 = vmatpush.bf16.msrb.mxu2 %v5971_v10  ;;  %v6384_v10 = vld [vmem:[%s13039_s26 + $0x398] sm:$0xf0] }
  0xbe   : > { %2064 = vmatpush.bf16.msra.mxu1 %v6463_v12  ;;  %2078 = vmatpush.bf16.msra.mxu3 %v6591_v17  ;;  %v6531_v12 = vor.u32 %v8480_v2, %v6528_v3  ;;  %v6387_v16 = vor.u32 %v8444_v9, %v6384_v10  ;;  %v8500_v2 = vld [vmem:[%s13039_s26 + $0x54c] sm:$0xf]  ;;  %v6608_v3 = vld [vmem:[%s13039_s26 + $0x558] sm:$0xf0]  ;;  %v8542_v9 = vld [vmem:[%s13042_s3 + $0x74] sm:$0xf0]  ;;  %v6195_v10 = vor.u32 %v8396_v59, %v6192_v60 }
  0xbf   : > { %2119 = vmatpush.bf16.msra.mxu0 %v6099_v30  ;;  %v8404_v30 = vld [vmem:[%s13039_s26 + $0x24c] sm:$0xf]  ;;  %s9110_s30 = scalar_lea.hbm %s13046_s25, 336 }
  0xc1   : > { %2106 = vmatpush.bf16.msrb.mxu2 %v5955_v24  ;;  %v6515_v24 = vor.u32 %v8476_v14, %v6512_v15  ;;  %v8524_v14 = vld [vmem:[%s13039_s26 + $0x60c] sm:$0xf]  ;;  %v6704_v15 = vld [vmem:[%s13039_s26 + $0x618] sm:$0xf0] }
  0xc2   : > { %2065 = vmatpush.bf16.msra.mxu1 %v6447_v27  ;;  %2079 = vmatpush.bf16.msra.mxu3 %v6575_v31  ;;  %v6496_v27 = vld [vmem:[%s13039_s26 + $0x478] sm:$0xf0]  ;;  %v8436_v31 = vld [vmem:[%s13039_s26 + $0x34c] sm:$0xf] }
  0xc3   : > { %2120 = vmatpush.bf16.msra.mxu0 %v6083_v48  ;;  %v6499_v35 = vor.u32 %v8472_v26, %v6496_v27  ;;  %v6624_v48 = vld [vmem:[%s13039_s26 + $0x578] sm:$0xf0]  ;;  %v6595_v27 = vor.u32 %v8496_v18, %v6592_v19 }
  0xc5   : > { %2066 = vmatmul.bf16.vlgmr.msra.gmra.mxu1 %v9755_v37  ;;  %2107 = vmatpush.bf16.msrb.mxu2 %v5939_v41  ;;  %v6643_v41 = vor.u32 %v8508_v33, %v6640_v34  ;;  %v1815_v56 = vpop.f32.mrf.mxu0  ;;  %v8538_v33 = vld [vmem:[%s13042_s3 + $0x54] sm:$0xf0]  ;;  %v6826_v34 = vld [vmem:[%s13042_s3 + $0xe0] sm:$0xf] }
  0xc6   : > { %2128 = vmatpush.bf16.msrb.mxu1 %v6307_v32  ;;  %2142 = vmatpush.bf16.msrb.mxu3 %v6435_v36  ;;  %v6352_v32 = vld [vmem:[%s13039_s26 + $0x358] sm:$0xf0] }
  0xc7   : > { %2080 = vmatmul.bf16.vlgmr.msra.gmra.mxu3 %v9766_v42  ;;  %2121 = vmatpush.bf16.msra.mxu0 %v6067_v1  ;;  %v6355_v40 = vor.u32 %v8436_v31, %v6352_v32  ;;  %v6320_v1 = vld [vmem:[%s13039_s26 + $0x318] sm:$0xf0] }
  0xc8   : > { %2108 = vmatmul.bf16.vlgmr.msrb.gmra.mxu2 %v9559_v61  ;;  %v8516_v61 = vld [vmem:[%s13039_s26 + $0x5cc] sm:$0xf] }
  0xc9   : > { %2156 = vmatpush.bf16.msra.mxu2 %v6563_v45  ;;  %v6675_v17 = vor.u32 %v8516_v61, %v6672_v11  ;;  %v8432_v45 = vld [vmem:[%s13039_s26 + $0x32c] sm:$0xf]  ;;  %v6448_v11 = vld [vmem:[%s13039_s26 + $0x418] sm:$0xf0] }
  0xca   : > { %2129 = vmatpush.bf16.msrb.mxu1 %v6291_v47  ;;  %2143 = vmatpush.bf16.msrb.mxu3 %v6419_v53  ;;  %v8504_v47 = vld [vmem:[%s13039_s26 + $0x56c] sm:$0xf]  ;;  %v6339_v57 = vor.u32 %v8432_v45, %v6336_v46  ;;  %v6818_v46 = vld [vmem:[%s13042_s3 + $0xd0] sm:$0xf] }
  0xcb   : > { %2170 = vmatpush.bf16.msrb.mxu0 %v6691_v5  ;;  %v8464_v53 = vld [vmem:[%s13039_s26 + $0x42c] sm:$0xf]  ;;  %v6627_v58 = vor.u32 %v8504_v47, %v6624_v48  ;;  %v1843_v5 = vpop.f32.mrf.mxu2  ;;  %v8554_v47 = vld [vmem:[%s13042_s3 + $0xd4] sm:$0xf0] }
  0xcc   : > { %2122 = vmatmul.bf16.vlgmr.msra.gmra.mxu0 %v9579_v8  ;;  %v6224_v8 = vld [vmem:[%s13039_s26 + $0x258] sm:$0xf0]  ;;  %v6467_v6 = vor.u32 %v8464_v53, %v6464_v55  ;;  %v8460_v61 = vld [vmem:[%s13039_s26 + $0x40c] sm:$0xf]  ;;  %v1857_v39 = vpop.f32.mrf.mxu3 }
  0xcd   : > { %2157 = vmatpush.bf16.msra.mxu2 %v6547_v63  ;;  %v6227_v36 = vor.u32 %v8404_v30, %v6224_v8  ;;  %v8428_v63 = vld [vmem:[%s13039_s26 + $0x30c] sm:$0xf]  ;;  %v6451_v21 = vor.u32 %v8460_v61, %v6448_v11  ;;  %v6576_v8 = vld [vmem:[%s13039_s26 + $0x518] sm:$0xf0]  ;;  %v1817_v32 = vpop.f32.mrf.mxu0  ;;  %v6722_v11 = vld [vmem:[%s13042_s3 + $0x10] sm:$0xf] }
  0xce   : > { %2130 = vmatpush.bf16.msrb.mxu1 %v6275_v0  ;;  %2144 = vmatpush.bf16.msrb.mxu3 %v6403_v4  ;;  %v1829_v0 = vpop.f32.mrf.mxu1  ;;  %v814_v4 = vperm.slane %v10493_v51, 0  ;;  %v8492_v30 = vld [vmem:[%s13039_s26 + $0x50c] sm:$0xf] }
  0xcf   : > { %2171 = vmatpush.bf16.msrb.mxu0 %v6675_v17  ;;  %v6762_v17 = vld [vmem:[%s13042_s3 + $0x60] sm:$0xf] }
  0xd0   : > { %v1816_v20 = vadd.f32 %v1815_v56, %v814_v4  ;;  %v8534_v56 = vld [vmem:[%s13042_s3 + $0x34] sm:$0xf0] }
  0xd1   : > { %2158 = vmatpush.bf16.msra.mxu2 %v6531_v12  ;;  %v6323_v12 = vor.u32 %v8428_v63, %v6320_v1 }
  0xd2   : > { %2131 = vmatpush.bf16.msrb.mxu1 %v6259_v13  ;;  %2145 = vmatpush.bf16.msrb.mxu3 %v6387_v16  ;;  %v6611_v13 = vor.u32 %v8500_v2, %v6608_v3  ;;  %v6771_v16 = vor.u32 %v8542_v9, %v6770_v7  ;;  %v1830_v31 = vadd.f32 %v1829_v0, %v1816_v20  ;;  %v6730_v3 = vld [vmem:[%s13042_s3 + $0x20] sm:$0xf] }
  0xd3   : > { %2172 = vmatpush.bf16.msrb.mxu0 %v6659_v29  ;;  %v6754_v29 = vld [vmem:[%s13042_s3 + $0x50] sm:$0xf] }
  0xd4   : > { %v6755_v43 = vor.u32 %v8538_v33, %v6754_v29  ;;  %v1844_v45 = vadd.f32 %v1843_v5, %v1830_v31  ;;  %v8532_v5 = vld [vmem:[%s13042_s3 + $0x24] sm:$0xf0]  ;;  %v8539_v31 = vld [vmem:[%s13042_s3 + $0x64] sm:$0xf] }
  0xd5   : > { %2159 = vmatpush.bf16.msra.mxu2 %v6515_v24  ;;  %v8558_v24 = vld [vmem:[%s13042_s3 + $0xf4] sm:$0xf0]  ;;  %v6731_v61 = vor.u32 %v8532_v5, %v6730_v3  ;;  %v8544_v33 = vld [vmem:[%s13042_s3 + $0x84] sm:$0xf0]  ;;  %v6740_v3 = vld [vmem:[%s13042_s3 + $0x38] sm:$0xf0] }
  0xd6   : > { %2132 = vmatpush.bf16.msrb.mxu1 %v6243_v25  ;;  %2146 = vmatpush.bf16.msrb.mxu3 %v6371_v28  ;;  %v6707_v25 = vor.u32 %v8524_v14, %v6704_v15  ;;  %v6835_v26 = vor.u32 %v8558_v24, %v6834_v23  ;;  %v6763_v28 = vor.u32 %v8540_v22, %v6762_v17  ;;  %v6794_v14 = vld [vmem:[%s13042_s3 + $0xa0] sm:$0xf]  ;;  %v8548_v15 = vld [vmem:[%s13042_s3 + $0xa4] sm:$0xf0] }
  0xd7   : > { %2173 = vmatpush.bf16.msrb.mxu0 %v6643_v41  ;;  %v1818_v41 = vadd.f32 %v1817_v32, %v814_v4  ;;  %v1858_v53 = vadd.f32 %v1857_v39, %v1844_v45  ;;  %v1859_v4 = vpop.f32.mrf.mxu3  ;;  %v6795_v18 = vor.u32 %v8548_v15, %v6794_v14  ;;  %v6714_v22 = vld [vmem:[%s13042_s3] sm:$0xf]  ;;  %v8528_v24 = vld [vmem:[%s13042_s3 + $0x4] sm:$0xf0]  ;;  %v6836_v39 = vld [vmem:[%s13042_s3 + $0xf8] sm:$0xf0] }
  0xd8   : > { %v6778_v32 = vld [vmem:[%s13042_s3 + $0x80] sm:$0xf]  ;;  %v8547_v15 = vld [vmem:[%s13042_s3 + $0xa4] sm:$0xf] }
  0xd9   : > { %2160 = vmatpush.bf16.msra.mxu2 %v6499_v35  ;;  %v8556_v35 = vld [vmem:[%s13042_s3 + $0xe4] sm:$0xf0] }
  0xda   : > { %2133 = vmatpush.bf16.msrb.mxu1 %v6227_v36  ;;  %2147 = vmatpush.bf16.msrb.mxu3 %v6355_v40  ;;  %v1831_v36 = vpop.f32.mrf.mxu1  ;;  %v6827_v38 = vor.u32 %v8556_v35, %v6826_v34  ;;  %v6579_v40 = vor.u32 %v8492_v30, %v6576_v8  ;;  %v6715_v30 = vor.u32 %v8528_v24, %v6714_v22  ;;  %v6764_v35 = vld [vmem:[%s13042_s3 + $0x68] sm:$0xf0]  ;;  %v6724_v22 = vld [vmem:[%s13042_s3 + $0x18] sm:$0xf0]  ;;  %v6898_v24 = vld [vmem:[%s13042_s3 + $0x170] sm:$0xf] }
  0xdb   : > { %2174 = vmatpush.bf16.msrb.mxu0 %v6627_v58  ;;  %v1832_v48 = vadd.f32 %v1831_v36, %v1818_v41  ;;  %v8552_v58 = vld [vmem:[%s13042_s3 + $0xc4] sm:$0xf0]  ;;  %v6779_v36 = vor.u32 %v8544_v33, %v6778_v32 }
  0xdc   : > { %v8572_v32 = vld [vmem:[%s13042_s3 + $0x164] sm:$0xf0] }
  0xdd   : > { %2161 = vmatpush.bf16.msra.mxu2 %v6483_v49 }
  0xde   : > { %2134 = vmatpush.bf16.msrb.mxu1 %v6211_v52  ;;  %2148 = vmatpush.bf16.msrb.mxu3 %v6339_v57  ;;  %v6738_v52 = vld [vmem:[%s13042_s3 + $0x30] sm:$0xf]  ;;  %v6810_v57 = vld [vmem:[%s13042_s3 + $0xc0] sm:$0xf] }
  0xdf   : > { %2175 = vmatpush.bf16.msrb.mxu0 %v6611_v13  ;;  %v6811_v60 = vor.u32 %v8552_v58, %v6810_v57  ;;  %v6739_v2 = vor.u32 %v8534_v56, %v6738_v52  ;;  %v8530_v13 = vld [vmem:[%s13042_s3 + $0x14] sm:$0xf0]  ;;  %v8553_v56 = vld [vmem:[%s13042_s3 + $0xd4] sm:$0xf]  ;;  %v6820_v57 = vld [vmem:[%s13042_s3 + $0xd8] sm:$0xf0] }
  0xe0   : > { %v6823_v58 = vor.u32 %v8553_v56, %v6820_v57  ;;  %v6874_v56 = vld [vmem:[%s13042_s3 + $0x140] sm:$0xf]  ;;  %v8568_v57 = vld [vmem:[%s13042_s3 + $0x144] sm:$0xf0] }
  0xe1   : > { %2162 = vmatpush.bf16.msra.mxu2 %v6467_v6  ;;  %v1871_v55 = vpop.f32.mrf.mxu0  ;;  %v8550_v6 = vld [vmem:[%s13042_s3 + $0xb4] sm:$0xf0] }
  0xe2   : > { %2135 = vmatpush.bf16.msrb.mxu1 %v6195_v10  ;;  %2149 = vmatpush.bf16.msrb.mxu3 %v6323_v12  ;;  %v1885_v59 = vpop.f32.mrf.mxu1  ;;  %v1872_v0 = vadd.f32 %v1871_v55, %v1858_v53  ;;  %v8535_v53 = vld [vmem:[%s13042_s3 + $0x44] sm:$0xf]  ;;  %v6748_v55 = vld [vmem:[%s13042_s3 + $0x48] sm:$0xf0] }
  0xe3   : > { %2176 = vmatpush.bf16.msrb.mxu0 %v6595_v27  ;;  %v8541_v27 = vld [vmem:[%s13042_s3 + $0x74] sm:$0xf] }
  0xe4   : > { %v1886_v9 = vadd.f32 %v1885_v59, %v1872_v0  ;;  %v8551_v59 = vld [vmem:[%s13042_s3 + $0xc4] sm:$0xf] }
  0xe5   : > { %2136 = vmatmul.bf16.vlgmr.msrb.gmra.mxu1 %v9551_v54  ;;  %2163 = vmatpush.bf16.msra.mxu2 %v6451_v21  ;;  %v1845_v54 = vpop.f32.mrf.mxu2  ;;  %v6723_v21 = vor.u32 %v8530_v13, %v6722_v11  ;;  %v6732_v11 = vld [vmem:[%s13042_s3 + $0x28] sm:$0xf0]  ;;  %v6804_v13 = vld [vmem:[%s13042_s3 + $0xb8] sm:$0xf0] }
  0xe6   : > { %2600 = vmatpush.bf16.msra.mxu3 %v6771_v16  ;;  %2614 = vmatpush.bf16.msra.mxu1 %v6835_v26  ;;  %v1846_v1 = vadd.f32 %v1845_v54, %v1832_v48  ;;  %v8546_v26 = vld [vmem:[%s13042_s3 + $0x94] sm:$0xf0] }
  0xe7   : > { %2150 = vmatmul.bf16.vlgmr.msrb.gmra.mxu3 %v9561_v62  ;;  %v8536_v62 = vld [vmem:[%s13042_s3 + $0x44] sm:$0xf0]  ;;  %2177 = vmatpush.bf16.msrb.mxu0 %v6579_v40 }
  0xe8   : > { %2164 = vmatmul.bf16.vlgmr.msra.gmra.mxu2 %v9755_v37  ;;  %v6819_v37 = vor.u32 %v8554_v47, %v6818_v46  ;;  %v6747_v49 = vor.u32 %v8536_v62, %v6746_v44  ;;  %v1860_v10 = vadd.f32 %v1859_v4, %v1846_v1  ;;  %v8537_v44 = vld [vmem:[%s13042_s3 + $0x54] sm:$0xf]  ;;  %v6756_v62 = vld [vmem:[%s13042_s3 + $0x58] sm:$0xf0]  ;;  %v8555_v46 = vld [vmem:[%s13042_s3 + $0xe4] sm:$0xf]  ;;  %v6751_v1 = vor.u32 %v8535_v53, %v6748_v55 }
  0xe9   : > { %2191 = vmatpush.bf16.msrb.mxu2 %v6707_v25  ;;  %v1873_v12 = vpop.f32.mrf.mxu0  ;;  %v6786_v25 = vld [vmem:[%s13042_s3 + $0x90] sm:$0xf]  ;;  %v6828_v47 = vld [vmem:[%s13042_s3 + $0xe8] sm:$0xf0]  ;;  %v6759_v52 = vor.u32 %v8537_v44, %v6756_v62 }
  0xea   : > { %2601 = vmatpush.bf16.msra.mxu3 %v6763_v28  ;;  %2615 = vmatpush.bf16.msra.mxu1 %v6827_v38  ;;  %v1874_v16 = vadd.f32 %v1873_v12, %v1860_v10  ;;  %v1887_v17 = vpop.f32.mrf.mxu1  ;;  %v6772_v28 = vld [vmem:[%s13042_s3 + $0x78] sm:$0xf0]  ;;  %v6787_v29 = vor.u32 %v8546_v26, %v6786_v25  ;;  %v1913_v34 = vpop.f32.mrf.mxu3  ;;  %v8557_v38 = vld [vmem:[%s13042_s3 + $0xf4] sm:$0xf]  ;;  %v6831_v48 = vor.u32 %v8555_v46, %v6828_v47  ;;  %v8574_v25 = vld [vmem:[%s13042_s3 + $0x174] sm:$0xf0] }
  0xeb   : > { %2178 = vmatmul.bf16.vlgmr.msrb.gmra.mxu0 %v9766_v42  ;;  %v6802_v42 = vld [vmem:[%s13042_s3 + $0xb0] sm:$0xf]  ;;  %v6775_v8 = vor.u32 %v8541_v27, %v6772_v28  ;;  %v6839_v54 = vor.u32 %v8557_v38, %v6836_v39  ;;  %v8549_v12 = vld [vmem:[%s13042_s3 + $0xb4] sm:$0xf]  ;;  %v6788_v28 = vld [vmem:[%s13042_s3 + $0x98] sm:$0xf0] }
  0xec   : > { %v6803_v7 = vor.u32 %v8550_v6, %v6802_v42  ;;  %v1888_v20 = vadd.f32 %v1887_v17, %v1874_v16  ;;  %v6807_v14 = vor.u32 %v8549_v12, %v6804_v13  ;;  %v6796_v16 = vld [vmem:[%s13042_s3 + $0xa8] sm:$0xf0]  ;;  %v8545_v27 = vld [vmem:[%s13042_s3 + $0x94] sm:$0xf]  ;;  %v6882_v62 = vld [vmem:[%s13042_s3 + $0x150] sm:$0xf] }
  0xed   : > { %v1899_v63 = vpop.f32.mrf.mxu2  ;;  %v8570_v46 = vld [vmem:[%s13042_s3 + $0x154] sm:$0xf0]  ;;  %v8560_v12 = vld [vmem:[%s13042_s3 + $0x104] sm:$0xf0] }
  0xee   : > { %2602 = vmatpush.bf16.msra.mxu3 %v6755_v43  ;;  %2616 = vmatpush.bf16.msra.mxu1 %v6819_v37  ;;  %v1900_v19 = vadd.f32 %v1899_v63, %v1886_v9  ;;  %v6767_v43 = vor.u32 %v8539_v31, %v6764_v35  ;;  %v8531_v9 = vld [vmem:[%s13042_s3 + $0x24] sm:$0xf]  ;;  %v6716_v35 = vld [vmem:[%s13042_s3 + $0x8] sm:$0xf0] }
  0xf0   : > { %8974 = vtanh.f32 %v1900_v19  ;;  %v8529_v19 = vld [vmem:[%s13042_s3 + $0x14] sm:$0xf] }
  0xf1   : > { %v6727_v31 = vor.u32 %v8529_v19, %v6724_v22  ;;  %v6892_v19 = vld [vmem:[%s13042_s3 + $0x168] sm:$0xf0]  ;;  %v8569_v22 = vld [vmem:[%s13042_s3 + $0x154] sm:$0xf] }
  0xf2   : > { %2603 = vmatpush.bf16.msra.mxu3 %v6747_v49  ;;  %2617 = vmatpush.bf16.msra.mxu1 %v6811_v60  ;;  %v815_v49 = vperm.slane %v10493_v51, 1  ;;  %v6812_v60 = vld [vmem:[%s13042_s3 + $0xc8] sm:$0xf0]  ;;  %v1915_v63 = vpop.f32.mrf.mxu3 }
  0xf3   : > { %v6815_v4 = vor.u32 %v8551_v59, %v6812_v60 }
  0xf4   : > { %v1914_v0 = vadd.f32 %v1913_v34, %v815_v49  ;;  %v1916_v10 = vadd.f32 %v1915_v63, %v815_v49  ;;  %v8527_v34 = vld [vmem:[%s13042_s3 + $0x4] sm:$0xf]  ;;  %v6883_v49 = vor.u32 %v8570_v46, %v6882_v62 }
  0xf5   : > { %v1901_v23 = vpop.f32.mrf.mxu2 }
  0xf6   : > { %2604 = vmatpush.bf16.msra.mxu3 %v6739_v2  ;;  %2618 = vmatpush.bf16.msra.mxu1 %v6803_v7  ;;  %v8975_v40 = vpop.eup %8974  ;;  %v8533_v2 = vld [vmem:[%s13042_s3 + $0x34] sm:$0xf] }
  0xf7   : > { %v6743_v7 = vor.u32 %v8533_v2, %v6740_v3 }
  0xf8   : > { %6711 = vmatmul.msk.bf16.vlgmr.msrb.gmra.mxu2 %vm1802_vm0, %v9666_v50  ;;  %v1902_v50 = vadd.f32 %v1901_v23, %v1888_v20  ;;  %v6799_v23 = vor.u32 %v8547_v15, %v6796_v16  ;;  %v6900_v15 = vld [vmem:[%s13042_s3 + $0x178] sm:$0xf0] }
  0xfa   : > { %2605 = vmatpush.bf16.msra.mxu3 %v6731_v61  ;;  %2619 = vmatpush.bf16.msra.mxu1 %v6795_v18  ;;  %8976 = vtanh.f32 %v1902_v50  ;;  %v6735_v18 = vor.u32 %v8531_v9, %v6732_v11  ;;  %v6899_v50 = vor.u32 %v8574_v25, %v6898_v24  ;;  %v6842_v11 = vld [vmem:[%s13042_s3 + $0x100] sm:$0xf]  ;;  %v8567_v25 = vld [vmem:[%s13042_s3 + $0x144] sm:$0xf] }
  0xfb   : > { %v6843_v13 = vor.u32 %v8560_v12, %v6842_v11  ;;  %v8582_v11 = vld [vmem:[%s13042_s3 + $0x1b4] sm:$0xf0] }
  0xfc   : > { %2628 = vmatpush.bf16.msra.mxu2 %v6899_v50 }
  0xfd   : > { %v1927_v41 = vpop.f32.mrf.mxu2 }
  0xfe   : > { %2606 = vmatpush.bf16.msra.mxu3 %v6723_v21  ;;  %2620 = vmatpush.bf16.msra.mxu1 %v6787_v29  ;;  %v1928_v6 = vadd.f32 %v1927_v41, %v1914_v0  ;;  %v6890_v29 = vld [vmem:[%s13042_s3 + $0x160] sm:$0xf]  ;;  %v6866_v0 = vld [vmem:[%s13042_s3 + $0x130] sm:$0xf] }
  0xff   : > { %v6891_v38 = vor.u32 %v8572_v32, %v6890_v29 }
 0x100   : > { %v8977_v45 = vpop.eup %8976 }
 0x101   : > { %v10676_v37 = vpack.c.bf16 %v8977_v45, %v8975_v40  ;;  %v1941_v5 = vpop.f32.mrf.mxu0  ;;  %v6780_v40 = vld [vmem:[%s13042_s3 + $0x88] sm:$0xf0]  ;;  %2629 = vmatpush.bf16.msra.mxu2 %v6891_v38  ;;  %v8563_v38 = vld [vmem:[%s13042_s3 + $0x124] sm:$0xf] }
 0x102   : > { %2607 = vmatpush.bf16.msra.mxu3 %v6715_v30  ;;  %2621 = vmatpush.bf16.msra.mxu1 %v6779_v36  ;;  %v1942_v17 = vadd.f32 %v1941_v5, %v1928_v6  ;;  %v6791_v36 = vor.u32 %v8545_v27, %v6788_v28  ;;  %v6850_v6 = vld [vmem:[%s13042_s3 + $0x110] sm:$0xf]  ;;  %v816_v28 = vperm.slane %v10493_v51, 2 }
 0x104   : > { %v1955_v61 = vpop.f32.mrf.mxu1 }
 0x105   : > { %2608 = vmatmul.bf16.vlgmr.msra.gmra.mxu3 %v10676_v37  ;;  %v1929_v42 = vpop.f32.mrf.mxu2  ;;  %v1956_v30 = vadd.f32 %v1955_v61, %v1942_v17  ;;  %2630 = vmatpush.bf16.msra.mxu2 %v6883_v49  ;;  %v8561_v49 = vld [vmem:[%s13042_s3 + $0x114] sm:$0xf] }
 0x106   : > { %2656 = vmatpush.bf16.msrb.mxu3 %v6775_v8  ;;  %2670 = vmatpush.bf16.msrb.mxu1 %v6839_v54  ;;  %v1930_v20 = vadd.f32 %v1929_v42, %v1916_v10  ;;  %v8543_v54 = vld [vmem:[%s13042_s3 + $0x84] sm:$0xf] }
 0x107   : > { %v6783_v45 = vor.u32 %v8543_v54, %v6780_v40  ;;  %v6954_v54 = vld [vmem:[%s13042_s3 + $0x1e0] sm:$0xf] }
 0x108   : > { %v1969_v21 = vpop.f32.mrf.mxu3 }
 0x109   : > { %v1943_v26 = vpop.f32.mrf.mxu0  ;;  %v1970_v41 = vadd.f32 %v1969_v21, %v1956_v30 }
 0x10a   : > { %2657 = vmatpush.bf16.msrb.mxu3 %v6767_v43  ;;  %2671 = vmatpush.bf16.msrb.mxu1 %v6831_v48  ;;  %v1944_v33 = vadd.f32 %v1943_v26, %v1930_v20  ;;  %v6719_v43 = vor.u32 %v8527_v34, %v6716_v35  ;;  %v6876_v26 = vld [vmem:[%s13042_s3 + $0x148] sm:$0xf0]  ;;  %v8590_v34 = vld [vmem:[%s13042_s3 + $0x1f4] sm:$0xf0] }
 0x10b   : > { %v6879_v27 = vor.u32 %v8567_v25, %v6876_v26  ;;  %v6906_v26 = vld [vmem:[%s13042_s3 + $0x180] sm:$0xf] }
 0x10c   : > { %v1957_v39 = vpop.f32.mrf.mxu1 }
 0x10d   : > { %v1983_v8 = vpop.f32.mrf.mxu2  ;;  %v1958_v44 = vadd.f32 %v1957_v39, %v1944_v33  ;;  %v6962_v33 = vld [vmem:[%s13042_s3 + $0x1f0] sm:$0xf]  ;;  %v6860_v39 = vld [vmem:[%s13042_s3 + $0x128] sm:$0xf0] }
 0x10e   : > { %2658 = vmatpush.bf16.msrb.mxu3 %v6759_v52  ;;  %2672 = vmatpush.bf16.msrb.mxu1 %v6823_v58  ;;  %v1984_v52 = vadd.f32 %v1983_v8, %v1970_v41  ;;  %v6875_v58 = vor.u32 %v8568_v57, %v6874_v56  ;;  %v8565_v8 = vld [vmem:[%s13042_s3 + $0x134] sm:$0xf]  ;;  %v6946_v56 = vld [vmem:[%s13042_s3 + $0x1d0] sm:$0xf]  ;;  %v8586_v57 = vld [vmem:[%s13042_s3 + $0x1d4] sm:$0xf0] }
 0x110   : > { %v1971_v47 = vpop.f32.mrf.mxu3  ;;  %2631 = vmatpush.bf16.msra.mxu2 %v6875_v58  ;;  %v6947_v58 = vor.u32 %v8586_v57, %v6946_v56  ;;  %v6924_v57 = vld [vmem:[%s13042_s3 + $0x1a8] sm:$0xf0] }
 0x111   : > { %v1997_v48 = vpop.f32.mrf.mxu0  ;;  %v1972_v53 = vadd.f32 %v1971_v47, %v1958_v44  ;;  %v6863_v44 = vor.u32 %v8563_v38, %v6860_v39  ;;  %v8585_v39 = vld [vmem:[%s13042_s3 + $0x1d4] sm:$0xf] }
 0x112   : > { %2659 = vmatpush.bf16.msrb.mxu3 %v6751_v1  ;;  %2673 = vmatpush.bf16.msrb.mxu1 %v6815_v4  ;;  %v1998_v59 = vadd.f32 %v1997_v48, %v1984_v52  ;;  %v8566_v1 = vld [vmem:[%s13042_s3 + $0x134] sm:$0xf0]  ;;  %v8564_v4 = vld [vmem:[%s13042_s3 + $0x124] sm:$0xf0]  ;;  %v6852_v52 = vld [vmem:[%s13042_s3 + $0x118] sm:$0xf0] }
 0x113   : > { %v6867_v3 = vor.u32 %v8566_v1, %v6866_v0  ;;  %v8559_v0 = vld [vmem:[%s13042_s3 + $0x104] sm:$0xf]  ;;  %v6844_v1 = vld [vmem:[%s13042_s3 + $0x108] sm:$0xf0] }
 0x114   : > { %8978 = vtanh.f32 %v1998_v59 }
 0x115   : > { %v1985_v55 = vpop.f32.mrf.mxu2  ;;  %2632 = vmatpush.bf16.msra.mxu2 %v6867_v3  ;;  %v6847_v3 = vor.u32 %v8559_v0, %v6844_v1  ;;  %v6916_v0 = vld [vmem:[%s13042_s3 + $0x198] sm:$0xf0] }
 0x116   : > { %2660 = vmatpush.bf16.msrb.mxu3 %v6743_v7  ;;  %2674 = vmatpush.bf16.msrb.mxu1 %v6807_v14  ;;  %v1986_v60 = vadd.f32 %v1985_v55, %v1972_v53  ;;  %v8562_v7 = vld [vmem:[%s13042_s3 + $0x114] sm:$0xf0]  ;;  %v8573_v14 = vld [vmem:[%s13042_s3 + $0x174] sm:$0xf]  ;;  %v6855_v55 = vor.u32 %v8561_v49, %v6852_v52  ;;  %v6932_v52 = vld [vmem:[%s13042_s3 + $0x1b8] sm:$0xf0] }
 0x117   : > { %v6851_v10 = vor.u32 %v8562_v7, %v6850_v6  ;;  %v6903_v16 = vor.u32 %v8573_v14, %v6900_v15  ;;  %v8581_v49 = vld [vmem:[%s13042_s3 + $0x1b4] sm:$0xf] }
 0x119   : > { %v1999_v63 = vpop.f32.mrf.mxu0 }
 0x11a   : > { %2661 = vmatpush.bf16.msrb.mxu3 %v6735_v18  ;;  %2675 = vmatpush.bf16.msrb.mxu1 %v6799_v23  ;;  %v2000_v2 = vadd.f32 %v1999_v63, %v1986_v60  ;;  %v8979_v42 = vpop.eup %8978  ;;  %v8571_v18 = vld [vmem:[%s13042_s3 + $0x164] sm:$0xf]  ;;  %v6884_v23 = vld [vmem:[%s13042_s3 + $0x158] sm:$0xf0] }
 0x11b   : > { %v6895_v20 = vor.u32 %v8571_v18, %v6892_v19  ;;  %v6887_v24 = vor.u32 %v8569_v22, %v6884_v23  ;;  %v8580_v18 = vld [vmem:[%s13042_s3 + $0x1a4] sm:$0xf0]  ;;  %v6914_v23 = vld [vmem:[%s13042_s3 + $0x190] sm:$0xf] }
 0x11c   : > { %8980 = vtanh.f32 %v2000_v2 }
 0x11e   : > { %2662 = vmatpush.bf16.msrb.mxu3 %v6727_v31  ;;  %2676 = vmatpush.bf16.msrb.mxu1 %v6791_v36  ;;  %v6868_v31 = vld [vmem:[%s13042_s3 + $0x138] sm:$0xf0]  ;;  %v6963_v36 = vor.u32 %v8590_v34, %v6962_v33  ;;  %v8587_v33 = vld [vmem:[%s13042_s3 + $0x1e4] sm:$0xf]  ;;  %v6956_v34 = vld [vmem:[%s13042_s3 + $0x1e8] sm:$0xf0] }
 0x11f   : > { %v6871_v32 = vor.u32 %v8565_v8, %v6868_v31  ;;  %v6959_v38 = vor.u32 %v8587_v33, %v6956_v34 }
 0x120   : > { %2642 = vmatpush.bf16.msra.mxu0 %v6963_v36 }
 0x122   : > { %2663 = vmatpush.bf16.msrb.mxu3 %v6719_v43  ;;  %2677 = vmatpush.bf16.msrb.mxu1 %v6783_v45  ;;  %v8981_v9 = vpop.eup %8980  ;;  %v2011_v17 = vpop.f32.mrf.mxu1  ;;  %v8588_v45 = vld [vmem:[%s13042_s3 + $0x1e4] sm:$0xf0] }
 0x123   : > { %v2207_v61 = vpack.c.bf16 %v8981_v9, %v8979_v42  ;;  %v2012_v30 = vadd.f32 %v2011_v17, %v816_v28  ;;  %v6955_v46 = vor.u32 %v8588_v45, %v6954_v54  ;;  %v6922_v17 = vld [vmem:[%s13042_s3 + $0x1a0] sm:$0xf]  ;;  %v6948_v54 = vld [vmem:[%s13042_s3 + $0x1d8] sm:$0xf0] }
 0x125   : > { %2664 = vmatmul.bf16.vlgmr.msrb.gmra.mxu3 %v10676_v37  ;;  %v6858_v37 = vld [vmem:[%s13042_s3 + $0x120] sm:$0xf]  ;;  %2622 = vmatmul.bf16.vlgmr.msra.gmra.mxu1 %v2207_v61  ;;  %v2039_v21 = vpop.f32.mrf.mxu0 }
 0x126   : > { %v6859_v5 = vor.u32 %v8564_v4, %v6858_v37  ;;  %2643 = vmatpush.bf16.msra.mxu0 %v6955_v46  ;;  %v6938_v37 = vld [vmem:[%s13042_s3 + $0x1c0] sm:$0xf]  ;;  %v8584_v4 = vld [vmem:[%s13042_s3 + $0x1c4] sm:$0xf0] }
 0x127   : > { %v6939_v6 = vor.u32 %v8584_v4, %v6938_v37 }
 0x128   : > { %2633 = vmatpush.bf16.msra.mxu2 %v6859_v5 }
 0x12a   : > { %v2025_v50 = vpop.f32.mrf.mxu3  ;;  %v2013_v29 = vpop.f32.mrf.mxu1  ;;  %2644 = vmatpush.bf16.msra.mxu0 %v6947_v58  ;;  %v8577_v58 = vld [vmem:[%s13042_s3 + $0x194] sm:$0xf] }
 0x12b   : > { %v2026_v40 = vadd.f32 %v2025_v50, %v2012_v30  ;;  %v2053_v41 = vpop.f32.mrf.mxu2  ;;  %v2014_v62 = vadd.f32 %v2013_v29, %v816_v28  ;;  %v8576_v50 = vld [vmem:[%s13042_s3 + $0x184] sm:$0xf0]  ;;  %v8589_v29 = vld [vmem:[%s13042_s3 + $0x1f4] sm:$0xf]  ;;  %v6964_v30 = vld [vmem:[%s13042_s3 + $0x1f8] sm:$0xf0]  ;;  %v6919_v37 = vor.u32 %v8577_v58, %v6916_v0 }
 0x12c   : > { %2634 = vmatpush.bf16.msra.mxu2 %v6851_v10  ;;  %v6907_v28 = vor.u32 %v8576_v50, %v6906_v26  ;;  %v6967_v31 = vor.u32 %v8589_v29, %v6964_v30  ;;  %v8595_v26 = vld [vmem:[%s13043_s5 + $0x20] sm:$0xff]  ;;  %v8594_v50 = vld [vmem:[%s13043_s5 + $0x18] sm:$0xff]  ;;  %v8605_v29 = vld [vmem:[%s13043_s5 + $0x70] sm:$0xff] }
 0x12d   : > { %v2041_v35 = vpop.f32.mrf.mxu0  ;;  %v2040_v48 = vadd.f32 %v2039_v21, %v2026_v40  ;;  %v6951_v40 = vor.u32 %v8585_v39, %v6948_v54  ;;  %v8592_v30 = vld [vmem:[%s13043_s5 + $0x8] sm:$0xff]  ;;  %v2274_v39 = vld [vmem:[%s13044_s4] sm:$0x3] }
 0x12e   : > { %2645 = vmatpush.bf16.msra.mxu0 %v6939_v6  ;;  %v8600_v54 = vld [vmem:[%s13043_s5 + $0x48] sm:$0xff] }
 0x12f   : > { %v2054_v59 = vadd.f32 %v2053_v41, %v2040_v48  ;;  %v8583_v41 = vld [vmem:[%s13042_s3 + $0x1c4] sm:$0xf] }
 0x130   : > { %2635 = vmatpush.bf16.msra.mxu2 %v6843_v13 }
 0x132   : > { %v2027_v43 = vpop.f32.mrf.mxu3 }
 0x133   : > { %v2028_v53 = vadd.f32 %v2027_v43, %v2014_v62  ;;  %v2055_v5 = vpop.f32.mrf.mxu2  ;;  %v6940_v43 = vld [vmem:[%s13042_s3 + $0x1c8] sm:$0xf0] }
 0x134   : > { %2684 = vmatpush.bf16.msrb.mxu2 %v6903_v16  ;;  %v6943_v46 = vor.u32 %v8583_v41, %v6940_v43 }
 0x135   : > { %2678 = vmatmul.bf16.vlgmr.msrb.gmra.mxu1 %v2207_v61  ;;  %v2095_v60 = vpop.f32.mrf.mxu0  ;;  %v2042_v2 = vadd.f32 %v2041_v35, %v2028_v53  ;;  %v6930_v61 = vld [vmem:[%s13042_s3 + $0x1b0] sm:$0xf] }
 0x136   : > { %v6931_v12 = vor.u32 %v8582_v11, %v6930_v61 }
 0x137   : > { %v2056_v10 = vadd.f32 %v2055_v5, %v2042_v2  ;;  %v8575_v5 = vld [vmem:[%s13042_s3 + $0x184] sm:$0xf] }
 0x138   : > { %2685 = vmatpush.bf16.msrb.mxu2 %v6895_v20  ;;  %2646 = vmatpush.bf16.msra.mxu0 %v6931_v12  ;;  %v6923_v20 = vor.u32 %v8580_v18, %v6922_v17 }
 0x13c   : > { %2686 = vmatpush.bf16.msrb.mxu2 %v6887_v24  ;;  %2647 = vmatpush.bf16.msra.mxu0 %v6923_v20  ;;  %v8578_v24 = vld [vmem:[%s13042_s3 + $0x194] sm:$0xf0] }
 0x13d   : > { %v2097_v19 = vpop.f32.mrf.mxu0  ;;  %v6915_v25 = vor.u32 %v8578_v24, %v6914_v23  ;;  %v8598_v23 = vld [vmem:[%s13043_s5 + $0x38] sm:$0xff]  ;;  %v8597_v24 = vld [vmem:[%s13043_s5 + $0x30] sm:$0xff] }
 0x13e   : > { %2850 = vmatpush.bf16.msra.mxu3 %v8598_v23  ;;  %v8607_v23 = vld [vmem:[%s12999_s7] sm:$0xff] }
 0x140   : > { %2687 = vmatpush.bf16.msrb.mxu2 %v6879_v27  ;;  %2648 = vmatpush.bf16.msra.mxu0 %v6915_v25  ;;  %v8596_v25 = vld [vmem:[%s13043_s5 + $0x28] sm:$0xff] }
 0x142   : > { %v2067_v47 = vpop.f32.mrf.mxu1  ;;  %2851 = vmatpush.bf16.msra.mxu3 %v8597_v24  ;;  %v8622_v24 = vld [vmem:[%s13001_s9 + $0x38] sm:$0xff] }
 0x143   : > { %v2068_v42 = vadd.f32 %v2067_v47, %v2054_v59 }
 0x144   : > { %2688 = vmatpush.bf16.msrb.mxu2 %v6871_v32  ;;  %2649 = vmatpush.bf16.msra.mxu0 %v6907_v28  ;;  %v8593_v28 = vld [vmem:[%s13043_s5 + $0x10] sm:$0xff] }
 0x146   : > { %2852 = vmatpush.bf16.msra.mxu3 %v8596_v25  ;;  %v8621_v25 = vld [vmem:[%s13001_s9 + $0x30] sm:$0xff] }
 0x148   : > { %2689 = vmatpush.bf16.msrb.mxu2 %v6863_v44  ;;  %2698 = vmatpush.bf16.msrb.mxu0 %v6967_v31  ;;  %v817_v44 = vperm.slane %v10493_v51, 3  ;;  %v8579_v51 = vld [vmem:[%s13042_s3 + $0x1a4] sm:$0xf] }
 0x149   : > { %v2123_v35 = vpop.f32.mrf.mxu0  ;;  %v8591_v31 = vld [vmem:[%s13043_s5] sm:$0xff] }
 0x14a   : > { %v2081_v63 = vpop.f32.mrf.mxu3  ;;  %v2069_v9 = vpop.f32.mrf.mxu1  ;;  %2853 = vmatpush.bf16.msra.mxu3 %v8595_v26 }
 0x14b   : > { %v2082_v7 = vadd.f32 %v2081_v63, %v2068_v42  ;;  %v2070_v13 = vadd.f32 %v2069_v9, %v2056_v10  ;;  %v2109_v22 = vpop.f32.mrf.mxu2  ;;  %v6927_v63 = vor.u32 %v8579_v51, %v6924_v57  ;;  %v6908_v42 = vld [vmem:[%s13042_s3 + $0x188] sm:$0xf0] }
 0x14c   : > { %2690 = vmatpush.bf16.msrb.mxu2 %v6855_v55  ;;  %2699 = vmatpush.bf16.msrb.mxu0 %v6959_v38  ;;  %v2110_v53 = vadd.f32 %v2109_v22, %v817_v44  ;;  %v6935_v55 = vor.u32 %v8581_v49, %v6932_v52  ;;  %v6911_v10 = vor.u32 %v8575_v5, %v6908_v42  ;;  %v8601_v38 = vld [vmem:[%s13043_s5 + $0x50] sm:$0xff]  ;;  %v8614_v52 = vld [vmem:[%s12999_s7 + $0x38] sm:$0xff] }
 0x14d   : > { %v2096_v14 = vadd.f32 %v2095_v60, %v2082_v7 }
 0x14e   : > { %v2124_v59 = vadd.f32 %v2123_v35, %v2110_v53  ;;  %2854 = vmatpush.bf16.msra.mxu3 %v8594_v50  ;;  %v8602_v35 = vld [vmem:[%s13043_s5 + $0x58] sm:$0xff]  ;;  %v8620_v50 = vld [vmem:[%s13001_s9 + $0x28] sm:$0xff] }
 0x14f   : > { %8982 = vtanh.f32 %v2096_v14 }
 0x150   : > { %2691 = vmatpush.bf16.msrb.mxu2 %v6847_v3  ;;  %2700 = vmatpush.bf16.msrb.mxu0 %v6951_v40  ;;  %v2276_v40 = vperm.slane %v2274_v39, 0 }
 0x151   : > { %v2125_v47 = vpop.f32.mrf.mxu0 }
 0x152   : > { %v2083_v15 = vpop.f32.mrf.mxu3  ;;  %2855 = vmatpush.bf16.msra.mxu3 %v8593_v28 }
 0x153   : > { %v2084_v16 = vadd.f32 %v2083_v15, %v2070_v13  ;;  %v2111_v36 = vpop.f32.mrf.mxu2 }
 0x154   : > { %2701 = vmatpush.bf16.msrb.mxu0 %v6943_v46  ;;  %v2112_v56 = vadd.f32 %v2111_v36, %v817_v44  ;;  %v8599_v44 = vld [vmem:[%s13043_s5 + $0x40] sm:$0xff] }
 0x155   : > { %v2098_v21 = vadd.f32 %v2097_v19, %v2084_v16  ;;  %v8983_v27 = vpop.eup %8982 }
 0x156   : > { %v2126_v4 = vadd.f32 %v2125_v47, %v2112_v56  ;;  %2856 = vmatpush.bf16.msra.mxu3 %v8592_v30 }
 0x157   : > { %8984 = vtanh.f32 %v2098_v21 }
 0x158   : > { %2702 = vmatpush.bf16.msrb.mxu0 %v6935_v55 }
 0x15a   : > { %2857 = vmatpush.bf16.msra.mxu3 %v8591_v31 }
 0x15c   : > { %2703 = vmatpush.bf16.msrb.mxu0 %v6927_v63  ;;  %v2277_v63 = vperm.slane %v2274_v39, 1  ;;  %v8618_v39 = vld [vmem:[%s13001_s9 + $0x18] sm:$0xff] }
 0x15d   : > { %v8985_v8 = vpop.eup %8984 }
 0x15e   : > { %v2208_v32 = vpack.c.bf16 %v8985_v8, %v8983_v27  ;;  %v8606_v27 = vld [vmem:[%s13043_s5 + $0x78] sm:$0xff]  ;;  %v8604_v8 = vld [vmem:[%s13043_s5 + $0x68] sm:$0xff] }
 0x15f   : > { %2864 = vmatpush.bf16.msra.mxu1 %v8606_v27  ;;  %v8971_v27 = vld [vmem:[%s12998_s6] ss:$0 sm:$0xff] }
 0x160   : > { %2636 = vmatmul.bf16.vlgmr.msra.gmra.mxu2 %v2208_v32  ;;  %2704 = vmatpush.bf16.msrb.mxu0 %v6919_v37 }
 0x161   : > { %2949 = vmatpush.bf16.msra.mxu2 %v8614_v52  ;;  %v8635_v52 = vld [vmem:[%s13003_s11 + $0x64] sm:$0xf] }
 0x162   : > { %v2137_v45 = vpop.f32.mrf.mxu1 }
 0x163   : > { %v2138_v1 = vadd.f32 %v2137_v45, %v2124_v59  ;;  %2865 = vmatpush.bf16.msra.mxu1 %v8605_v29 }
 0x164   : > { %2705 = vmatpush.bf16.msrb.mxu0 %v6911_v10 }
 0x167   : > { %2866 = vmatpush.bf16.msra.mxu1 %v8604_v8 }
 0x168   : > { %v2179_v3 = vpop.f32.mrf.mxu0 }
 0x16a   : > { %v2151_v48 = vpop.f32.mrf.mxu3  ;;  %v2139_v2 = vpop.f32.mrf.mxu1 }
 0x16b   : > { %v2165_v62 = vpop.f32.mrf.mxu2  ;;  %v2152_v6 = vadd.f32 %v2151_v48, %v2138_v1  ;;  %v2140_v9 = vadd.f32 %v2139_v2, %v2126_v4 }
 0x16d   : > { %v2166_v11 = vadd.f32 %v2165_v62, %v2152_v6 }
 0x16f   : > { %v2180_v14 = vadd.f32 %v2179_v3, %v2166_v11 }
 0x170   : > { %2692 = vmatmul.bf16.vlgmr.msrb.gmra.mxu2 %v2208_v32  ;;  %v2181_v15 = vpop.f32.mrf.mxu0  ;;  %v8603_v32 = vld [vmem:[%s13043_s5 + $0x60] sm:$0xff] }
 0x171   : > { %2867 = vmatpush.bf16.msra.mxu1 %v8603_v32 }
 0x172   : > { %v2153_v7 = vpop.f32.mrf.mxu3 }
 0x173   : > { %v2167_v60 = vpop.f32.mrf.mxu2  ;;  %v2154_v61 = vadd.f32 %v2153_v7, %v2140_v9 }
 0x175   : > { %v2168_v13 = vadd.f32 %v2167_v60, %v2154_v61  ;;  %2868 = vmatpush.bf16.msra.mxu1 %v8602_v35 }
 0x177   : > { %v2182_v17 = vadd.f32 %v2181_v15, %v2168_v13 }
 0x179   : > { %2869 = vmatpush.bf16.msra.mxu1 %v8601_v38  ;;  %v8619_v38 = vld [vmem:[%s13001_s9 + $0x20] sm:$0xff] }
 0x17b   : > { %v2193_v12 = vpop.f32.mrf.mxu2 }
 0x17c   : > { %v2194_v16 = vadd.f32 %v2193_v12, %v2180_v14 }
 0x17d   : > { %2870 = vmatpush.bf16.msra.mxu1 %v8600_v54  ;;  %v8617_v54 = vld [vmem:[%s13001_s9 + $0x10] sm:$0xff] }
 0x17e   : > { %8986 = vtanh.f32 %v2194_v16 }
 0x181   : > { %2871 = vmatpush.bf16.msra.mxu1 %v8599_v44  ;;  %v8638_v44 = vld [vmem:[%s13003_s11 + $0x74] sm:$0xf0] }
 0x183   : > { %v2195_v18 = vpop.f32.mrf.mxu2 }
 0x184   : > { %v2196_v19 = vadd.f32 %v2195_v18, %v2182_v17  ;;  %v8987_v20 = vpop.eup %8986  ;;  %v8613_v17 = vld [vmem:[%s12999_s7 + $0x30] sm:$0xff]  ;;  %v8612_v18 = vld [vmem:[%s12999_s7 + $0x28] sm:$0xff] }
 0x185   : > { %2950 = vmatpush.bf16.msra.mxu2 %v8613_v17 }
 0x186   : > { %8988 = vtanh.f32 %v2196_v19  ;;  %v8611_v19 = vld [vmem:[%s12999_s7 + $0x20] sm:$0xff] }
 0x188   : > { %v2609_v33 = vpop.f32.mrf.mxu3 }
 0x189   : > { %v2610_v45 = vadd.f32 %v2609_v33, %v2276_v40  ;;  %2951 = vmatpush.bf16.msra.mxu2 %v8612_v18  ;;  %v7114_v18 = vld [vmem:[%s13003_s11 + $0x20] sm:$0xf] }
 0x18c   : > { %v8989_v21 = vpop.eup %8988 }
 0x18d   : > { %v2209_v22 = vpack.c.bf16 %v8989_v21, %v8987_v20  ;;  %2952 = vmatpush.bf16.msra.mxu2 %v8611_v19  ;;  %v8610_v20 = vld [vmem:[%s12999_s7 + $0x18] sm:$0xff]  ;;  %v8609_v21 = vld [vmem:[%s12999_s7 + $0x10] sm:$0xff]  ;;  %v8628_v19 = vld [vmem:[%s13003_s11 + $0x24] sm:$0xf0] }
 0x18f   : > { %2650 = vmatmul.bf16.vlgmr.msra.gmra.mxu0 %v2209_v22 }
 0x190   : > { %v2611_v41 = vpop.f32.mrf.mxu3  ;;  %3036 = vmatpush.bf16.msra.mxu0 %v8622_v24  ;;  %v7106_v24 = vld [vmem:[%s13003_s11 + $0x10] sm:$0xf] }
 0x191   : > { %v2612_v48 = vadd.f32 %v2611_v41, %v2276_v40  ;;  %2953 = vmatpush.bf16.msra.mxu2 %v8610_v20  ;;  %v8616_v40 = vld [vmem:[%s13001_s9 + $0x8] sm:$0xff]  ;;  %v8615_v41 = vld [vmem:[%s13001_s9] sm:$0xff] }
 0x192   : > { %v8627_v20 = vld [vmem:[%s13003_s11 + $0x24] sm:$0xf] }
 0x194   : > { %3037 = vmatpush.bf16.msra.mxu0 %v8621_v25  ;;  %v8626_v25 = vld [vmem:[%s13003_s11 + $0x14] sm:$0xf0] }
 0x195   : > { %2954 = vmatpush.bf16.msra.mxu2 %v8609_v21  ;;  %v7115_v21 = vor.u32 %v8628_v19, %v7114_v18  ;;  %v7338_v19 = vld [vmem:[%s13005_s13 + $0x160] sm:$0xf] }
 0x198   : > { %3038 = vmatpush.bf16.msra.mxu0 %v8620_v50  ;;  %v7107_v50 = vor.u32 %v8626_v25, %v7106_v24 }
 0x19c   : > { %3039 = vmatpush.bf16.msra.mxu0 %v8619_v38 }
 0x19f   : > { %2706 = vmatmul.bf16.vlgmr.msrb.gmra.mxu0 %v2209_v22  ;;  %v8608_v22 = vld [vmem:[%s12999_s7 + $0x8] sm:$0xff] }
 0x1a0   : > { %2955 = vmatpush.bf16.msra.mxu2 %v8608_v22  ;;  %3040 = vmatpush.bf16.msra.mxu0 %v8618_v39  ;;  %v7116_v22 = vld [vmem:[%s13003_s11 + $0x28] sm:$0xf0]  ;;  %v7404_v39 = vld [vmem:[%s13005_s13 + $0x1f0] sm:$0xf0] }
 0x1a2   : > { %v2623_v34 = vpop.f32.mrf.mxu1 }
 0x1a3   : > { %v2624_v47 = vadd.f32 %v2623_v34, %v2610_v45  ;;  %v8637_v45 = vld [vmem:[%s13003_s11 + $0x74] sm:$0xf] }
 0x1a4   : > { %2956 = vmatpush.bf16.msra.mxu2 %v8607_v23  ;;  %3041 = vmatpush.bf16.msra.mxu0 %v8617_v54  ;;  %v7119_v23 = vor.u32 %v8627_v20, %v7116_v22  ;;  %v7386_v54 = vld [vmem:[%s13005_s13 + $0x1c0] sm:$0xf]  ;;  %v8685_v20 = vld [vmem:[%s13005_s13 + $0x16c] sm:$0xf0]  ;;  %v7340_v22 = vld [vmem:[%s13005_s13 + $0x170] sm:$0xf0] }
 0x1a8   : > { %v2665_v55 = vpop.f32.mrf.mxu3  ;;  %3042 = vmatpush.bf16.msra.mxu0 %v8616_v40  ;;  %v8697_v40 = vld [vmem:[%s13005_s13 + $0x1cc] sm:$0xf0] }
 0x1a9   : > { %v2666_v1 = vadd.f32 %v2665_v55, %v2277_v63 }
 0x1aa   : > { %v2625_v43 = vpop.f32.mrf.mxu1 }
 0x1ab   : > { %v2626_v53 = vadd.f32 %v2625_v43, %v2612_v48  ;;  %v7154_v43 = vld [vmem:[%s13003_s11 + $0x70] sm:$0xf]  ;;  %v8636_v48 = vld [vmem:[%s13003_s11 + $0x64] sm:$0xf0] }
 0x1ac   : > { %3043 = vmatpush.bf16.msra.mxu0 %v8615_v41 }
 0x1b0   : > { %v2667_v2 = vpop.f32.mrf.mxu3 }
 0x1b1   : > { %v2668_v6 = vadd.f32 %v2667_v2, %v2277_v63 }
 0x1b2   : > { %v2679_v57 = vpop.f32.mrf.mxu1 }
 0x1b3   : > { %v2680_v4 = vadd.f32 %v2679_v57, %v2666_v1  ;;  %v8634_v57 = vld [vmem:[%s13003_s11 + $0x54] sm:$0xf0] }
 0x1ba   : > { %v2681_v5 = vpop.f32.mrf.mxu1 }
 0x1bb   : > { %v2682_v10 = vadd.f32 %v2681_v5, %v2668_v6  ;;  %v7130_v6 = vld [vmem:[%s13003_s11 + $0x40] sm:$0xf] }
 0x1e3   : > { %v2637_v36 = vpop.f32.mrf.mxu2 }
 0x1e4   : > { %v2638_v49 = vadd.f32 %v2637_v36, %v2624_v47  ;;  %v7146_v47 = vld [vmem:[%s13003_s11 + $0x60] sm:$0xf] }
 0x1e5   : > { %v7147_v55 = vor.u32 %v8636_v48, %v7146_v47  ;;  %v8667_v47 = vld [vmem:[%s13005_s13 + $0xe4] sm:$0xf]  ;;  %v7276_v48 = vld [vmem:[%s13005_s13 + $0xf0] sm:$0xf0] }
 0x1eb   : > { %v2639_v62 = vpop.f32.mrf.mxu2 }
 0x1ec   : > { %v2640_v51 = vadd.f32 %v2639_v62, %v2626_v53  ;;  %v7155_v62 = vor.u32 %v8638_v44, %v7154_v43  ;;  %v7148_v53 = vld [vmem:[%s13003_s11 + $0x68] sm:$0xf0]  ;;  %v8695_v43 = vld [vmem:[%s13005_s13 + $0x1c4] sm:$0xf]  ;;  %v7388_v44 = vld [vmem:[%s13005_s13 + $0x1d0] sm:$0xf0] }
 0x1ee   : > { %3155 = vmatpush.bf16.msrb.mxu3 %v7155_v62  ;;  %v7387_v62 = vor.u32 %v8697_v40, %v7386_v54 }
 0x1f2   : > { %3156 = vmatpush.bf16.msrb.mxu3 %v7147_v55  ;;  %v7370_v55 = vld [vmem:[%s13005_s13 + $0x1a0] sm:$0xf] }
 0x1f3   : > { %v2693_v60 = vpop.f32.mrf.mxu2 }
 0x1f4   : > { %v2694_v7 = vadd.f32 %v2693_v60, %v2680_v4 }
 0x1fb   : > { %v2695_v9 = vpop.f32.mrf.mxu2 }
 0x1fc   : > { %v2696_v11 = vadd.f32 %v2695_v9, %v2682_v10  ;;  %v8631_v9 = vld [vmem:[%s13003_s11 + $0x44] sm:$0xf] }
 0x20c   : > { %v2651_v46 = vpop.f32.mrf.mxu0 }
 0x20d   : > { %v2652_v56 = vadd.f32 %v2651_v46, %v2638_v49  ;;  %v7156_v46 = vld [vmem:[%s13003_s11 + $0x78] sm:$0xf0] }
 0x20e   : > { %v7159_v49 = vor.u32 %v8637_v45, %v7156_v46  ;;  %v7274_v45 = vld [vmem:[%s13005_s13 + $0xe0] sm:$0xf]  ;;  %v8669_v46 = vld [vmem:[%s13005_s13 + $0xec] sm:$0xf0] }
 0x20f   : > { %8990 = vtanh.f32 %v2652_v56  ;;  %v7151_v56 = vor.u32 %v8635_v52, %v7148_v53  ;;  %v7275_v52 = vor.u32 %v8669_v46, %v7274_v45  ;;  %v7279_v53 = vor.u32 %v8667_v47, %v7276_v48  ;;  %v7306_v45 = vld [vmem:[%s13005_s13 + $0x120] sm:$0xf]  ;;  %v8675_v46 = vld [vmem:[%s13005_s13 + $0x124] sm:$0xf]  ;;  %v7308_v48 = vld [vmem:[%s13005_s13 + $0x130] sm:$0xf0] }
 0x210   : > { %3169 = vmatpush.bf16.msrb.mxu1 %v7159_v49  ;;  %v7391_v49 = vor.u32 %v8695_v43, %v7388_v44 }
 0x211   : > { %3583 = vmatpush.bf16.msrb.mxu2 %v7275_v52  ;;  %v7194_v52 = vld [vmem:[%s13005_s13 + $0x40] sm:$0xf] }
 0x214   : > { %v2653_v58 = vpop.f32.mrf.mxu0  ;;  %3170 = vmatpush.bf16.msrb.mxu1 %v7151_v56  ;;  %v8693_v56 = vld [vmem:[%s13005_s13 + $0x1ac] sm:$0xf0] }
 0x215   : > { %v2654_v59 = vadd.f32 %v2653_v58, %v2640_v51  ;;  %v8991_v0 = vpop.eup %8990  ;;  %v7138_v51 = vld [vmem:[%s13003_s11 + $0x50] sm:$0xf]  ;;  %v8633_v58 = vld [vmem:[%s13003_s11 + $0x54] sm:$0xf] }
 0x216   : > { %v7139_v60 = vor.u32 %v8634_v57, %v7138_v51  ;;  %v8691_v51 = vld [vmem:[%s13005_s13 + $0x1a4] sm:$0xf]  ;;  %v7372_v57 = vld [vmem:[%s13005_s13 + $0x1b0] sm:$0xf0] }
 0x217   : > { %8992 = vtanh.f32 %v2654_v59  ;;  %v7140_v59 = vld [vmem:[%s13003_s11 + $0x58] sm:$0xf0] }
 0x218   : > { %v7143_v63 = vor.u32 %v8633_v58, %v7140_v59  ;;  %3157 = vmatpush.bf16.msrb.mxu3 %v7139_v60  ;;  %v7258_v58 = vld [vmem:[%s13005_s13 + $0xc0] sm:$0xf]  ;;  %v8665_v59 = vld [vmem:[%s13005_s13 + $0xcc] sm:$0xf0] }
 0x219   : > { %v7259_v60 = vor.u32 %v8665_v59, %v7258_v58  ;;  %v7290_v58 = vld [vmem:[%s13005_s13 + $0x100] sm:$0xf]  ;;  %v8673_v59 = vld [vmem:[%s13005_s13 + $0x10c] sm:$0xf0] }
 0x21a   : > { %3171 = vmatpush.bf16.msrb.mxu1 %v7143_v63  ;;  %v8663_v63 = vld [vmem:[%s13005_s13 + $0xc4] sm:$0xf] }
 0x21b   : > { %3584 = vmatpush.bf16.msrb.mxu2 %v7259_v60  ;;  %v8671_v60 = vld [vmem:[%s13005_s13 + $0x104] sm:$0xf] }
 0x21c   : > { %v2707_v3 = vpop.f32.mrf.mxu0 }
 0x21d   : > { %v8993_v37 = vpop.eup %8992  ;;  %v2708_v61 = vadd.f32 %v2707_v3, %v2694_v7  ;;  %v8632_v7 = vld [vmem:[%s13003_s11 + $0x44] sm:$0xf0] }
 0x21e   : > { %v2716_v42 = vpack.c.bf16 %v8993_v37, %v8991_v0  ;;  %v8972_v0 = vld [vmem:[%s13000_s8] ss:$0 sm:$0xff]  ;;  %v7131_v10 = vor.u32 %v8632_v7, %v7130_v6  ;;  %v8659_v6 = vld [vmem:[%s13005_s13 + $0xa4] sm:$0xf] }
 0x21f   : > { %8994 = vtanh.f32 %v2708_v61  ;;  %v7132_v61 = vld [vmem:[%s13003_s11 + $0x48] sm:$0xf0]  ;;  %v8687_v7 = vld [vmem:[%s13005_s13 + $0x184] sm:$0xf] }
 0x220   : > { %2858 = vmatmul.bf16.vlgmr.msra.gmra.mxu3 %v2716_v42 }
 0x221   : > { %3158 = vmatpush.bf16.msrb.mxu3 %v7131_v10  ;;  %v7244_v10 = vld [vmem:[%s13005_s13 + $0xb0] sm:$0xf0] }
 0x224   : > { %v2709_v12 = vpop.f32.mrf.mxu0 }
 0x225   : > { %v2710_v13 = vadd.f32 %v2709_v12, %v2696_v11  ;;  %v8995_v14 = vpop.eup %8994  ;;  %v7135_v11 = vor.u32 %v8631_v9, %v7132_v61  ;;  %v7122_v12 = vld [vmem:[%s13003_s11 + $0x30] sm:$0xf]  ;;  %v7356_v9 = vld [vmem:[%s13005_s13 + $0x190] sm:$0xf0] }
 0x226   : > { %v7359_v18 = vor.u32 %v8687_v7, %v7356_v9  ;;  %v8645_v7 = vld [vmem:[%s13005_s13 + $0x2c] sm:$0xf0]  ;;  %v8643_v9 = vld [vmem:[%s13005_s13 + $0x24] sm:$0xf] }
 0x227   : > { %8996 = vtanh.f32 %v2710_v13  ;;  %3172 = vmatpush.bf16.msrb.mxu1 %v7135_v11  ;;  %v8630_v13 = vld [vmem:[%s13003_s11 + $0x34] sm:$0xf0]  ;;  %v7247_v11 = vor.u32 %v8659_v6, %v7244_v10  ;;  %v7178_v6 = vld [vmem:[%s13005_s13 + $0x20] sm:$0xf] }
 0x228   : > { %v7179_v10 = vor.u32 %v8645_v7, %v7178_v6 }
 0x22d   : > { %v8997_v15 = vpop.eup %8996 }
 0x22e   : > { %v2717_v16 = vpack.c.bf16 %v8997_v15, %v8995_v14  ;;  %v8629_v14 = vld [vmem:[%s13003_s11 + $0x34] sm:$0xf]  ;;  %v7123_v15 = vor.u32 %v8630_v13, %v7122_v12  ;;  %v7226_v12 = vld [vmem:[%s13005_s13 + $0x80] sm:$0xf] }
 0x230   : > { %2872 = vmatmul.bf16.vlgmr.msra.gmra.mxu1 %v2717_v16  ;;  %v7124_v16 = vld [vmem:[%s13003_s11 + $0x38] sm:$0xf0]  ;;  %3159 = vmatpush.bf16.msrb.mxu3 %v7123_v15  ;;  %v8655_v15 = vld [vmem:[%s13005_s13 + $0x84] sm:$0xf] }
 0x231   : > { %v7127_v17 = vor.u32 %v8629_v14, %v7124_v16  ;;  %v8657_v14 = vld [vmem:[%s13005_s13 + $0x8c] sm:$0xf0]  ;;  %v7228_v16 = vld [vmem:[%s13005_s13 + $0x90] sm:$0xf0] }
 0x232   : > { %v7227_v24 = vor.u32 %v8657_v14, %v7226_v12  ;;  %v7231_v25 = vor.u32 %v8655_v15, %v7228_v16  ;;  %v7394_v12 = vld [vmem:[%s13005_s13 + $0x1c8] sm:$0xf]  ;;  %v8696_v14 = vld [vmem:[%s13005_s13 + $0x1cc] sm:$0xf]  ;;  %v7396_v16 = vld [vmem:[%s13005_s13 + $0x1d8] sm:$0xf0] }
 0x233   : > { %3173 = vmatpush.bf16.msrb.mxu1 %v7127_v17 }
 0x234   : > { %3160 = vmatpush.bf16.msrb.mxu3 %v7115_v21  ;;  %v8683_v21 = vld [vmem:[%s13005_s13 + $0x164] sm:$0xf] }
 0x237   : > { %3174 = vmatpush.bf16.msrb.mxu1 %v7119_v23  ;;  %v8973_v23 = vld [vmem:[%s13002_s10] ss:$0 sm:$0xff] }
 0x238   : > { %3161 = vmatpush.bf16.msrb.mxu3 %v7107_v50  ;;  %v7339_v50 = vor.u32 %v8685_v20, %v7338_v19  ;;  %v7399_v19 = vor.u32 %v8696_v14, %v7396_v16  ;;  %v8678_v14 = vld [vmem:[%s13005_s13 + $0x134] sm:$0xf0] }
 0x2a3   : > { %v2859_v26 = vpop.f32.mrf.mxu3 }
 0x2a4   : > { %v2860_v29 = vadd.f32 %v8971_v27, %v2859_v26  ;;  %v8625_v26 = vld [vmem:[%s13003_s11 + $0x14] sm:$0xf] }
 0x2ab   : > { %v2861_v30 = vpop.f32.mrf.mxu3 }
 0x2ac   : > { %v2862_v31 = vadd.f32 %v8971_v27, %v2861_v30  ;;  %v7108_v27 = vld [vmem:[%s13003_s11 + $0x18] sm:$0xf0] }
 0x2ad   : > { %v2873_v28 = vpop.f32.mrf.mxu1  ;;  %v7111_v30 = vor.u32 %v8625_v26, %v7108_v27  ;;  %v7210_v26 = vld [vmem:[%s13005_s13 + $0x60] sm:$0xf]  ;;  %v8653_v27 = vld [vmem:[%s13005_s13 + $0x6c] sm:$0xf0] }
 0x2ae   : > { %v2874_v8 = vadd.f32 %v2873_v28, %v2860_v29  ;;  %v7098_v28 = vld [vmem:[%s13003_s11] sm:$0xf]  ;;  %v8624_v29 = vld [vmem:[%s13003_s11 + $0x4] sm:$0xf0] }
 0x2af   : > { %3175 = vmatpush.bf16.msrb.mxu1 %v7111_v30  ;;  %v7343_v30 = vor.u32 %v8683_v21, %v7340_v22  ;;  %v8639_v21 = vld [vmem:[%s13005_s13 + $0x4] sm:$0xf]  ;;  %v7164_v22 = vld [vmem:[%s13005_s13 + $0x10] sm:$0xf0] }
 0x2b0   : > { %8998 = vtanh.f32 %v2874_v8  ;;  %v8623_v8 = vld [vmem:[%s13003_s11 + $0x4] sm:$0xf] }
 0x2b5   : > { %v2875_v32 = vpop.f32.mrf.mxu1 }
 0x2b6   : > { %v2876_v33 = vadd.f32 %v2875_v32, %v2862_v31  ;;  %v8999_v34 = vpop.eup %8998  ;;  %v7100_v31 = vld [vmem:[%s13003_s11 + $0x8] sm:$0xf0]  ;;  %v7099_v32 = vor.u32 %v8624_v29, %v7098_v28  ;;  %v8651_v28 = vld [vmem:[%s13005_s13 + $0x64] sm:$0xf]  ;;  %v7212_v29 = vld [vmem:[%s13005_s13 + $0x70] sm:$0xf0] }
 0x2b8   : > { %9000 = vtanh.f32 %v2876_v33  ;;  %v7103_v33 = vor.u32 %v8623_v8, %v7100_v31  ;;  %3162 = vmatpush.bf16.msrb.mxu3 %v7099_v32  ;;  %v7322_v8 = vld [vmem:[%s13005_s13 + $0x140] sm:$0xf]  ;;  %v8681_v31 = vld [vmem:[%s13005_s13 + $0x14c] sm:$0xf0]  ;;  %v8679_v32 = vld [vmem:[%s13005_s13 + $0x144] sm:$0xf] }
 0x2ba   : > { %3176 = vmatpush.bf16.msrb.mxu1 %v7103_v33  ;;  %v7324_v33 = vld [vmem:[%s13005_s13 + $0x150] sm:$0xf0] }
 0x2bb   : > { %v7327_v54 = vor.u32 %v8679_v32, %v7324_v33  ;;  %v7380_v32 = vld [vmem:[%s13005_s13 + $0x1b8] sm:$0xf0] }
 0x2bc   : > { %3611 = vmatpush.bf16.msra.mxu3 %v7279_v53  ;;  %v8649_v53 = vld [vmem:[%s13005_s13 + $0x4c] sm:$0xf0] }
 0x2be   : > { %v9001_v35 = vpop.eup %9000 }
 0x2bf   : > { %v2880_v36 = vpack.c.bf16 %v9001_v35, %v8999_v34  ;;  %v7402_v34 = vld [vmem:[%s13005_s13 + $0x1e0] sm:$0xf]  ;;  %v8701_v35 = vld [vmem:[%s13005_s13 + $0x1ec] sm:$0xf0] }
 0x2c0   : > { %v7403_v38 = vor.u32 %v8701_v35, %v7402_v34  ;;  %v7211_v35 = vor.u32 %v8653_v27, %v7210_v26  ;;  %v8668_v26 = vld [vmem:[%s13005_s13 + $0xec] sm:$0xf] }
 0x2c1   : > { %2957 = vmatmul.bf16.vlgmr.msra.gmra.mxu2 %v2880_v36  ;;  %v8699_v36 = vld [vmem:[%s13005_s13 + $0x1e4] sm:$0xf] }
 0x2c2   : > { %v7407_v41 = vor.u32 %v8699_v36, %v7404_v39  ;;  %3597 = vmatpush.bf16.msrb.mxu0 %v7403_v38  ;;  %v7215_v36 = vor.u32 %v8651_v28, %v7212_v29  ;;  %v7323_v38 = vor.u32 %v8681_v31, %v7322_v8  ;;  %v7378_v29 = vld [vmem:[%s13005_s13 + $0x1a8] sm:$0xf]  ;;  %v8692_v8 = vld [vmem:[%s13005_s13 + $0x1ac] sm:$0xf] }
 0x2c3   : > { %v7383_v33 = vor.u32 %v8692_v8, %v7380_v32  ;;  %v8646_v8 = vld [vmem:[%s13005_s13 + $0x34] sm:$0xf0] }
 0x2c4   : > { %3625 = vmatpush.bf16.msra.mxu1 %v7407_v41 }
 0x2c6   : > { %3598 = vmatpush.bf16.msrb.mxu0 %v7387_v62  ;;  %v8677_v62 = vld [vmem:[%s13005_s13 + $0x12c] sm:$0xf0] }
 0x2c7   : > { %v7307_v47 = vor.u32 %v8677_v62, %v7306_v45  ;;  %v7364_v45 = vld [vmem:[%s13005_s13 + $0x198] sm:$0xf0] }
 0x2c8   : > { %3626 = vmatpush.bf16.msra.mxu1 %v7391_v49  ;;  %v7311_v49 = vor.u32 %v8675_v46, %v7308_v48  ;;  %v7250_v46 = vld [vmem:[%s13005_s13 + $0xa8] sm:$0xf]  ;;  %v8660_v48 = vld [vmem:[%s13005_s13 + $0xac] sm:$0xf] }
 0x344   : > { %v2958_v1 = vpop.f32.mrf.mxu2 }
 0x345   : > { %v2959_v2 = vadd.f32 %v8972_v0, %v2958_v1  ;;  %v7371_v1 = vor.u32 %v8693_v56, %v7370_v55  ;;  %v8647_v55 = vld [vmem:[%s13005_s13 + $0x44] sm:$0xf]  ;;  %v7195_v56 = vor.u32 %v8649_v53, %v7194_v52  ;;  %v7252_v52 = vld [vmem:[%s13005_s13 + $0xb8] sm:$0xf0] }
 0x346   : > { %v7255_v53 = vor.u32 %v8660_v48, %v7252_v52 }
 0x347   : > { %9002 = vtanh.f32 %v2959_v2  ;;  %3599 = vmatpush.bf16.msrb.mxu0 %v7371_v1  ;;  %v7410_v1 = vld [vmem:[%s13005_s13 + $0x1e8] sm:$0xf] }
 0x34c   : > { %v2960_v3 = vpop.f32.mrf.mxu2 }
 0x34d   : > { %v9003_v37 = vpop.eup %9002  ;;  %v2961_v4 = vadd.f32 %v8972_v0, %v2960_v3  ;;  %v7260_v0 = vld [vmem:[%s13005_s13 + $0xd0] sm:$0xf0]  ;;  %v7354_v3 = vld [vmem:[%s13005_s13 + $0x180] sm:$0xf] }
 0x34e   : > { %2965 = vst [vmem:[%s591_s0] sm:$0xff] %v9003_v37  ;;  %v7263_v2 = vor.u32 %v8663_v63, %v7260_v0  ;;  %v7291_v63 = vor.u32 %v8673_v59, %v7290_v58  ;;  %v7292_v0 = vld [vmem:[%s13005_s13 + $0x110] sm:$0xf0]  ;;  %v7348_v58 = vld [vmem:[%s13005_s13 + $0x178] sm:$0xf0]  ;;  %v7234_v59 = vld [vmem:[%s13005_s13 + $0x88] sm:$0xf] }
 0x34f   : > { %9004 = vtanh.f32 %v2961_v4  ;;  %v7375_v4 = vor.u32 %v8691_v51, %v7372_v57  ;;  %v7196_v51 = vld [vmem:[%s13005_s13 + $0x50] sm:$0xf0] }
 0x350   : > { %3612 = vmatpush.bf16.msra.mxu3 %v7263_v2  ;;  %v7199_v57 = vor.u32 %v8647_v55, %v7196_v51  ;;  %v8702_v2 = vld [vmem:[%s13005_s13 + $0x1f4] sm:$0xf0]  ;;  %v7346_v55 = vld [vmem:[%s13005_s13 + $0x168] sm:$0xf]  ;;  %v8684_v51 = vld [vmem:[%s13005_s13 + $0x16c] sm:$0xf] }
 0x351   : > { %3627 = vmatpush.bf16.msra.mxu1 %v7375_v4  ;;  %v8700_v4 = vld [vmem:[%s13005_s13 + $0x1ec] sm:$0xf] }
 0x354   : > { %3613 = vmatpush.bf16.msra.mxu3 %v7247_v11 }
 0x355   : > { %v9005_v5 = vpop.eup %9004  ;;  %3628 = vmatpush.bf16.msra.mxu1 %v7359_v18  ;;  %v8641_v18 = vld [vmem:[%s13005_s13 + $0xc] sm:$0xf0] }
 0x356   : > { %2966 = vst [vmem:[%s591_s0 + $0x8] sm:$0xff] %v9005_v5  ;;  %v2967_v42 = vpack.c.bf16 %v9005_v5, %v9003_v37  ;;  %v8689_v37 = vld [vmem:[%s13005_s13 + $0x18c] sm:$0xf0]  ;;  %v7242_v5 = vld [vmem:[%s13005_s13 + $0xa0] sm:$0xf]  ;;  %s13045_s0 = sld [smem:[#allocation8_spill]] }
 0x357   : > { %v7355_v13 = vor.u32 %v8689_v37, %v7354_v3  ;;  %v7295_v3 = vor.u32 %v8671_v60, %v7292_v0  ;;  %v7411_v37 = vor.u32 %v8702_v2, %v7410_v1  ;;  %v8658_v60 = vld [vmem:[%s13005_s13 + $0x94] sm:$0xf0]  ;;  %v8656_v1 = vld [vmem:[%s13005_s13 + $0x8c] sm:$0xf]  ;;  %v7236_v2 = vld [vmem:[%s13005_s13 + $0x98] sm:$0xf0] }
 0x358   : > { %3044 = vmatmul.bf16.vlgmr.msra.gmra.mxu0 %v2967_v42  ;;  %v8661_v42 = vld [vmem:[%s13005_s13 + $0xac] sm:$0xf0]  ;;  %3614 = vmatpush.bf16.msra.mxu3 %v7231_v25  ;;  %v8670_v25 = vld [vmem:[%s13005_s13 + $0xf4] sm:$0xf0]  ;;  %v7235_v0 = vor.u32 %v8658_v60, %v7234_v59  ;;  %v8286_v60 = vld [vmem:[%s13007_s15 + $0x6c8] sm:$0xf] }
 0x359   : > { %v7243_v61 = vor.u32 %v8661_v42, %v7242_v5  ;;  %3600 = vmatpush.bf16.msrb.mxu0 %v7355_v13  ;;  %3629 = vmatpush.bf16.msra.mxu1 %v7343_v30  ;;  %v7412_v5 = vld [vmem:[%s13005_s13 + $0x1f8] sm:$0xf0]  ;;  %v8698_v13 = vld [vmem:[%s13005_s13 + $0x1d4] sm:$0xf0] }
 0x35a   : > { %v7415_v42 = vor.u32 %v8700_v4, %v7412_v5  ;;  %v7395_v15 = vor.u32 %v8698_v13, %v7394_v12  ;;  %v8694_v30 = vld [vmem:[%s13005_s13 + $0x1b4] sm:$0xf0]  ;;  %v8680_v5 = vld [vmem:[%s13005_s13 + $0x14c] sm:$0xf]  ;;  %v7220_v12 = vld [vmem:[%s13005_s13 + $0x78] sm:$0xf0] }
 0x35b   : > { %3585 = vmatpush.bf16.msrb.mxu2 %v7243_v61  ;;  %v7180_v61 = vld [vmem:[%s13005_s13 + $0x30] sm:$0xf0]  ;;  %v7379_v31 = vor.u32 %v8694_v30, %v7378_v29  ;;  %v8682_v4 = vld [vmem:[%s13005_s13 + $0x154] sm:$0xf0]  ;;  %v7314_v13 = vld [vmem:[%s13005_s13 + $0x128] sm:$0xf] }
 0x35c   : > { %3615 = vmatpush.bf16.msra.mxu3 %v7215_v36  ;;  %v7183_v11 = vor.u32 %v8643_v9, %v7180_v61  ;;  %v8664_v36 = vld [vmem:[%s13005_s13 + $0xcc] sm:$0xf]  ;;  %v7218_v9 = vld [vmem:[%s13005_s13 + $0x68] sm:$0xf]  ;;  %v7315_v16 = vor.u32 %v8678_v14, %v7314_v13  ;;  %v7300_v29 = vld [vmem:[%s13005_s13 + $0x118] sm:$0xf0] }
 0x35d   : > { %3601 = vmatpush.bf16.msrb.mxu0 %v7339_v50  ;;  %3630 = vmatpush.bf16.msra.mxu1 %v7327_v54  ;;  %v7284_v50 = vld [vmem:[%s13005_s13 + $0xf8] sm:$0xf0]  ;;  %v8652_v61 = vld [vmem:[%s13005_s13 + $0x6c] sm:$0xf]  ;;  %v7186_v30 = vld [vmem:[%s13005_s13 + $0x28] sm:$0xf] }
 0x35e   : > { %v7287_v28 = vor.u32 %v8668_v26, %v7284_v50  ;;  %v8674_v26 = vld [vmem:[%s13005_s13 + $0x114] sm:$0xf0]  ;;  %v8672_v50 = vld [vmem:[%s13005_s13 + $0x10c] sm:$0xf]  ;;  %s8929_s24 = smul.u32 112, %s13045_s0 }
 0x35f   : > { %3586 = vmatpush.bf16.msrb.mxu2 %v7227_v24  ;;  %v7167_v24 = vor.u32 %v8639_v21, %v7164_v22  ;;  %v8650_v21 = vld [vmem:[%s13005_s13 + $0x54] sm:$0xf0]  ;;  %v8648_v22 = vld [vmem:[%s13005_s13 + $0x4c] sm:$0xf]  ;;  %v7303_v32 = vor.u32 %v8672_v50, %v7300_v29  ;;  %v8741_v50 = vld [vmem:[%s13007_s15 + $0x130] sm:$0xf0] }
 0x360   : > { %3616 = vmatpush.bf16.msra.mxu3 %v7199_v57  ;;  %v8783_v29 = vld [vmem:[%s13007_s15 + $0x280] sm:$0xf0]  ;;  %s5825_s2 = scalar_lea.hbm %s13046_s25, %s8929_s24 }
 0x361   : > { %3602 = vmatpush.bf16.msrb.mxu0 %v7323_v38  ;;  %3631 = vmatpush.bf16.msra.mxu1 %v7311_v49  ;;  %s5828_s22 = sshll.u32 %s5825_s2, 4  ;;  %s5829_s22 = int_to_ptr.hbm [resolvable:$true] %s5828_s22 }
 0x362   : > { %s9104_s27 = sshra.s32 %s5829_s22, 4  ;;  %s9105_s27 = int_to_ptr.hbm [resolvable:$true] %s9104_s27 }
 0x363   : > { %3587 = vmatpush.bf16.msrb.mxu2 %v7211_v35  ;;  %v8666_v35 = vld [vmem:[%s13005_s13 + $0xd4] sm:$0xf0]  ;;  %s9106_s19 = scalar_lea.hbm %s9105_s27, 112  ;;  %p9111_p0 = scmp.lt.s32.totalorder %s9105_s27, %s13046_s25 }
 0x364   : > { %3617 = vmatpush.bf16.msra.mxu3 %v7183_v11  ;;  %p9107_p11 = scmp.ne.s32.totalorder %s9105_s27, %s9106_s19  ;;  %p9112_p1 = scmp.lt.s32.totalorder %s9110_s30, %s9106_s19 }
 0x365   : > { %3603 = vmatpush.bf16.msrb.mxu0 %v7307_v47  ;;  %3632 = vmatpush.bf16.msra.mxu1 %v7295_v3  ;;  %v8662_v47 = vld [vmem:[%s13005_s13 + $0xb4] sm:$0xf0]  ;;  %v7330_v3 = vld [vmem:[%s13005_s13 + $0x148] sm:$0xf] }
 0x366   : > { %v7251_v49 = vor.u32 %v8662_v47, %v7250_v46  ;;  %v7331_v6 = vor.u32 %v8682_v4, %v7330_v3  ;;  %v8755_v4 = vld [vmem:[%s13007_s15 + $0x1a0] sm:$0xf0]  ;;  %p9108_p12 = pnand %p9107_p11, %p9289_p5  ;;  %p9113_p2 = por %p9112_p1, %p9111_p0 }
 0x367   : > { %3588 = vmatpush.bf16.msrb.mxu2 %v7195_v56  ;;  %v8686_v56 = vld [vmem:[%s13005_s13 + $0x174] sm:$0xf0] }
 0x368   : > { %3618 = vmatpush.bf16.msra.mxu3 %v7167_v24  ;;  %v7347_v57 = vor.u32 %v8686_v56, %v7346_v55  ;;  %v7838_v55 = vld [vmem:[%s13007_s15 + $0x348] sm:$0xf]  ;;  %v8811_v56 = vld [vmem:[%s13007_s15 + $0x360] sm:$0xf0]  ;;  %p9109_p13 = pneg %p9108_p12 }
 0x369   : > { %3604 = vmatpush.bf16.msrb.mxu0 %v7291_v63  ;;  %v7351_v63 = vor.u32 %v8684_v51, %v7348_v58  ;;  %v7839_v59 = vor.u32 %v8811_v56, %v7838_v55  ;;  %v8230_v55 = vld [vmem:[%s13007_s15 + $0x658] sm:$0xf]  ;;  %v8909_v56 = vld [vmem:[%s13007_s15 + $0x670] sm:$0xf0] }
 0x36a   : > { %p9114_p3 = pnand %p9113_p2, %p9109_p13 }
 0x36b   : > { %3589 = vmatpush.bf16.msrb.mxu2 %v7179_v10  ;;  %v8654_v10 = vld [vmem:[%s13005_s13 + $0x74] sm:$0xf0] }
 0x36c   : > { %v7219_v11 = vor.u32 %v8654_v10, %v7218_v9 }
 0x36d   : > { %3653 = vmatpush.bf16.msra.mxu0 %v7411_v37  ;;  %v7239_v37 = vor.u32 %v8656_v1, %v7236_v2  ;;  %v7810_v1 = vld [vmem:[%s13007_s15 + $0x310] sm:$0xf]  ;;  %v8804_v2 = vld [vmem:[%s13007_s15 + $0x328] sm:$0xf0] }
 0x36e   : > { %v7811_v9 = vor.u32 %v8804_v2, %v7810_v1  ;;  %v7978_v1 = vld [vmem:[%s13007_s15 + $0x460] sm:$0xf]  ;;  %v8846_v2 = vld [vmem:[%s13007_s15 + $0x478] sm:$0xf0] }
 0x371   : > { %3654 = vmatpush.bf16.msra.mxu0 %v7395_v15  ;;  %v7223_v15 = vor.u32 %v8652_v61, %v7220_v12  ;;  %v8797_v12 = vld [vmem:[%s13007_s15 + $0x2f0] sm:$0xf0] }
 0x375   : > { %3655 = vmatpush.bf16.msra.mxu0 %v7379_v31  ;;  %v3069_v31 = vld [vmem:[%s13004_s12] sm:$0x3] }
 0x376   : > { %v3071_v47 = vperm.slane %v3069_v31, 0 }
 0x3d5   : > { %v3045_v17 = vpop.f32.mrf.mxu0 }
 0x3d6   : > { %v3046_v34 = vadd.f32 %v8973_v23, %v3045_v17  ;;  %v7162_v17 = vld [vmem:[%s13005_s13] sm:$0xf] }
 0x3d7   : > { %v7163_v20 = vor.u32 %v8641_v18, %v7162_v17  ;;  %v8676_v17 = vld [vmem:[%s13005_s13 + $0x12c] sm:$0xf]  ;;  %v7316_v18 = vld [vmem:[%s13005_s13 + $0x138] sm:$0xf0] }
 0x3d8   : > { %9006 = vtanh.f32 %v3046_v34  ;;  %v7266_v34 = vld [vmem:[%s13005_s13 + $0xc8] sm:$0xf] }
 0x3d9   : > { %3590 = vmatpush.bf16.msrb.mxu2 %v7163_v20  ;;  %v7267_v38 = vor.u32 %v8666_v35, %v7266_v34  ;;  %v7319_v20 = vor.u32 %v8676_v17, %v7316_v18  ;;  %v7188_v34 = vld [vmem:[%s13005_s13 + $0x38] sm:$0xf0]  ;;  %v8748_v18 = vld [vmem:[%s13007_s15 + $0x168] sm:$0xf0] }
 0x3dd   : > { %v3047_v39 = vpop.f32.mrf.mxu0 }
 0x3de   : > { %v3048_v40 = vadd.f32 %v8973_v23, %v3047_v39  ;;  %v9007_v41 = vpop.eup %9006  ;;  %v7282_v23 = vld [vmem:[%s13005_s13 + $0xe8] sm:$0xf]  ;;  %v7268_v39 = vld [vmem:[%s13005_s13 + $0xd8] sm:$0xf0] }
 0x3df   : > { %v7283_v27 = vor.u32 %v8670_v25, %v7282_v23  ;;  %v7271_v54 = vor.u32 %v8664_v36, %v7268_v39  ;;  %v7204_v23 = vld [vmem:[%s13005_s13 + $0x58] sm:$0xf0]  ;;  %v7298_v25 = vld [vmem:[%s13005_s13 + $0x108] sm:$0xf]  ;;  %v7187_v36 = vor.u32 %v8646_v8, %v7186_v30  ;;  %v7530_v8 = vld [vmem:[%s13007_s15 + $0xe0] sm:$0xf] }
 0x3e0   : > { %9008 = vtanh.f32 %v3048_v40  ;;  %v7362_v40 = vld [vmem:[%s13005_s13 + $0x188] sm:$0xf] }
 0x3e1   : > { %3639 = vmatpush.bf16.msra.mxu2 %v7283_v27  ;;  %v7207_v27 = vor.u32 %v8648_v22, %v7204_v23  ;;  %v7754_v22 = vld [vmem:[%s13007_s15 + $0x2a0] sm:$0xf]  ;;  %v8790_v23 = vld [vmem:[%s13007_s15 + $0x2b8] sm:$0xf0] }
 0x3e5   : > { %3640 = vmatpush.bf16.msra.mxu2 %v7267_v38  ;;  %v3072_v38 = vperm.slane %v3069_v31, 1  ;;  %v8734_v31 = vld [vmem:[%s13007_s15 + $0xf8] sm:$0xf0] }
 0x3e6   : > { %v9009_v43 = vpop.eup %9008 }
 0x3e7   : > { %v3052_v44 = vpack.c.bf16 %v9009_v43, %v9007_v41  ;;  %v8690_v41 = vld [vmem:[%s13005_s13 + $0x194] sm:$0xf0]  ;;  %v8688_v43 = vld [vmem:[%s13005_s13 + $0x18c] sm:$0xf] }
 0x3e8   : > { %v7367_v62 = vor.u32 %v8688_v43, %v7364_v45 }
 0x3e9   : > { %3163 = vmatmul.bf16.vlgmr.msrb.gmra.mxu3 %v3052_v44  ;;  %3177 = vmatmul.bf16.vlgmr.msrb.gmra.mxu1 %v3052_v44  ;;  %v7363_v44 = vor.u32 %v8690_v41, %v7362_v40  ;;  %v8642_v40 = vld [vmem:[%s13005_s13 + $0x14] sm:$0xf0]  ;;  %v8640_v41 = vld [vmem:[%s13005_s13 + $0xc] sm:$0xf] }
 0x3ea   : > { %3681 = vmatpush.bf16.msrb.mxu1 %v7415_v42  ;;  %3667 = vmatpush.bf16.msrb.mxu3 %v7287_v28  ;;  %v7332_v42 = vld [vmem:[%s13005_s13 + $0x158] sm:$0xf0]  ;;  %v7299_v28 = vor.u32 %v8674_v26, %v7298_v25  ;;  %v7558_v26 = vld [vmem:[%s13007_s15 + $0x118] sm:$0xf] }
 0x3eb   : > { %3656 = vmatpush.bf16.msra.mxu0 %v7363_v44  ;;  %3641 = vmatpush.bf16.msra.mxu2 %v7251_v49  ;;  %v7335_v7 = vor.u32 %v8680_v5, %v7332_v42  ;;  %v7172_v44 = vld [vmem:[%s13005_s13 + $0x18] sm:$0xf0]  ;;  %v8062_v5 = vld [vmem:[%s13007_s15 + $0x508] sm:$0xf]  ;;  %v8867_v42 = vld [vmem:[%s13007_s15 + $0x520] sm:$0xf0]  ;;  %v7559_v30 = vor.u32 %v8741_v50, %v7558_v26 }
 0x3ec   : > { %v7175_v46 = vor.u32 %v8640_v41, %v7172_v44  ;;  %v8720_v41 = vld [vmem:[%s13007_s15 + $0x88] sm:$0xf0]  ;;  %v7446_v44 = vld [vmem:[%s13007_s15 + $0x38] sm:$0xf] }
 0x3ed   : > { %v8888_v50 = vld [vmem:[%s13007_s15 + $0x5c8] sm:$0xf0] }
 0x3ee   : > { %3682 = vmatpush.bf16.msrb.mxu1 %v7399_v19  ;;  %3668 = vmatpush.bf16.msrb.mxu3 %v7271_v54  ;;  %v7202_v19 = vld [vmem:[%s13005_s13 + $0x48] sm:$0xf] }
 0x3ef   : > { %3657 = vmatpush.bf16.msra.mxu0 %v7347_v57  ;;  %3642 = vmatpush.bf16.msra.mxu2 %v7235_v0  ;;  %v7203_v24 = vor.u32 %v8650_v21, %v7202_v19  ;;  %v7170_v54 = vld [vmem:[%s13005_s13 + $0x8] sm:$0xf]  ;;  %v8034_v19 = vld [vmem:[%s13007_s15 + $0x4d0] sm:$0xf] }
 0x3f0   : > { %v7171_v43 = vor.u32 %v8642_v40, %v7170_v54  ;;  %v7474_v40 = vld [vmem:[%s13007_s15 + $0x70] sm:$0xf] }
 0x3f2   : > { %3683 = vmatpush.bf16.msrb.mxu1 %v7383_v33  ;;  %3669 = vmatpush.bf16.msrb.mxu3 %v7255_v53  ;;  %v8644_v33 = vld [vmem:[%s13005_s13 + $0x2c] sm:$0xf] }
 0x3f3   : > { %3658 = vmatpush.bf16.msra.mxu0 %v7331_v6  ;;  %3643 = vmatpush.bf16.msra.mxu2 %v7219_v11  ;;  %v7191_v39 = vor.u32 %v8644_v33, %v7188_v34  ;;  %v8258_v6 = vld [vmem:[%s13007_s15 + $0x690] sm:$0xf]  ;;  %v7782_v11 = vld [vmem:[%s13007_s15 + $0x2d8] sm:$0xf]  ;;  %v8776_v34 = vld [vmem:[%s13007_s15 + $0x248] sm:$0xf0] }
 0x3f4   : > { %v7783_v21 = vor.u32 %v8797_v12, %v7782_v11  ;;  %v7698_v33 = vld [vmem:[%s13007_s15 + $0x230] sm:$0xf]  ;;  %v7950_v11 = vld [vmem:[%s13007_s15 + $0x428] sm:$0xf]  ;;  %v8839_v12 = vld [vmem:[%s13007_s15 + $0x440] sm:$0xf0] }
 0x3f6   : > { %3684 = vmatpush.bf16.msrb.mxu1 %v7367_v62  ;;  %3670 = vmatpush.bf16.msrb.mxu3 %v7239_v37  ;;  %v7614_v37 = vld [vmem:[%s13007_s15 + $0x188] sm:$0xf] }
 0x3f7   : > { %3659 = vmatpush.bf16.msra.mxu0 %v7315_v16  ;;  %3644 = vmatpush.bf16.msra.mxu2 %v7203_v24  ;;  %v7615_v14 = vor.u32 %v8755_v4, %v7614_v37  ;;  %v8063_v16 = vor.u32 %v8867_v42, %v8062_v5  ;;  %v7979_v37 = vor.u32 %v8846_v2, %v7978_v1  ;;  %v8902_v4 = vld [vmem:[%s13007_s15 + $0x638] sm:$0xf0]  ;;  %v8752_v5 = vld [vmem:[%s13007_s15 + $0x18c] sm:$0xf]  ;;  %v7616_v42 = vld [vmem:[%s13007_s15 + $0x1a4] sm:$0xf0] }
 0x3fa   : > { %3685 = vmatpush.bf16.msrb.mxu1 %v7351_v63  ;;  %3671 = vmatpush.bf16.msrb.mxu3 %v7223_v15  ;;  %v8923_v63 = vld [vmem:[%s13007_s15 + $0x6e0] sm:$0xf0]  ;;  %v7586_v15 = vld [vmem:[%s13007_s15 + $0x150] sm:$0xf] }
 0x3fb   : > { %3660 = vmatpush.bf16.msra.mxu0 %v7299_v28  ;;  %3645 = vmatpush.bf16.msra.mxu2 %v7187_v36  ;;  %v8287_v3 = vor.u32 %v8923_v63, %v8286_v60  ;;  %v7587_v24 = vor.u32 %v8748_v18, %v7586_v15  ;;  %v7726_v28 = vld [vmem:[%s13007_s15 + $0x268] sm:$0xf]  ;;  %v8762_v60 = vld [vmem:[%s13007_s15 + $0x1d8] sm:$0xf0]  ;;  %v8895_v15 = vld [vmem:[%s13007_s15 + $0x600] sm:$0xf0] }
 0x3fc   : > { %v7502_v36 = vld [vmem:[%s13007_s15 + $0xa8] sm:$0xf] }
 0x3fe   : > { %3686 = vmatpush.bf16.msrb.mxu1 %v7335_v7  ;;  %3672 = vmatpush.bf16.msrb.mxu3 %v7207_v27  ;;  %v8916_v7 = vld [vmem:[%s13007_s15 + $0x6a8] sm:$0xf0]  ;;  %v7755_v27 = vor.u32 %v8790_v23, %v7754_v22  ;;  %v7922_v23 = vld [vmem:[%s13007_s15 + $0x3f0] sm:$0xf] }
 0x3ff   : > { %3646 = vmatpush.bf16.msra.mxu2 %v7171_v43  ;;  %v8259_v10 = vor.u32 %v8916_v7, %v8258_v6  ;;  %v7475_v43 = vor.u32 %v8720_v41, %v7474_v40  ;;  %v7619_v7 = vor.u32 %v8752_v5, %v7616_v42  ;;  %v7700_v42 = vld [vmem:[%s13007_s15 + $0x24c] sm:$0xf0] }
 0x402   : > { %3687 = vmatpush.bf16.msrb.mxu1 %v7319_v20  ;;  %3673 = vmatpush.bf16.msrb.mxu3 %v7191_v39  ;;  %v8860_v20 = vld [vmem:[%s13007_s15 + $0x4e8] sm:$0xf0]  ;;  %v7699_v39 = vor.u32 %v8776_v34, %v7698_v33  ;;  %v7894_v33 = vld [vmem:[%s13007_s15 + $0x3b8] sm:$0xf]  ;;  %v8825_v34 = vld [vmem:[%s13007_s15 + $0x3d0] sm:$0xf0] }
 0x403   : > { %v8035_v25 = vor.u32 %v8860_v20, %v8034_v19  ;;  %v8801_v20 = vld [vmem:[%s13007_s15 + $0x314] sm:$0xf] }
 0x406   : > { %3688 = vmatpush.bf16.msrb.mxu1 %v7303_v32  ;;  %3674 = vmatpush.bf16.msrb.mxu3 %v7175_v46  ;;  %v7727_v32 = vor.u32 %v8783_v29, %v7726_v28  ;;  %v7560_v28 = vld [vmem:[%s13007_s15 + $0x134] sm:$0xf0] }
 0x466   : > { %v3178_v35 = vpop.f32.mrf.mxu1 }
 0x467   : > { %v3179_v45 = vadd.f32 %v3178_v35, %v3072_v38  ;;  %v7531_v35 = vor.u32 %v8734_v31, %v7530_v8  ;;  %v8794_v8 = vld [vmem:[%s13007_s15 + $0x2dc] sm:$0xf]  ;;  %v7784_v31 = vld [vmem:[%s13007_s15 + $0x2f4] sm:$0xf0] }
 0x469   : > { %9010 = vtanh.f32 %v3179_v45  ;;  %v8713_v45 = vld [vmem:[%s13007_s15 + $0x50] sm:$0xf0] }
 0x46a   : > { %v7447_v46 = vor.u32 %v8713_v45, %v7446_v44  ;;  %v7756_v44 = vld [vmem:[%s13007_s15 + $0x2bc] sm:$0xf0] }
 0x46c   : > { %v3164_v62 = vpop.f32.mrf.mxu3 }
 0x46d   : > { %v3165_v52 = vadd.f32 %v3164_v62, %v3071_v47  ;;  %v7670_v62 = vld [vmem:[%s13007_s15 + $0x1f8] sm:$0xf] }
 0x46e   : > { %v3180_v48 = vpop.f32.mrf.mxu1 }
 0x46f   : > { %v3181_v49 = vadd.f32 %v3180_v48, %v3072_v38  ;;  %v9011_v57 = vpop.eup %9010  ;;  %v8727_v38 = vld [vmem:[%s13007_s15 + $0xc0] sm:$0xf0]  ;;  %v8006_v48 = vld [vmem:[%s13007_s15 + $0x498] sm:$0xf] }
 0x470   : > { %v7503_v54 = vor.u32 %v8727_v38, %v7502_v36  ;;  %v7895_v36 = vor.u32 %v8825_v34, %v7894_v33  ;;  %v8881_v38 = vld [vmem:[%s13007_s15 + $0x590] sm:$0xf0]  ;;  %v8204_v33 = vld [vmem:[%s13007_s15 + $0x63c] sm:$0xf0] }
 0x471   : > { %9012 = vtanh.f32 %v3181_v49  ;;  %v8853_v49 = vld [vmem:[%s13007_s15 + $0x4b0] sm:$0xf0] }
 0x472   : > { %9014 = vtanh.f32 %v3165_v52 }
 0x474   : > { %v3166_v53 = vpop.f32.mrf.mxu3 }
 0x475   : > { %v3167_v51 = vadd.f32 %v3166_v53, %v3071_v47  ;;  %v8769_v47 = vld [vmem:[%s13007_s15 + $0x210] sm:$0xf0]  ;;  %v8007_v53 = vor.u32 %v8853_v49, %v8006_v48  ;;  %v8874_v49 = vld [vmem:[%s13007_s15 + $0x558] sm:$0xf0] }
 0x476   : > { %v7671_v52 = vor.u32 %v8769_v47, %v7670_v62  ;;  %v7866_v62 = vld [vmem:[%s13007_s15 + $0x380] sm:$0xf] }
 0x477   : > { %v9013_v58 = vpop.eup %9012  ;;  %9016 = vtanh.f32 %v3167_v51  ;;  %v7418_v51 = vld [vmem:[%s13007_s15] sm:$0xf] }
 0x478   : > { %v3188_v0 = vpack.c.bf16 %v9013_v58, %v9011_v57  ;;  %v9015_v61 = vpop.eup %9014  ;;  %v8231_v57 = vor.u32 %v8909_v56, %v8230_v55  ;;  %v8706_v58 = vld [vmem:[%s13007_s15 + $0x18] sm:$0xf0]  ;;  %v8090_v47 = vld [vmem:[%s13007_s15 + $0x540] sm:$0xf] }
 0x479   : > { %v7419_v63 = vor.u32 %v8706_v58, %v7418_v51  ;;  %v8091_v55 = vor.u32 %v8874_v49, %v8090_v47  ;;  %v8780_v51 = vld [vmem:[%s13007_s15 + $0x26c] sm:$0xf] }
 0x47a   : > { %3605 = vmatmul.bf16.vlgmr.msrb.gmra.mxu0 %v3188_v0  ;;  %3633 = vmatmul.bf16.vlgmr.msra.gmra.mxu1 %v3188_v0  ;;  %v8864_v58 = vld [vmem:[%s13007_s15 + $0x50c] sm:$0xf] }
 0x47b   : > { %5145 = vmatpush.bf16.msrb.mxu0 %v7839_v59  ;;  %5173 = vmatpush.bf16.msra.mxu1 %v8287_v3  ;;  %v7642_v59 = vld [vmem:[%s13007_s15 + $0x1c0] sm:$0xf] }
 0x47c   : > { %v8202_v3 = vld [vmem:[%s13007_s15 + $0x620] sm:$0xf] }
 0x47d   : > { %v9017_v13 = vpop.eup %9016  ;;  %v8203_v6 = vor.u32 %v8902_v4, %v8202_v3  ;;  %v8717_v3 = vld [vmem:[%s13007_s15 + $0x74] sm:$0xf] }
 0x47e   : > { %v3187_v17 = vpack.c.bf16 %v9017_v13, %v9015_v61  ;;  %v8174_v13 = vld [vmem:[%s13007_s15 + $0x5e8] sm:$0xf]  ;;  %v8773_v4 = vld [vmem:[%s13007_s15 + $0x234] sm:$0xf] }
 0x47f   : > { %5146 = vmatpush.bf16.msrb.mxu0 %v7811_v9  ;;  %5174 = vmatpush.bf16.msra.mxu1 %v8259_v10  ;;  %v8808_v9 = vld [vmem:[%s13007_s15 + $0x34c] sm:$0xf]  ;;  %v7840_v10 = vld [vmem:[%s13007_s15 + $0x364] sm:$0xf0]  ;;  %v8175_v18 = vor.u32 %v8895_v15, %v8174_v13  ;;  %v8710_v13 = vld [vmem:[%s13007_s15 + $0x3c] sm:$0xf] }
 0x480   : > { %3591 = vmatmul.bf16.vlgmr.msrb.gmra.mxu2 %v3187_v17  ;;  %3619 = vmatmul.bf16.vlgmr.msra.gmra.mxu3 %v3187_v17  ;;  %v7843_v61 = vor.u32 %v8808_v9, %v7840_v10  ;;  %v7703_v9 = vor.u32 %v8773_v4, %v7700_v42  ;;  %v8766_v15 = vld [vmem:[%s13007_s15 + $0x1fc] sm:$0xf] }
 0x481   : > { %5131 = vmatpush.bf16.msrb.mxu2 %v7615_v14  ;;  %5159 = vmatpush.bf16.msra.mxu3 %v8063_v16  ;;  %v7951_v14 = vor.u32 %v8839_v12, %v7950_v11  ;;  %v8745_v16 = vld [vmem:[%s13007_s15 + $0x154] sm:$0xf]  ;;  %v8260_v11 = vld [vmem:[%s13007_s15 + $0x6ac] sm:$0xf0] }
 0x483   : > { %5147 = vmatpush.bf16.msrb.mxu0 %v7783_v21  ;;  %5175 = vmatpush.bf16.msra.mxu1 %v8231_v57  ;;  %v7812_v21 = vld [vmem:[%s13007_s15 + $0x32c] sm:$0xf0]  ;;  %v7728_v57 = vld [vmem:[%s13007_s15 + $0x284] sm:$0xf0] }
 0x484   : > { %v7815_v22 = vor.u32 %v8801_v20, %v7812_v21  ;;  %v8008_v20 = vld [vmem:[%s13007_s15 + $0x4b4] sm:$0xf0]  ;;  %v8906_v21 = vld [vmem:[%s13007_s15 + $0x65c] sm:$0xf] }
 0x485   : > { %5132 = vmatpush.bf16.msrb.mxu2 %v7587_v24  ;;  %5160 = vmatpush.bf16.msra.mxu3 %v8035_v25  ;;  %v8832_v24 = vld [vmem:[%s13007_s15 + $0x408] sm:$0xf0]  ;;  %v8146_v25 = vld [vmem:[%s13007_s15 + $0x5b0] sm:$0xf] }
 0x486   : > { %v7923_v26 = vor.u32 %v8832_v24, %v7922_v23  ;;  %v8147_v29 = vor.u32 %v8888_v50, %v8146_v25  ;;  %v8703_v25 = vld [vmem:[%s13007_s15 + $0x4] sm:$0xf] }
 0x487   : > { %5148 = vmatpush.bf16.msrb.mxu0 %v7755_v27  ;;  %5176 = vmatpush.bf16.msra.mxu1 %v8203_v6  ;;  %v8738_v27 = vld [vmem:[%s13007_s15 + $0x11c] sm:$0xf]  ;;  %v8857_v6 = vld [vmem:[%s13007_s15 + $0x4d4] sm:$0xf]  ;;  %v8759_v50 = vld [vmem:[%s13007_s15 + $0x1c4] sm:$0xf] }
 0x489   : > { %5133 = vmatpush.bf16.msrb.mxu2 %v7559_v30  ;;  %5161 = vmatpush.bf16.msra.mxu3 %v8007_v53  ;;  %v7563_v30 = vor.u32 %v8738_v27, %v7560_v28  ;;  %v7504_v53 = vld [vmem:[%s13007_s15 + $0xc4] sm:$0xf0]  ;;  %v7644_v28 = vld [vmem:[%s13007_s15 + $0x1dc] sm:$0xf0] }
 0x48a   : > { %3661 = vmatmul.bf16.vlgmr.msra.gmra.mxu0 %v3188_v0  ;;  %3689 = vmatmul.bf16.vlgmr.msrb.gmra.mxu1 %v3188_v0  ;;  %v7643_v0 = vor.u32 %v8762_v60, %v7642_v59  ;;  %v7731_v59 = vor.u32 %v8780_v51, %v7728_v57  ;;  %v8064_v60 = vld [vmem:[%s13007_s15 + $0x524] sm:$0xf0]  ;;  %v8822_v51 = vld [vmem:[%s13007_s15 + $0x3bc] sm:$0xf]  ;;  %v7896_v57 = vld [vmem:[%s13007_s15 + $0x3d4] sm:$0xf0] }
 0x48b   : > { %5149 = vmatpush.bf16.msrb.mxu0 %v7727_v32  ;;  %5177 = vmatpush.bf16.msra.mxu1 %v8175_v18  ;;  %v7787_v32 = vor.u32 %v8794_v8, %v7784_v31  ;;  %v8067_v1 = vor.u32 %v8864_v58, %v8064_v60  ;;  %v8850_v18 = vld [vmem:[%s13007_s15 + $0x49c] sm:$0xf]  ;;  %v7647_v8 = vor.u32 %v8759_v50, %v7644_v28  ;;  %v8120_v60 = vld [vmem:[%s13007_s15 + $0x594] sm:$0xf0] }
 0x48c   : > { %v8011_v23 = vor.u32 %v8850_v18, %v8008_v20  ;;  %v8878_v58 = vld [vmem:[%s13007_s15 + $0x57c] sm:$0xf] }
 0x48d   : > { %5134 = vmatpush.bf16.msrb.mxu2 %v7531_v35  ;;  %5162 = vmatpush.bf16.msra.mxu3 %v7979_v37  ;;  %v8118_v35 = vld [vmem:[%s13007_s15 + $0x578] sm:$0xf]  ;;  %v7476_v37 = vld [vmem:[%s13007_s15 + $0x8c] sm:$0xf0] }
 0x48e   : > { %v8119_v40 = vor.u32 %v8881_v38, %v8118_v35  ;;  %v7479_v5 = vor.u32 %v8717_v3, %v7476_v37  ;;  %v8836_v35 = vld [vmem:[%s13007_s15 + $0x42c] sm:$0xf]  ;;  %v7868_v3 = vld [vmem:[%s13007_s15 + $0x39c] sm:$0xf0]  ;;  %v8871_v37 = vld [vmem:[%s13007_s15 + $0x544] sm:$0xf] }
 0x48f   : > { %5150 = vmatpush.bf16.msrb.mxu0 %v7699_v39  ;;  %5178 = vmatpush.bf16.msra.mxu1 %v8147_v29  ;;  %v8731_v39 = vld [vmem:[%s13007_s15 + $0xe4] sm:$0xf]  ;;  %v8892_v38 = vld [vmem:[%s13007_s15 + $0x5ec] sm:$0xf] }
 0x490   : > { %3647 = vmatmul.bf16.vlgmr.msra.gmra.mxu2 %v3187_v17  ;;  %3675 = vmatmul.bf16.vlgmr.msrb.gmra.mxu3 %v3187_v17  ;;  %v7588_v17 = vld [vmem:[%s13007_s15 + $0x16c] sm:$0xf0]  ;;  %v8843_v29 = vld [vmem:[%s13007_s15 + $0x464] sm:$0xf] }
 0x491   : > { %5135 = vmatpush.bf16.msrb.mxu2 %v7503_v54  ;;  %v7591_v19 = vor.u32 %v8745_v16, %v7588_v17  ;;  %5163 = vmatpush.bf16.msra.mxu3 %v7951_v14  ;;  %v7532_v54 = vld [vmem:[%s13007_s15 + $0xfc] sm:$0xf0]  ;;  %v7448_v14 = vld [vmem:[%s13007_s15 + $0x54] sm:$0xf0] }
 0x492   : > { %v7535_v41 = vor.u32 %v8731_v39, %v7532_v54  ;;  %v7451_v16 = vor.u32 %v8710_v13, %v7448_v14  ;;  %v7672_v17 = vld [vmem:[%s13007_s15 + $0x214] sm:$0xf0]  ;;  %v8176_v54 = vld [vmem:[%s13007_s15 + $0x604] sm:$0xf0] }
 0x493   : > { %5151 = vmatpush.bf16.msrb.mxu0 %v7671_v52  ;;  %5179 = vmatpush.bf16.msra.mxu1 %v8119_v40  ;;  %v8724_v52 = vld [vmem:[%s13007_s15 + $0xac] sm:$0xf]  ;;  %v8179_v40 = vor.u32 %v8892_v38, %v8176_v54  ;;  %v8805_v38 = vld [vmem:[%s13007_s15 + $0x330] sm:$0xf0] }
 0x494   : > { %v7507_v56 = vor.u32 %v8724_v52, %v7504_v53 }
 0x495   : > { %5136 = vmatpush.bf16.msrb.mxu2 %v7475_v43  ;;  %5164 = vmatpush.bf16.msra.mxu3 %v7923_v26  ;;  %v8787_v43 = vld [vmem:[%s13007_s15 + $0x2a4] sm:$0xf]  ;;  %v7420_v26 = vld [vmem:[%s13007_s15 + $0x1c] sm:$0xf0] }
 0x496   : > { %v7759_v45 = vor.u32 %v8787_v43, %v7756_v44  ;;  %v7423_v27 = vor.u32 %v8703_v25, %v7420_v26  ;;  %v11887_v44 = vld [vmem:[%s13006_s14] sm:$0xf]  ;;  %v7846_v25 = vld [vmem:[%s13007_s15 + $0x350] sm:$0xf]  ;;  %v8812_v26 = vld [vmem:[%s13007_s15 + $0x368] sm:$0xf0] }
 0x497   : > { %5152 = vmatpush.bf16.msrb.mxu0 %v7643_v0  ;;  %v8288_v0 = vld [vmem:[%s13007_s15 + $0x6e4] sm:$0xf0]  ;;  %5180 = vmatpush.bf16.msra.mxu1 %v8091_v55  ;;  %v3255_v52 = vperm.slane %v11887_v44, 0  ;;  %v3256_v53 = vperm.slane %v11887_v44, 1  ;;  %v3257_v18 = vperm.slane %v11887_v44, 2  ;;  %v3258_v20 = vperm.slane %v11887_v44, 3 }
 0x499   : > { %5137 = vmatpush.bf16.msrb.mxu2 %v7447_v46  ;;  %5165 = vmatpush.bf16.msra.mxu3 %v7895_v36  ;;  %v8818_v46 = vld [vmem:[%s13007_s15 + $0x398] sm:$0xf0]  ;;  %v7952_v36 = vld [vmem:[%s13007_s15 + $0x444] sm:$0xf0] }
 0x49a   : > { %v7867_v48 = vor.u32 %v8818_v46, %v7866_v62  ;;  %v7955_v39 = vor.u32 %v8836_v35, %v7952_v36  ;;  %v7924_v62 = vld [vmem:[%s13007_s15 + $0x40c] sm:$0xf0]  ;;  %v8885_v46 = vld [vmem:[%s13007_s15 + $0x5b4] sm:$0xf]  ;;  %v7818_v36 = vld [vmem:[%s13007_s15 + $0x318] sm:$0xf] }
 0x49b   : > { %5201 = vmatpush.bf16.msra.mxu0 %v7843_v61  ;;  %v8913_v61 = vld [vmem:[%s13007_s15 + $0x694] sm:$0xf]  ;;  %v7819_v44 = vor.u32 %v8805_v38, %v7818_v36  ;;  %v8238_v36 = vld [vmem:[%s13007_s15 + $0x660] sm:$0xf]  ;;  %v8910_v38 = vld [vmem:[%s13007_s15 + $0x678] sm:$0xf0] }
 0x49c   : > { %v8263_v12 = vor.u32 %v8913_v61, %v8260_v11 }
 0x49d   : > { %5138 = vmatpush.bf16.msrb.mxu2 %v7419_v63  ;;  %v8920_v63 = vld [vmem:[%s13007_s15 + $0x6cc] sm:$0xf]  ;;  %5166 = vmatpush.bf16.msra.mxu3 %v7867_v48  ;;  %v8148_v48 = vld [vmem:[%s13007_s15 + $0x5cc] sm:$0xf0] }
 0x49e   : > { %v8291_v2 = vor.u32 %v8920_v63, %v8288_v0  ;;  %v8151_v49 = vor.u32 %v8885_v46, %v8148_v48  ;;  %v8123_v63 = vor.u32 %v8878_v58, %v8120_v60  ;;  %v7790_v48 = vld [vmem:[%s13007_s15 + $0x2e0] sm:$0xf]  ;;  %v7538_v58 = vld [vmem:[%s13007_s15 + $0xe8] sm:$0xf] }
 0x49f   : > { %5202 = vmatpush.bf16.msra.mxu0 %v7815_v22  ;;  %v8232_v22 = vld [vmem:[%s13007_s15 + $0x674] sm:$0xf0]  ;;  %v7762_v60 = vld [vmem:[%s13007_s15 + $0x2a8] sm:$0xf] }
 0x4a0   : > { %5229 = vmatpush.bf16.msrb.mxu1 %v8291_v2  ;;  %v8235_v24 = vor.u32 %v8906_v21, %v8232_v22  ;;  %v8815_v2 = vld [vmem:[%s13007_s15 + $0x384] sm:$0xf]  ;;  %v7622_v22 = vld [vmem:[%s13007_s15 + $0x190] sm:$0xf] }
 0x4a1   : > { %5187 = vmatpush.bf16.msra.mxu2 %v7619_v7  ;;  %5215 = vmatpush.bf16.msrb.mxu3 %v8067_v1  ;;  %v8036_v7 = vld [vmem:[%s13007_s15 + $0x4ec] sm:$0xf0]  ;;  %v7871_v42 = vor.u32 %v8815_v2, %v7868_v3  ;;  %v8728_v3 = vld [vmem:[%s13007_s15 + $0xc8] sm:$0xf0] }
 0x4a2   : > { %v8039_v10 = vor.u32 %v8857_v6, %v8036_v7  ;;  %v8092_v6 = vld [vmem:[%s13007_s15 + $0x55c] sm:$0xf0]  ;;  %v7510_v2 = vld [vmem:[%s13007_s15 + $0xb0] sm:$0xf] }
 0x4a3   : > { %5203 = vmatpush.bf16.msra.mxu0 %v7787_v32  ;;  %v8899_v32 = vld [vmem:[%s13007_s15 + $0x624] sm:$0xf]  ;;  %v8095_v7 = vor.u32 %v8871_v37, %v8092_v6 }
 0x4a4   : > { %5230 = vmatpush.bf16.msrb.mxu1 %v8263_v12  ;;  %v8207_v34 = vor.u32 %v8899_v32, %v8204_v33  ;;  %v7847_v32 = vor.u32 %v8812_v26, %v7846_v25  ;;  %v7594_v33 = vld [vmem:[%s13007_s15 + $0x158] sm:$0xf]  ;;  %v8917_v25 = vld [vmem:[%s13007_s15 + $0x6b0] sm:$0xf0] }
 0x4a5   : > { %5188 = vmatpush.bf16.msra.mxu2 %v7591_v19  ;;  %5216 = vmatpush.bf16.msrb.mxu3 %v8039_v10  ;;  %v7675_v19 = vor.u32 %v8766_v15, %v7672_v17 }
 0x4a7   : > { %5204 = vmatpush.bf16.msra.mxu0 %v7759_v45  ;;  %v8829_v45 = vld [vmem:[%s13007_s15 + $0x3f4] sm:$0xf] }
 0x4a8   : > { %5231 = vmatpush.bf16.msrb.mxu1 %v8235_v24  ;;  %v7927_v47 = vor.u32 %v8829_v45, %v7924_v62  ;;  %v7566_v45 = vld [vmem:[%s13007_s15 + $0x120] sm:$0xf]  ;;  %v8742_v62 = vld [vmem:[%s13007_s15 + $0x138] sm:$0xf0] }
 0x4a9   : > { %5189 = vmatpush.bf16.msra.mxu2 %v7563_v30  ;;  %5217 = vmatpush.bf16.msrb.mxu3 %v8011_v23  ;;  %v7980_v30 = vld [vmem:[%s13007_s15 + $0x47c] sm:$0xf0]  ;;  %v8756_v23 = vld [vmem:[%s13007_s15 + $0x1a8] sm:$0xf0] }
 0x4aa   : > { %v7983_v31 = vor.u32 %v8843_v29, %v7980_v30  ;;  %v7623_v29 = vor.u32 %v8756_v23, %v7622_v22  ;;  %v8042_v22 = vld [vmem:[%s13007_s15 + $0x4d8] sm:$0xf]  ;;  %v8861_v23 = vld [vmem:[%s13007_s15 + $0x4f0] sm:$0xf0] }
 0x4ab   : > { %5205 = vmatpush.bf16.msra.mxu0 %v7731_v59  ;;  %v7899_v59 = vor.u32 %v8822_v51, %v7896_v57  ;;  %v7567_v51 = vor.u32 %v8742_v62, %v7566_v45  ;;  %v8239_v45 = vor.u32 %v8910_v38, %v8238_v36  ;;  %v8763_v62 = vld [vmem:[%s13007_s15 + $0x1e0] sm:$0xf0]  ;;  %v8098_v36 = vld [vmem:[%s13007_s15 + $0x548] sm:$0xf] }
 0x4ac   : > { %5232 = vmatpush.bf16.msrb.mxu1 %v8207_v34  ;;  %v8749_v34 = vld [vmem:[%s13007_s15 + $0x170] sm:$0xf0] }
 0x4ad   : > { %5190 = vmatpush.bf16.msra.mxu2 %v7535_v41  ;;  %5218 = vmatpush.bf16.msrb.mxu3 %v7983_v31  ;;  %v7595_v54 = vor.u32 %v8749_v34, %v7594_v33  ;;  %v8014_v33 = vld [vmem:[%s13007_s15 + $0x4a0] sm:$0xf]  ;;  %v8854_v34 = vld [vmem:[%s13007_s15 + $0x4b8] sm:$0xf0] }
 0x4af   : > { %5206 = vmatpush.bf16.msra.mxu0 %v7703_v9 }
 0x4b0   : > { %5233 = vmatpush.bf16.msrb.mxu1 %v8179_v40 }
 0x4b1   : > { %5191 = vmatpush.bf16.msra.mxu2 %v7507_v56  ;;  %5219 = vmatpush.bf16.msrb.mxu3 %v7955_v39 }
 0x4b3   : > { %5207 = vmatpush.bf16.msra.mxu0 %v7675_v19 }
 0x4b4   : > { %5234 = vmatpush.bf16.msrb.mxu1 %v8151_v49  ;;  %v8798_v49 = vld [vmem:[%s13007_s15 + $0x2f8] sm:$0xf0] }
 0x4b5   : > { %5192 = vmatpush.bf16.msra.mxu2 %v7479_v5  ;;  %5220 = vmatpush.bf16.msrb.mxu3 %v7927_v47  ;;  %v7791_v57 = vor.u32 %v8798_v49, %v7790_v48  ;;  %v8210_v48 = vld [vmem:[%s13007_s15 + $0x628] sm:$0xf]  ;;  %v8903_v49 = vld [vmem:[%s13007_s15 + $0x640] sm:$0xf0] }
 0x4b7   : > { %5208 = vmatpush.bf16.msra.mxu0 %v7647_v8 }
 0x4b8   : > { %5235 = vmatpush.bf16.msrb.mxu1 %v8123_v63  ;;  %v8791_v63 = vld [vmem:[%s13007_s15 + $0x2c0] sm:$0xf0] }
 0x4b9   : > { %5193 = vmatpush.bf16.msra.mxu2 %v7451_v16  ;;  %5221 = vmatpush.bf16.msrb.mxu3 %v7899_v59  ;;  %v8735_v59 = vld [vmem:[%s13007_s15 + $0x100] sm:$0xf0] }
 0x4bc   : > { %5236 = vmatpush.bf16.msrb.mxu1 %v8095_v7  ;;  %v8868_v7 = vld [vmem:[%s13007_s15 + $0x528] sm:$0xf0] }
 0x4bd   : > { %5194 = vmatpush.bf16.msra.mxu2 %v7423_v27  ;;  %5222 = vmatpush.bf16.msrb.mxu3 %v7871_v42  ;;  %v8070_v42 = vld [vmem:[%s13007_s15 + $0x510] sm:$0xf] }
 0x4f7   : > { %v3606_v41 = vpop.f32.mrf.mxu0  ;;  %v3634_v43 = vpop.f32.mrf.mxu1 }
 0x4ff   : > { %v3608_v4 = vpop.f32.mrf.mxu0  ;;  %v3636_v5 = vpop.f32.mrf.mxu1 }
 0x503   : > { %v3592_v55 = vpop.f32.mrf.mxu2  ;;  %v3620_v56 = vpop.f32.mrf.mxu3 }
 0x504   : > { %v3593_v0 = vadd.f32 %v3592_v55, %v3255_v52  ;;  %v3621_v1 = vadd.f32 %v3620_v56, %v3256_v53 }
 0x506   : > { %v3607_v9 = vadd.f32 %v3606_v41, %v3593_v0  ;;  %v3635_v10 = vadd.f32 %v3634_v43, %v3621_v1  ;;  %v7539_v0 = vor.u32 %v8735_v59, %v7538_v58  ;;  %v7763_v1 = vor.u32 %v8791_v63, %v7762_v60  ;;  %v7958_v60 = vld [vmem:[%s13007_s15 + $0x430] sm:$0xf]  ;;  %v8840_v63 = vld [vmem:[%s13007_s15 + $0x448] sm:$0xf0] }
 0x507   : > { %v3662_v16 = vpop.f32.mrf.mxu0  ;;  %v3690_v17 = vpop.f32.mrf.mxu1  ;;  %v8211_v59 = vor.u32 %v8903_v49, %v8210_v48 }
 0x508   : > { %9018 = vtanh.f32 %v3607_v9  ;;  %v8294_v9 = vld [vmem:[%s13007_s15 + $0x6d0] sm:$0xf] }
 0x509   : > { %9020 = vtanh.f32 %v3635_v10  ;;  %v8924_v10 = vld [vmem:[%s13007_s15 + $0x6e8] sm:$0xf0] }
 0x50b   : > { %v3594_v61 = vpop.f32.mrf.mxu2  ;;  %v3622_v11 = vpop.f32.mrf.mxu3 }
 0x50c   : > { %v3595_v12 = vadd.f32 %v3594_v61, %v3255_v52  ;;  %v3623_v13 = vadd.f32 %v3622_v11, %v3256_v53 }
 0x50e   : > { %v3609_v14 = vadd.f32 %v3608_v4, %v3595_v12  ;;  %v3637_v15 = vadd.f32 %v3636_v5, %v3623_v13  ;;  %v9019_v24 = vpop.eup %9018  ;;  %v7734_v4 = vld [vmem:[%s13007_s15 + $0x270] sm:$0xf]  ;;  %v8784_v5 = vld [vmem:[%s13007_s15 + $0x288] sm:$0xf0]  ;;  %v7511_v13 = vor.u32 %v8728_v3, %v7510_v2 }
 0x50f   : > { %v9021_v50 = vpop.eup %9020  ;;  %v3664_v52 = vpop.f32.mrf.mxu0  ;;  %v8182_v2 = vld [vmem:[%s13007_s15 + $0x5f0] sm:$0xf]  ;;  %v8896_v3 = vld [vmem:[%s13007_s15 + $0x608] sm:$0xf0] }
 0x510   : > { %9022 = vtanh.f32 %v3609_v14  ;;  %v3692_v53 = vpop.f32.mrf.mxu1  ;;  %v7735_v14 = vor.u32 %v8784_v5, %v7734_v4  ;;  %v7596_v4 = vld [vmem:[%s13007_s15 + $0x174] sm:$0xf0]  ;;  %v8802_v5 = vld [vmem:[%s13007_s15 + $0x31c] sm:$0xf] }
 0x511   : > { %9024 = vtanh.f32 %v3637_v15  ;;  %v7482_v15 = vld [vmem:[%s13007_s15 + $0x78] sm:$0xf] }
 0x513   : > { %v3648_v19 = vpop.f32.mrf.mxu2  ;;  %v3676_v21 = vpop.f32.mrf.mxu3 }
 0x514   : > { %v3649_v28 = vadd.f32 %v3648_v19, %v3257_v18  ;;  %v3677_v31 = vadd.f32 %v3676_v21, %v3258_v20  ;;  %v8295_v19 = vor.u32 %v8924_v10, %v8294_v9  ;;  %v8777_v21 = vld [vmem:[%s13007_s15 + $0x250] sm:$0xf0]  ;;  %v7930_v9 = vld [vmem:[%s13007_s15 + $0x3f8] sm:$0xf] }
 0x515   : > { %v8833_v10 = vld [vmem:[%s13007_s15 + $0x410] sm:$0xf0] }
 0x516   : > { %v9023_v27 = vpop.eup %9022  ;;  %v3663_v39 = vadd.f32 %v3662_v16, %v3649_v28  ;;  %v3691_v40 = vadd.f32 %v3690_v17, %v3677_v31  ;;  %v8721_v16 = vld [vmem:[%s13007_s15 + $0x90] sm:$0xf0]  ;;  %v8714_v28 = vld [vmem:[%s13007_s15 + $0x58] sm:$0xf0]  ;;  %v7678_v31 = vld [vmem:[%s13007_s15 + $0x200] sm:$0xf] }
 0x517   : > { %v9025_v30 = vpop.eup %9024  ;;  %v11941_v8 = vpack.c.bf16 %v9023_v27, %v9019_v24  ;;  %v8266_v24 = vld [vmem:[%s13007_s15 + $0x698] sm:$0xf]  ;;  %v7483_v26 = vor.u32 %v8721_v16, %v7482_v15  ;;  %v7454_v27 = vld [vmem:[%s13007_s15 + $0x40] sm:$0xf]  ;;  %v8739_v15 = vld [vmem:[%s13007_s15 + $0x124] sm:$0xf] }
 0x518   : > { %v11949_v35 = vpack.c.bf16 %v9025_v30, %v9021_v50  ;;  %9026 = vtanh.f32 %v3663_v39  ;;  %v8267_v30 = vor.u32 %v8917_v25, %v8266_v24  ;;  %v7455_v39 = vor.u32 %v8714_v28, %v7454_v27  ;;  %v7568_v16 = vld [vmem:[%s13007_s15 + $0x13c] sm:$0xf0]  ;;  %v8732_v27 = vld [vmem:[%s13007_s15 + $0xec] sm:$0xf]  ;;  %v7540_v28 = vld [vmem:[%s13007_s15 + $0x104] sm:$0xf0] }
 0x519   : > { %5139 = vmatmul.bf16.vlgmr.msrb.gmra.mxu2 %v11941_v8  ;;  %9028 = vtanh.f32 %v3691_v40  ;;  %v7426_v40 = vld [vmem:[%s13007_s15 + $0x8] sm:$0xf]  ;;  %v7571_v24 = vor.u32 %v8739_v15, %v7568_v16  ;;  %v7543_v38 = vor.u32 %v8732_v27, %v7540_v28  ;;  %v8704_v15 = vld [vmem:[%s13007_s15 + $0xc] sm:$0xf]  ;;  %v7854_v27 = vld [vmem:[%s13007_s15 + $0x358] sm:$0xf] }
 0x51a   : > { %5153 = vmatmul.bf16.vlgmr.msrb.gmra.mxu0 %v11949_v35  ;;  %5243 = vmatpush.bf16.msrb.mxu2 %v7623_v29  ;;  %v8043_v29 = vor.u32 %v8861_v23, %v8042_v22  ;;  %v7902_v22 = vld [vmem:[%s13007_s15 + $0x3c0] sm:$0xf]  ;;  %v8826_v23 = vld [vmem:[%s13007_s15 + $0x3d8] sm:$0xf0]  ;;  %v7428_v16 = vld [vmem:[%s13007_s15 + $0x24] sm:$0xf0] }
 0x51b   : > { %5257 = vmatpush.bf16.msrb.mxu0 %v7847_v32  ;;  %v3650_v41 = vpop.f32.mrf.mxu2  ;;  %v3678_v43 = vpop.f32.mrf.mxu3  ;;  %v8770_v32 = vld [vmem:[%s13007_s15 + $0x218] sm:$0xf0]  ;;  %v8813_v28 = vld [vmem:[%s13007_s15 + $0x370] sm:$0xf0] }
 0x51c   : > { %v3651_v46 = vadd.f32 %v3650_v41, %v3257_v18  ;;  %v3679_v47 = vadd.f32 %v3678_v43, %v3258_v20  ;;  %v8071_v18 = vor.u32 %v8868_v7, %v8070_v42  ;;  %v7706_v20 = vld [vmem:[%s13007_s15 + $0x238] sm:$0xf]  ;;  %v8707_v41 = vld [vmem:[%s13007_s15 + $0x20] sm:$0xf0]  ;;  %v7650_v43 = vld [vmem:[%s13007_s15 + $0x1c8] sm:$0xf]  ;;  %v8183_v7 = vor.u32 %v8896_v3, %v8182_v2 }
 0x51d   : > { %v7707_v50 = vor.u32 %v8777_v21, %v7706_v20  ;;  %v7820_v42 = vld [vmem:[%s13007_s15 + $0x334] sm:$0xf0]  ;;  %v7931_v20 = vor.u32 %v8833_v10, %v7930_v9  ;;  %v8851_v9 = vld [vmem:[%s13007_s15 + $0x4a4] sm:$0xf]  ;;  %v8016_v10 = vld [vmem:[%s13007_s15 + $0x4bc] sm:$0xf0] }
 0x51e   : > { %v3665_v55 = vadd.f32 %v3664_v52, %v3651_v46  ;;  %v3693_v56 = vadd.f32 %v3692_v53, %v3679_v47  ;;  %5244 = vmatpush.bf16.msrb.mxu2 %v7595_v54  ;;  %v9027_v37 = vpop.eup %9026  ;;  %v7679_v54 = vor.u32 %v8770_v32, %v7678_v31  ;;  %v7986_v46 = vld [vmem:[%s13007_s15 + $0x468] sm:$0xf]  ;;  %v8847_v47 = vld [vmem:[%s13007_s15 + $0x480] sm:$0xf0]  ;;  %v8753_v52 = vld [vmem:[%s13007_s15 + $0x194] sm:$0xf]  ;;  %v7903_v31 = vor.u32 %v8826_v23, %v7902_v22 }
 0x51f   : > { %5258 = vmatpush.bf16.msrb.mxu0 %v7819_v44  ;;  %v9029_v6 = vpop.eup %9028  ;;  %v8015_v44 = vor.u32 %v8854_v34, %v8014_v33  ;;  %v7624_v53 = vld [vmem:[%s13007_s15 + $0x1ac] sm:$0xf0]  ;;  %v7987_v58 = vor.u32 %v8847_v47, %v7986_v46  ;;  %v7874_v33 = vld [vmem:[%s13007_s15 + $0x388] sm:$0xf]  ;;  %v8819_v34 = vld [vmem:[%s13007_s15 + $0x3a0] sm:$0xf0] }
 0x520   : > { %9030 = vtanh.f32 %v3665_v55  ;;  %v8809_v55 = vld [vmem:[%s13007_s15 + $0x354] sm:$0xf]  ;;  %v8296_v47 = vld [vmem:[%s13007_s15 + $0x6ec] sm:$0xf0]  ;;  %v7875_v48 = vor.u32 %v8819_v34, %v7874_v33  ;;  %v8844_v22 = vld [vmem:[%s13007_s15 + $0x46c] sm:$0xf] }
 0x521   : > { %9032 = vtanh.f32 %v3693_v56  ;;  %v7848_v56 = vld [vmem:[%s13007_s15 + $0x36c] sm:$0xf0]  ;;  %v8921_v46 = vld [vmem:[%s13007_s15 + $0x6d4] sm:$0xf]  ;;  %v7988_v23 = vld [vmem:[%s13007_s15 + $0x484] sm:$0xf0] }
 0x522   : > { %5245 = vmatpush.bf16.msrb.mxu2 %v7567_v51  ;;  %v7427_v51 = vor.u32 %v8707_v41, %v7426_v40  ;;  %v8725_v40 = vld [vmem:[%s13007_s15 + $0xb4] sm:$0xf]  ;;  %v7512_v41 = vld [vmem:[%s13007_s15 + $0xcc] sm:$0xf0] }
 0x523   : > { %5259 = vmatpush.bf16.msrb.mxu0 %v7791_v57  ;;  %v7651_v57 = vor.u32 %v8763_v62, %v7650_v43  ;;  %v8781_v43 = vld [vmem:[%s13007_s15 + $0x274] sm:$0xf]  ;;  %v8072_v62 = vld [vmem:[%s13007_s15 + $0x52c] sm:$0xf0] }
 0x524   : > { %v8837_v33 = vld [vmem:[%s13007_s15 + $0x434] sm:$0xf]  ;;  %v7960_v34 = vld [vmem:[%s13007_s15 + $0x44c] sm:$0xf0] }
 0x526   : > { %v9031_v61 = vpop.eup %9030  ;;  %5246 = vmatpush.bf16.msrb.mxu2 %v7539_v0  ;;  %v7627_v0 = vor.u32 %v8753_v52, %v7624_v53  ;;  %v7515_v52 = vor.u32 %v8725_v40, %v7512_v41  ;;  %v7602_v40 = vld [vmem:[%s13007_s15 + $0x160] sm:$0xf]  ;;  %v8750_v41 = vld [vmem:[%s13007_s15 + $0x178] sm:$0xf0] }
 0x527   : > { %v9033_v11 = vpop.eup %9032  ;;  %v12007_v12 = vpack.c.bf16 %v9031_v61, %v9027_v37  ;;  %5260 = vmatpush.bf16.msrb.mxu0 %v7763_v1  ;;  %v7851_v1 = vor.u32 %v8809_v55, %v7848_v56  ;;  %v8746_v37 = vld [vmem:[%s13007_s15 + $0x15c] sm:$0xf]  ;;  %v7484_v56 = vld [vmem:[%s13007_s15 + $0x94] sm:$0xf0] }
 0x528   : > { %v12015_v17 = vpack.c.bf16 %v9033_v11, %v9029_v6  ;;  %v7959_v6 = vor.u32 %v8840_v63, %v7958_v60  ;;  %v7599_v61 = vor.u32 %v8746_v37, %v7596_v4  ;;  %v7823_v11 = vor.u32 %v8802_v5, %v7820_v42  ;;  %v8718_v55 = vld [vmem:[%s13007_s15 + $0x7c] sm:$0xf]  ;;  %v8044_v63 = vld [vmem:[%s13007_s15 + $0x4f4] sm:$0xf0]  ;;  %v8711_v37 = vld [vmem:[%s13007_s15 + $0x44] sm:$0xf] }
 0x529   : > { %5167 = vmatmul.bf16.vlgmr.msra.gmra.mxu3 %v12007_v12  ;;  %5195 = vmatmul.bf16.vlgmr.msra.gmra.mxu2 %v11941_v8  ;;  %v8858_v60 = vld [vmem:[%s13007_s15 + $0x4dc] sm:$0xf]  ;;  %v7487_v2 = vor.u32 %v8718_v55, %v7484_v56  ;;  %v7456_v4 = vld [vmem:[%s13007_s15 + $0x5c] sm:$0xf0]  ;;  %v7574_v55 = vld [vmem:[%s13007_s15 + $0x128] sm:$0xf] }
 0x52a   : > { %5181 = vmatmul.bf16.vlgmr.msra.gmra.mxu1 %v12015_v17  ;;  %5209 = vmatmul.bf16.vlgmr.msra.gmra.mxu0 %v11949_v35  ;;  %v8047_v5 = vor.u32 %v8858_v60, %v8044_v63  ;;  %v8743_v56 = vld [vmem:[%s13007_s15 + $0x140] sm:$0xf0]  ;;  %v7904_v63 = vld [vmem:[%s13007_s15 + $0x3dc] sm:$0xf0] }
 0x52b   : > { %5247 = vmatpush.bf16.msrb.mxu2 %v7511_v13  ;;  %5261 = vmatpush.bf16.msrb.mxu0 %v7735_v14  ;;  %v8154_v13 = vld [vmem:[%s13007_s15 + $0x5b8] sm:$0xf]  ;;  %v8889_v14 = vld [vmem:[%s13007_s15 + $0x5d0] sm:$0xf0]  ;;  %v8823_v60 = vld [vmem:[%s13007_s15 + $0x3c4] sm:$0xf] }
 0x52c   : > { %5271 = vmatpush.bf16.msra.mxu3 %v8071_v18  ;;  %5285 = vmatpush.bf16.msra.mxu1 %v8295_v19  ;;  %v8795_v18 = vld [vmem:[%s13007_s15 + $0x2e4] sm:$0xf]  ;;  %v7792_v19 = vld [vmem:[%s13007_s15 + $0x2fc] sm:$0xf0]  ;;  %v8155_v21 = vor.u32 %v8889_v14, %v8154_v13  ;;  %v7459_v13 = vor.u32 %v8711_v37, %v7456_v4  ;;  %v7546_v37 = vld [vmem:[%s13007_s15 + $0xf0] sm:$0xf] }
 0x52d   : > { %v7795_v25 = vor.u32 %v8795_v18, %v7792_v19  ;;  %v8760_v18 = vld [vmem:[%s13007_s15 + $0x1cc] sm:$0xf]  ;;  %v8019_v19 = vor.u32 %v8851_v9, %v8016_v10  ;;  %v7876_v10 = vld [vmem:[%s13007_s15 + $0x3a4] sm:$0xf0] }
 0x52e   : > { %v8736_v4 = vld [vmem:[%s13007_s15 + $0x108] sm:$0xf0] }
 0x52f   : > { %5248 = vmatpush.bf16.msrb.mxu2 %v7483_v26  ;;  %5262 = vmatpush.bf16.msrb.mxu0 %v7707_v50  ;;  %v8126_v26 = vld [vmem:[%s13007_s15 + $0x580] sm:$0xf]  ;;  %v8882_v50 = vld [vmem:[%s13007_s15 + $0x598] sm:$0xf0]  ;;  %v8816_v9 = vld [vmem:[%s13007_s15 + $0x38c] sm:$0xf] }
 0x530   : > { %5272 = vmatpush.bf16.msra.mxu3 %v8043_v29  ;;  %5286 = vmatpush.bf16.msra.mxu1 %v8267_v30  ;;  %v8788_v29 = vld [vmem:[%s13007_s15 + $0x2ac] sm:$0xf]  ;;  %v7764_v30 = vld [vmem:[%s13007_s15 + $0x2c4] sm:$0xf0]  ;;  %v8127_v32 = vor.u32 %v8882_v50, %v8126_v26  ;;  %v7630_v26 = vld [vmem:[%s13007_s15 + $0x198] sm:$0xf] }
 0x531   : > { %v8757_v50 = vld [vmem:[%s13007_s15 + $0x1b0] sm:$0xf0] }
 0x533   : > { %5249 = vmatpush.bf16.msrb.mxu2 %v7455_v39  ;;  %5263 = vmatpush.bf16.msrb.mxu0 %v7679_v54  ;;  %v7767_v39 = vor.u32 %v8788_v29, %v7764_v30  ;;  %v8875_v54 = vld [vmem:[%s13007_s15 + $0x560] sm:$0xf0]  ;;  %v7431_v29 = vor.u32 %v8704_v15, %v7428_v16  ;;  %v7518_v15 = vld [vmem:[%s13007_s15 + $0xb8] sm:$0xf]  ;;  %v8729_v16 = vld [vmem:[%s13007_s15 + $0xd0] sm:$0xf0] }
 0x534   : > { %5273 = vmatpush.bf16.msra.mxu3 %v8015_v44  ;;  %5287 = vmatpush.bf16.msra.mxu1 %v8239_v45  ;;  %v7736_v44 = vld [vmem:[%s13007_s15 + $0x28c] sm:$0xf0]  ;;  %v8865_v45 = vld [vmem:[%s13007_s15 + $0x514] sm:$0xf]  ;;  %v8099_v49 = vor.u32 %v8875_v54, %v8098_v36  ;;  %v7631_v36 = vor.u32 %v8757_v50, %v7630_v26  ;;  %v7519_v26 = vor.u32 %v8729_v16, %v7518_v15  ;;  %v8747_v15 = vld [vmem:[%s13007_s15 + $0x164] sm:$0xf] }
 0x535   : > { %v7739_v53 = vor.u32 %v8781_v43, %v7736_v44  ;;  %v8184_v54 = vld [vmem:[%s13007_s15 + $0x60c] sm:$0xf0]  ;;  %v7826_v43 = vld [vmem:[%s13007_s15 + $0x320] sm:$0xf]  ;;  %v8806_v44 = vld [vmem:[%s13007_s15 + $0x338] sm:$0xf0] }
 0x536   : > { %v7604_v16 = vld [vmem:[%s13007_s15 + $0x17c] sm:$0xf0] }
 0x537   : > { %5250 = vmatpush.bf16.msrb.mxu2 %v7427_v51  ;;  %5264 = vmatpush.bf16.msrb.mxu0 %v7651_v57  ;;  %v8075_v51 = vor.u32 %v8865_v45, %v8072_v62  ;;  %v8299_v57 = vor.u32 %v8921_v46, %v8296_v47  ;;  %v7963_v45 = vor.u32 %v8837_v33, %v7960_v34  ;;  %v8830_v46 = vld [vmem:[%s13007_s15 + $0x3fc] sm:$0xf]  ;;  %v7932_v47 = vld [vmem:[%s13007_s15 + $0x414] sm:$0xf0]  ;;  %v8050_v33 = vld [vmem:[%s13007_s15 + $0x4e0] sm:$0xf] }
 0x538   : > { %5274 = vmatpush.bf16.msra.mxu3 %v7987_v58  ;;  %5288 = vmatpush.bf16.msra.mxu1 %v8211_v59  ;;  %v8774_v58 = vld [vmem:[%s13007_s15 + $0x23c] sm:$0xf]  ;;  %v7708_v59 = vld [vmem:[%s13007_s15 + $0x254] sm:$0xf0] }
 0x539   : > { %5223 = vmatmul.bf16.vlgmr.msrb.gmra.mxu3 %v12007_v12  ;;  %v7711_v3 = vor.u32 %v8774_v58, %v7708_v59  ;;  %v7935_v58 = vor.u32 %v8830_v46, %v7932_v47  ;;  %v8862_v34 = vld [vmem:[%s13007_s15 + $0x4f8] sm:$0xf0]  ;;  %v8022_v46 = vld [vmem:[%s13007_s15 + $0x4a8] sm:$0xf]  ;;  %v8855_v47 = vld [vmem:[%s13007_s15 + $0x4c0] sm:$0xf0] }
 0x53a   : > { %5237 = vmatmul.bf16.vlgmr.msrb.gmra.mxu1 %v12015_v17  ;;  %5251 = vmatmul.bf16.vlgmr.msrb.gmra.mxu2 %v11941_v8 }
 0x53b   : > { %5299 = vmatpush.bf16.msra.mxu2 %v7627_v0  ;;  %5313 = vmatpush.bf16.msra.mxu0 %v7851_v1  ;;  %v8914_v0 = vld [vmem:[%s13007_s15 + $0x69c] sm:$0xf]  ;;  %v8268_v1 = vld [vmem:[%s13007_s15 + $0x6b4] sm:$0xf0] }
 0x53c   : > { %5265 = vmatmul.bf16.vlgmr.msrb.gmra.mxu0 %v11949_v35  ;;  %5275 = vmatpush.bf16.msra.mxu3 %v7959_v6  ;;  %v8271_v42 = vor.u32 %v8914_v0, %v8268_v1  ;;  %v8767_v6 = vld [vmem:[%s13007_s15 + $0x204] sm:$0xf]  ;;  %v7575_v0 = vor.u32 %v8743_v56, %v7574_v55  ;;  %v7434_v55 = vld [vmem:[%s13007_s15 + $0x10] sm:$0xf]  ;;  %v8708_v56 = vld [vmem:[%s13007_s15 + $0x28] sm:$0xf0] }
 0x53d   : > { %5289 = vmatpush.bf16.msra.mxu1 %v8183_v7  ;;  %v7680_v7 = vld [vmem:[%s13007_s15 + $0x21c] sm:$0xf0] }
 0x53e   : > { %v7683_v14 = vor.u32 %v8767_v6, %v7680_v7  ;;  %v7907_v6 = vor.u32 %v8823_v60, %v7904_v63  ;;  %v7994_v60 = vld [vmem:[%s13007_s15 + $0x470] sm:$0xf]  ;;  %v8848_v63 = vld [vmem:[%s13007_s15 + $0x488] sm:$0xf0] }
 0x53f   : > { %5300 = vmatpush.bf16.msra.mxu2 %v7599_v61  ;;  %5314 = vmatpush.bf16.msra.mxu0 %v7823_v11  ;;  %v8907_v61 = vld [vmem:[%s13007_s15 + $0x664] sm:$0xf]  ;;  %v8240_v11 = vld [vmem:[%s13007_s15 + $0x67c] sm:$0xf0] }
 0x540   : > { %5276 = vmatpush.bf16.msra.mxu3 %v7931_v20  ;;  %v8243_v20 = vor.u32 %v8907_v61, %v8240_v11  ;;  %v8872_v61 = vld [vmem:[%s13007_s15 + $0x54c] sm:$0xf]  ;;  %v7547_v11 = vor.u32 %v8736_v4, %v7546_v37  ;;  %v8810_v37 = vld [vmem:[%s13007_s15 + $0x35c] sm:$0xf]  ;;  %v7856_v4 = vld [vmem:[%s13007_s15 + $0x374] sm:$0xf0] }
 0x541   : > { %5290 = vmatpush.bf16.msra.mxu1 %v8155_v21  ;;  %v7652_v21 = vld [vmem:[%s13007_s15 + $0x1e4] sm:$0xf0] }
 0x542   : > { %v7655_v30 = vor.u32 %v8760_v18, %v7652_v21  ;;  %v7742_v18 = vld [vmem:[%s13007_s15 + $0x278] sm:$0xf]  ;;  %v8869_v21 = vld [vmem:[%s13007_s15 + $0x530] sm:$0xf0] }
 0x543   : > { %5301 = vmatpush.bf16.msra.mxu2 %v7571_v24  ;;  %5315 = vmatpush.bf16.msra.mxu0 %v7795_v25  ;;  %v8900_v24 = vld [vmem:[%s13007_s15 + $0x62c] sm:$0xf]  ;;  %v8212_v25 = vld [vmem:[%s13007_s15 + $0x644] sm:$0xf0] }
 0x544   : > { %5277 = vmatpush.bf16.msra.mxu3 %v7903_v31  ;;  %v7991_v31 = vor.u32 %v8844_v22, %v7988_v23  ;;  %v8302_v22 = vld [vmem:[%s13007_s15 + $0x6d8] sm:$0xf]  ;;  %v8925_v23 = vld [vmem:[%s13007_s15 + $0x6f0] sm:$0xf0] }
 0x545   : > { %5291 = vmatpush.bf16.msra.mxu1 %v8127_v32  ;;  %v8215_v32 = vor.u32 %v8900_v24, %v8212_v25  ;;  %v7879_v24 = vor.u32 %v8816_v9, %v7876_v10  ;;  %v7966_v9 = vld [vmem:[%s13007_s15 + $0x438] sm:$0xf]  ;;  %v8841_v10 = vld [vmem:[%s13007_s15 + $0x450] sm:$0xf0] }
 0x547   : > { %5302 = vmatpush.bf16.msra.mxu2 %v7543_v38  ;;  %5316 = vmatpush.bf16.msra.mxu0 %v7767_v39  ;;  %v7855_v38 = vor.u32 %v8813_v28, %v7854_v27  ;;  %v8893_v39 = vld [vmem:[%s13007_s15 + $0x5f4] sm:$0xf]  ;;  %v7490_v27 = vld [vmem:[%s13007_s15 + $0x80] sm:$0xf]  ;;  %v8722_v28 = vld [vmem:[%s13007_s15 + $0x98] sm:$0xf0] }
 0x548   : > { %5278 = vmatpush.bf16.msra.mxu3 %v7875_v48  ;;  %v8187_v62 = vor.u32 %v8893_v39, %v8184_v54  ;;  %v7603_v48 = vor.u32 %v8750_v41, %v7602_v40  ;;  %v7491_v39 = vor.u32 %v8722_v28, %v7490_v27  ;;  %v7462_v40 = vld [vmem:[%s13007_s15 + $0x48] sm:$0xf]  ;;  %v8715_v41 = vld [vmem:[%s13007_s15 + $0x60] sm:$0xf0]  ;;  %v8740_v27 = vld [vmem:[%s13007_s15 + $0x12c] sm:$0xf] }
 0x549   : > { %5292 = vmatpush.bf16.msra.mxu1 %v8099_v49  ;;  %v7827_v49 = vor.u32 %v8806_v44, %v7826_v43  ;;  %v8051_v43 = vor.u32 %v8862_v34, %v8050_v33  ;;  %v7576_v28 = vld [vmem:[%s13007_s15 + $0x144] sm:$0xf0]  ;;  %v8827_v34 = vld [vmem:[%s13007_s15 + $0x3e0] sm:$0xf0] }
 0x54a   : > { %v7910_v33 = vld [vmem:[%s13007_s15 + $0x3c8] sm:$0xf] }
 0x54b   : > { %5303 = vmatpush.bf16.msra.mxu2 %v7515_v52  ;;  %5317 = vmatpush.bf16.msra.mxu0 %v7739_v53  ;;  %v8886_v52 = vld [vmem:[%s13007_s15 + $0x5bc] sm:$0xf]  ;;  %v8156_v53 = vld [vmem:[%s13007_s15 + $0x5d4] sm:$0xf0] }
 0x54c   : > { %5327 = vmatpush.bf16.msrb.mxu3 %v8075_v51  ;;  %5293 = vmatmul.bf16.vlgmr.msra.gmra.mxu1 %v12015_v17  ;;  %v7798_v51 = vld [vmem:[%s13007_s15 + $0x2e8] sm:$0xf]  ;;  %v8159_v59 = vor.u32 %v8886_v52, %v8156_v53  ;;  %v7463_v52 = vor.u32 %v8715_v41, %v7462_v40  ;;  %v8733_v40 = vld [vmem:[%s13007_s15 + $0xf4] sm:$0xf]  ;;  %v7548_v41 = vld [vmem:[%s13007_s15 + $0x10c] sm:$0xf0] }
 0x54d   : > { %5341 = vmatpush.bf16.msrb.mxu1 %v8299_v57  ;;  %5279 = vmatmul.bf16.vlgmr.msra.gmra.mxu3 %v12007_v12  ;;  %v8799_v57 = vld [vmem:[%s13007_s15 + $0x300] sm:$0xf0] }
 0x54e   : > { %v7799_v1 = vor.u32 %v8799_v57, %v7798_v51  ;;  %v7658_v51 = vld [vmem:[%s13007_s15 + $0x1d0] sm:$0xf]  ;;  %v8023_v57 = vor.u32 %v8855_v47, %v8022_v46  ;;  %v8820_v47 = vld [vmem:[%s13007_s15 + $0x3a8] sm:$0xf0] }
 0x54f   : > { %5304 = vmatpush.bf16.msra.mxu2 %v7487_v2  ;;  %5318 = vmatpush.bf16.msra.mxu0 %v7711_v3  ;;  %v8879_v2 = vld [vmem:[%s13007_s15 + $0x584] sm:$0xf]  ;;  %v8128_v3 = vld [vmem:[%s13007_s15 + $0x59c] sm:$0xf0]  ;;  %v7882_v46 = vld [vmem:[%s13007_s15 + $0x390] sm:$0xf] }
 0x550   : > { %5328 = vmatpush.bf16.msrb.mxu3 %v8047_v5  ;;  %v7770_v5 = vld [vmem:[%s13007_s15 + $0x2b0] sm:$0xf]  ;;  %v8131_v7 = vor.u32 %v8879_v2, %v8128_v3  ;;  %v8754_v2 = vld [vmem:[%s13007_s15 + $0x19c] sm:$0xf]  ;;  %v7632_v3 = vld [vmem:[%s13007_s15 + $0x1b4] sm:$0xf0] }
 0x551   : > { %5342 = vmatpush.bf16.msrb.mxu1 %v8271_v42  ;;  %v8792_v42 = vld [vmem:[%s13007_s15 + $0x2c8] sm:$0xf0] }
 0x553   : > { %5305 = vmatpush.bf16.msra.mxu2 %v7459_v13  ;;  %5319 = vmatpush.bf16.msra.mxu0 %v7683_v14  ;;  %v7771_v13 = vor.u32 %v8792_v42, %v7770_v5  ;;  %v8100_v14 = vld [vmem:[%s13007_s15 + $0x564] sm:$0xf0]  ;;  %v7435_v5 = vor.u32 %v8708_v56, %v7434_v55  ;;  %v8726_v55 = vld [vmem:[%s13007_s15 + $0xbc] sm:$0xf]  ;;  %v7520_v56 = vld [vmem:[%s13007_s15 + $0xd4] sm:$0xf0] }
 0x554   : > { %5329 = vmatpush.bf16.msrb.mxu3 %v8019_v19  ;;  %v8785_v19 = vld [vmem:[%s13007_s15 + $0x290] sm:$0xf0]  ;;  %v8103_v25 = vor.u32 %v8872_v61, %v8100_v14  ;;  %v7635_v61 = vor.u32 %v8754_v2, %v7632_v3  ;;  %v7523_v2 = vor.u32 %v8726_v55, %v7520_v56  ;;  %v7610_v55 = vld [vmem:[%s13007_s15 + $0x168] sm:$0xf]  ;;  %v8751_v56 = vld [vmem:[%s13007_s15 + $0x180] sm:$0xf0] }
 0x555   : > { %5343 = vmatpush.bf16.msrb.mxu1 %v8243_v20  ;;  %v8078_v20 = vld [vmem:[%s13007_s15 + $0x518] sm:$0xf]  ;;  %v7743_v50 = vor.u32 %v8785_v19, %v7742_v18  ;;  %v8897_v14 = vld [vmem:[%s13007_s15 + $0x610] sm:$0xf0]  ;;  %v8803_v18 = vld [vmem:[%s13007_s15 + $0x324] sm:$0xf] }
 0x556   : > { %v7828_v19 = vld [vmem:[%s13007_s15 + $0x33c] sm:$0xf0] }
 0x557   : > { %5306 = vmatpush.bf16.msra.mxu2 %v7431_v29  ;;  %5320 = vmatpush.bf16.msra.mxu0 %v7655_v30  ;;  %v8079_v29 = vor.u32 %v8869_v21, %v8078_v20  ;;  %v8303_v30 = vor.u32 %v8925_v23, %v8302_v22  ;;  %v7967_v20 = vor.u32 %v8841_v10, %v7966_v9  ;;  %v7938_v22 = vld [vmem:[%s13007_s15 + $0x400] sm:$0xf]  ;;  %v8834_v23 = vld [vmem:[%s13007_s15 + $0x418] sm:$0xf0]  ;;  %v8859_v9 = vld [vmem:[%s13007_s15 + $0x4e4] sm:$0xf] }
 0x558   : > { %5330 = vmatpush.bf16.msrb.mxu3 %v7991_v31  ;;  %v7714_v31 = vld [vmem:[%s13007_s15 + $0x240] sm:$0xf] }
 0x559   : > { %5344 = vmatpush.bf16.msrb.mxu1 %v8215_v32  ;;  %v8778_v32 = vld [vmem:[%s13007_s15 + $0x258] sm:$0xf0]  ;;  %v8052_v10 = vld [vmem:[%s13007_s15 + $0x4fc] sm:$0xf0] }
 0x55a   : > { %5307 = vmatmul.bf16.vlgmr.msra.gmra.mxu2 %v11941_v8  ;;  %5321 = vmatmul.bf16.vlgmr.msra.gmra.mxu0 %v11949_v35  ;;  %v7715_v54 = vor.u32 %v8778_v32, %v7714_v31  ;;  %v7939_v31 = vor.u32 %v8834_v23, %v7938_v22  ;;  %v8852_v22 = vld [vmem:[%s13007_s15 + $0x4ac] sm:$0xf]  ;;  %v8024_v23 = vld [vmem:[%s13007_s15 + $0x4c4] sm:$0xf0] }
 0x55b   : > { %5355 = vmatpush.bf16.msrb.mxu2 %v7631_v36  ;;  %5369 = vmatpush.bf16.msrb.mxu0 %v7855_v38  ;;  %v8274_v36 = vld [vmem:[%s13007_s15 + $0x6a0] sm:$0xf]  ;;  %v8918_v38 = vld [vmem:[%s13007_s15 + $0x6b8] sm:$0xf0] }
 0x55c   : > { %5331 = vmatpush.bf16.msrb.mxu3 %v7963_v45  ;;  %v8275_v44 = vor.u32 %v8918_v38, %v8274_v36  ;;  %v7686_v45 = vld [vmem:[%s13007_s15 + $0x208] sm:$0xf]  ;;  %v7579_v36 = vor.u32 %v8740_v27, %v7576_v28  ;;  %v8705_v27 = vld [vmem:[%s13007_s15 + $0x14] sm:$0xf]  ;;  %v7436_v28 = vld [vmem:[%s13007_s15 + $0x2c] sm:$0xf0] }
 0x55d   : > { %5345 = vmatpush.bf16.msrb.mxu1 %v8187_v62  ;;  %v8771_v62 = vld [vmem:[%s13007_s15 + $0x220] sm:$0xf0] }
 0x55e   : > { %v7687_v53 = vor.u32 %v8771_v62, %v7686_v45  ;;  %v7911_v45 = vor.u32 %v8827_v34, %v7910_v33  ;;  %v8845_v33 = vld [vmem:[%s13007_s15 + $0x474] sm:$0xf]  ;;  %v7996_v34 = vld [vmem:[%s13007_s15 + $0x48c] sm:$0xf0] }
 0x55f   : > { %5356 = vmatpush.bf16.msrb.mxu2 %v7603_v48  ;;  %5370 = vmatpush.bf16.msrb.mxu0 %v7827_v49  ;;  %v8246_v48 = vld [vmem:[%s13007_s15 + $0x668] sm:$0xf]  ;;  %v8911_v49 = vld [vmem:[%s13007_s15 + $0x680] sm:$0xf0] }
 0x560   : > { %5332 = vmatpush.bf16.msrb.mxu3 %v7935_v58  ;;  %v8247_v58 = vor.u32 %v8911_v49, %v8246_v48  ;;  %v8106_v48 = vld [vmem:[%s13007_s15 + $0x550] sm:$0xf]  ;;  %v7551_v49 = vor.u32 %v8733_v40, %v7548_v41  ;;  %v7862_v40 = vld [vmem:[%s13007_s15 + $0x360] sm:$0xf]  ;;  %v8814_v41 = vld [vmem:[%s13007_s15 + $0x378] sm:$0xf0] }
 0x561   : > { %5346 = vmatpush.bf16.msrb.mxu1 %v8159_v59  ;;  %v8764_v59 = vld [vmem:[%s13007_s15 + $0x1e8] sm:$0xf0] }
 0x562   : > { %v7659_v42 = vor.u32 %v8764_v59, %v7658_v51  ;;  %v8782_v51 = vld [vmem:[%s13007_s15 + $0x27c] sm:$0xf]  ;;  %v8080_v59 = vld [vmem:[%s13007_s15 + $0x534] sm:$0xf0] }
 0x563   : > { %5357 = vmatpush.bf16.msrb.mxu2 %v7575_v0  ;;  %5371 = vmatpush.bf16.msrb.mxu0 %v7799_v1  ;;  %v8218_v0 = vld [vmem:[%s13007_s15 + $0x630] sm:$0xf]  ;;  %v8904_v1 = vld [vmem:[%s13007_s15 + $0x648] sm:$0xf0] }
 0x564   : > { %5333 = vmatpush.bf16.msrb.mxu3 %v7907_v6  ;;  %v7995_v6 = vor.u32 %v8848_v63, %v7994_v60  ;;  %v8922_v60 = vld [vmem:[%s13007_s15 + $0x6dc] sm:$0xf]  ;;  %v8304_v63 = vld [vmem:[%s13007_s15 + $0x6f4] sm:$0xf0] }
 0x565   : > { %5347 = vmatpush.bf16.msrb.mxu1 %v8131_v7  ;;  %v8219_v7 = vor.u32 %v8904_v1, %v8218_v0  ;;  %v7883_v0 = vor.u32 %v8820_v47, %v7882_v46  ;;  %v8838_v46 = vld [vmem:[%s13007_s15 + $0x43c] sm:$0xf]  ;;  %v7968_v47 = vld [vmem:[%s13007_s15 + $0x454] sm:$0xf0] }
 0x567   : > { %5358 = vmatpush.bf16.msrb.mxu2 %v7547_v11  ;;  %5372 = vmatpush.bf16.msrb.mxu0 %v7771_v13  ;;  %v7859_v11 = vor.u32 %v8810_v37, %v7856_v4  ;;  %v8190_v13 = vld [vmem:[%s13007_s15 + $0x5f8] sm:$0xf]  ;;  %v8719_v37 = vld [vmem:[%s13007_s15 + $0x84] sm:$0xf]  ;;  %v7492_v4 = vld [vmem:[%s13007_s15 + $0x9c] sm:$0xf0] }
 0x568   : > { %5334 = vmatpush.bf16.msrb.mxu3 %v7879_v24  ;;  %v8191_v21 = vor.u32 %v8897_v14, %v8190_v13  ;;  %v7607_v24 = vor.u32 %v8747_v15, %v7604_v16  ;;  %v7495_v13 = vor.u32 %v8719_v37, %v7492_v4  ;;  %v8712_v15 = vld [vmem:[%s13007_s15 + $0x4c] sm:$0xf]  ;;  %v7464_v16 = vld [vmem:[%s13007_s15 + $0x64] sm:$0xf0]  ;;  %v7582_v37 = vld [vmem:[%s13007_s15 + $0x130] sm:$0xf] }
 0x569   : > { %5348 = vmatpush.bf16.msrb.mxu1 %v8103_v25  ;;  %v7831_v25 = vor.u32 %v8803_v18, %v7828_v19  ;;  %v8055_v18 = vor.u32 %v8859_v9, %v8052_v10  ;;  %v8744_v4 = vld [vmem:[%s13007_s15 + $0x148] sm:$0xf0]  ;;  %v7912_v10 = vld [vmem:[%s13007_s15 + $0x3e4] sm:$0xf0] }
 0x56a   : > { %v8824_v9 = vld [vmem:[%s13007_s15 + $0x3cc] sm:$0xf] }
 0x56b   : > { %5359 = vmatpush.bf16.msrb.mxu2 %v7519_v26  ;;  %5373 = vmatpush.bf16.msrb.mxu0 %v7743_v50  ;;  %v8162_v26 = vld [vmem:[%s13007_s15 + $0x5c0] sm:$0xf]  ;;  %v8890_v50 = vld [vmem:[%s13007_s15 + $0x5d8] sm:$0xf0] }
 0x56c   : > { %5383 = vmatpush.bf16.msra.mxu3 %v8079_v29  ;;  %5349 = vmatmul.bf16.vlgmr.msrb.gmra.mxu1 %v12015_v17  ;;  %v8796_v29 = vld [vmem:[%s13007_s15 + $0x2ec] sm:$0xf]  ;;  %v8163_v32 = vor.u32 %v8890_v50, %v8162_v26  ;;  %v7467_v26 = vor.u32 %v8712_v15, %v7464_v16  ;;  %v7554_v15 = vld [vmem:[%s13007_s15 + $0xf8] sm:$0xf]  ;;  %v8737_v16 = vld [vmem:[%s13007_s15 + $0x110] sm:$0xf0] }
 0x56d   : > { %5397 = vmatpush.bf16.msra.mxu1 %v8303_v30  ;;  %5335 = vmatmul.bf16.vlgmr.msrb.gmra.mxu3 %v12007_v12  ;;  %v7800_v30 = vld [vmem:[%s13007_s15 + $0x304] sm:$0xf0] }
 0x56e   : > { %v7803_v38 = vor.u32 %v8796_v29, %v7800_v30  ;;  %v8761_v29 = vld [vmem:[%s13007_s15 + $0x1d4] sm:$0xf]  ;;  %v8027_v30 = vor.u32 %v8852_v22, %v8024_v23  ;;  %v7884_v23 = vld [vmem:[%s13007_s15 + $0x3ac] sm:$0xf0] }
 0x56f   : > { %5360 = vmatpush.bf16.msrb.mxu2 %v7491_v39  ;;  %5374 = vmatpush.bf16.msrb.mxu0 %v7715_v54  ;;  %v8134_v39 = vld [vmem:[%s13007_s15 + $0x588] sm:$0xf]  ;;  %v8883_v54 = vld [vmem:[%s13007_s15 + $0x5a0] sm:$0xf0]  ;;  %v8817_v22 = vld [vmem:[%s13007_s15 + $0x394] sm:$0xf] }
 0x570   : > { %5384 = vmatpush.bf16.msra.mxu3 %v8051_v43  ;;  %v8789_v43 = vld [vmem:[%s13007_s15 + $0x2b4] sm:$0xf]  ;;  %v8135_v62 = vor.u32 %v8883_v54, %v8134_v39  ;;  %v7638_v39 = vld [vmem:[%s13007_s15 + $0x1a0] sm:$0xf]  ;;  %v8758_v54 = vld [vmem:[%s13007_s15 + $0x1b8] sm:$0xf0] }
 0x571   : > { %5398 = vmatpush.bf16.msra.mxu1 %v8275_v44  ;;  %v7772_v44 = vld [vmem:[%s13007_s15 + $0x2cc] sm:$0xf0] }
 0x573   : > { %5361 = vmatpush.bf16.msrb.mxu2 %v7463_v52  ;;  %5375 = vmatpush.bf16.msrb.mxu0 %v7687_v53  ;;  %v7775_v52 = vor.u32 %v8789_v43, %v7772_v44  ;;  %v8876_v53 = vld [vmem:[%s13007_s15 + $0x568] sm:$0xf0]  ;;  %v7439_v43 = vor.u32 %v8705_v27, %v7436_v28  ;;  %v7526_v27 = vld [vmem:[%s13007_s15 + $0xc0] sm:$0xf]  ;;  %v8730_v28 = vld [vmem:[%s13007_s15 + $0xd8] sm:$0xf0] }
 0x574   : > { %5385 = vmatpush.bf16.msra.mxu3 %v8023_v57  ;;  %v7744_v57 = vld [vmem:[%s13007_s15 + $0x294] sm:$0xf0]  ;;  %v8107_v1 = vor.u32 %v8876_v53, %v8106_v48  ;;  %v7639_v48 = vor.u32 %v8758_v54, %v7638_v39  ;;  %v12802_v54 = vld [vmem:[%s13008_s16] sm:$0x7f] }
 0x575   : > { %5399 = vmatpush.bf16.msra.mxu1 %v8247_v58  ;;  %v8866_v58 = vld [vmem:[%s13007_s15 + $0x51c] sm:$0xf]  ;;  %v7747_v3 = vor.u32 %v8782_v51, %v7744_v57  ;;  %v8192_v53 = vld [vmem:[%s13007_s15 + $0x614] sm:$0xf0]  ;;  %v7834_v51 = vld [vmem:[%s13007_s15 + $0x328] sm:$0xf] }
 0x576   : > { %v8807_v57 = vld [vmem:[%s13007_s15 + $0x340] sm:$0xf0] }
 0x577   : > { %5362 = vmatpush.bf16.msrb.mxu2 %v7435_v5  ;;  %5376 = vmatpush.bf16.msrb.mxu0 %v7659_v42  ;;  %v8083_v5 = vor.u32 %v8866_v58, %v8080_v59  ;;  %v8307_v42 = vor.u32 %v8922_v60, %v8304_v63  ;;  %v7971_v58 = vor.u32 %v8838_v46, %v7968_v47  ;;  %v8831_v60 = vld [vmem:[%s13007_s15 + $0x404] sm:$0xf]  ;;  %v7940_v63 = vld [vmem:[%s13007_s15 + $0x41c] sm:$0xf0]  ;;  %v7722_v46 = vld [vmem:[%s13007_s15 + $0x248] sm:$0xf] }
 0x578   : > { %5386 = vmatpush.bf16.msra.mxu3 %v7995_v6  ;;  %v8775_v6 = vld [vmem:[%s13007_s15 + $0x244] sm:$0xf] }
 0x579   : > { %5400 = vmatpush.bf16.msra.mxu1 %v8219_v7  ;;  %v7716_v7 = vld [vmem:[%s13007_s15 + $0x25c] sm:$0xf0]  ;;  %v8779_v47 = vld [vmem:[%s13007_s15 + $0x260] sm:$0xf0] }
 0x57a   : > { %5363 = vmatmul.bf16.vlgmr.msrb.gmra.mxu2 %v11941_v8  ;;  %5377 = vmatmul.bf16.vlgmr.msrb.gmra.mxu0 %v11949_v35  ;;  %v7719_v14 = vor.u32 %v8775_v6, %v7716_v7  ;;  %v7943_v6 = vor.u32 %v8831_v60, %v7940_v63 }
 0x57b   : > { %5411 = vmatpush.bf16.msra.mxu2 %v7635_v61  ;;  %5425 = vmatpush.bf16.msra.mxu0 %v7859_v11  ;;  %v8915_v61 = vld [vmem:[%s13007_s15 + $0x6a4] sm:$0xf]  ;;  %v8276_v11 = vld [vmem:[%s13007_s15 + $0x6bc] sm:$0xf0] }
 0x57c   : > { %5387 = vmatpush.bf16.msra.mxu3 %v7967_v20  ;;  %v8279_v19 = vor.u32 %v8915_v61, %v8276_v11  ;;  %v8768_v20 = vld [vmem:[%s13007_s15 + $0x20c] sm:$0xf]  ;;  %v7583_v61 = vor.u32 %v8744_v4, %v7582_v37  ;;  %v8254_v4 = vld [vmem:[%s13007_s15 + $0x670] sm:$0xf] }
 0x57d   : > { %5401 = vmatpush.bf16.msra.mxu1 %v8191_v21  ;;  %v7688_v21 = vld [vmem:[%s13007_s15 + $0x224] sm:$0xf0]  ;;  %v8856_v37 = vld [vmem:[%s13007_s15 + $0x4c8] sm:$0xf0] }
 0x57e   : > { %v7691_v50 = vor.u32 %v8768_v20, %v7688_v21  ;;  %v7915_v20 = vor.u32 %v8824_v9, %v7912_v10  ;;  %v7442_v10 = vld [vmem:[%s13007_s15 + $0x18] sm:$0xf] }
 0x57f   : > { %5412 = vmatpush.bf16.msra.mxu2 %v7607_v24  ;;  %5426 = vmatpush.bf16.msra.mxu0 %v7831_v25  ;;  %v8908_v24 = vld [vmem:[%s13007_s15 + $0x66c] sm:$0xf]  ;;  %v8248_v25 = vld [vmem:[%s13007_s15 + $0x684] sm:$0xf0] }
 0x580   : > { %5388 = vmatpush.bf16.msra.mxu3 %v7939_v31  ;;  %v8251_v31 = vor.u32 %v8908_v24, %v8248_v25  ;;  %v8873_v24 = vld [vmem:[%s13007_s15 + $0x554] sm:$0xf]  ;;  %v7555_v25 = vor.u32 %v8737_v16, %v7554_v15  ;;  %v8002_v16 = vld [vmem:[%s13007_s15 + $0x478] sm:$0xf] }
 0x581   : > { %5402 = vmatpush.bf16.msra.mxu1 %v8163_v32  ;;  %v7660_v32 = vld [vmem:[%s13007_s15 + $0x1ec] sm:$0xf0]  ;;  %v8765_v15 = vld [vmem:[%s13007_s15 + $0x1f0] sm:$0xf0] }
 0x582   : > { %v7663_v44 = vor.u32 %v8761_v29, %v7660_v32  ;;  %v8086_v32 = vld [vmem:[%s13007_s15 + $0x520] sm:$0xf] }
 0x583   : > { %5413 = vmatpush.bf16.msra.mxu2 %v7579_v36  ;;  %5427 = vmatpush.bf16.msra.mxu0 %v7803_v38  ;;  %v8901_v36 = vld [vmem:[%s13007_s15 + $0x634] sm:$0xf]  ;;  %v8220_v38 = vld [vmem:[%s13007_s15 + $0x64c] sm:$0xf0] }
 0x584   : > { %5389 = vmatpush.bf16.msra.mxu3 %v7911_v45  ;;  %v7999_v45 = vor.u32 %v8845_v33, %v7996_v34  ;;  %v8870_v33 = vld [vmem:[%s13007_s15 + $0x538] sm:$0xf0]  ;;  %v8310_v34 = vld [vmem:[%s13007_s15 + $0x6e0] sm:$0xf] }
 0x585   : > { %5403 = vmatpush.bf16.msra.mxu1 %v8135_v62  ;;  %v8223_v62 = vor.u32 %v8901_v36, %v8220_v38  ;;  %v8926_v36 = vld [vmem:[%s13007_s15 + $0x6f8] sm:$0xf0]  ;;  %v7887_v38 = vor.u32 %v8817_v22, %v7884_v23 }
 0x587   : > { %5414 = vmatpush.bf16.msra.mxu2 %v7551_v49  ;;  %5428 = vmatpush.bf16.msra.mxu0 %v7775_v52  ;;  %v7863_v49 = vor.u32 %v8814_v41, %v7862_v40  ;;  %v8894_v52 = vld [vmem:[%s13007_s15 + $0x5fc] sm:$0xf]  ;;  %v7527_v40 = vor.u32 %v8730_v28, %v7526_v27  ;;  %v7974_v27 = vld [vmem:[%s13007_s15 + $0x440] sm:$0xf] }
 0x588   : > { %5390 = vmatpush.bf16.msra.mxu3 %v7883_v0  ;;  %v8195_v59 = vor.u32 %v8894_v52, %v8192_v53  ;;  %v7611_v0 = vor.u32 %v8751_v56, %v7610_v55  ;;  %v8282_v52 = vld [vmem:[%s13007_s15 + $0x6a8] sm:$0xf]  ;;  %v8919_v53 = vld [vmem:[%s13007_s15 + $0x6c0] sm:$0xf0]  ;;  %v3965_v56 = vperm.slane %v12802_v54, 0 }
 0x589   : > { %5404 = vmatpush.bf16.msra.mxu1 %v8107_v1  ;;  %v7835_v1 = vor.u32 %v8807_v57, %v7834_v51  ;;  %v7723_v57 = vor.u32 %v8779_v47, %v7722_v46  ;;  %v8283_v63 = vor.u32 %v8919_v53, %v8282_v52  ;;  %v3966_v46 = vperm.slane %v12802_v54, 1  ;;  %v7918_v52 = vld [vmem:[%s13007_s15 + $0x3d0] sm:$0xf] }
 0x58b   : > { %5415 = vmatpush.bf16.msra.mxu2 %v7523_v2  ;;  %5429 = vmatpush.bf16.msra.mxu0 %v7747_v3  ;;  %v8887_v2 = vld [vmem:[%s13007_s15 + $0x5c4] sm:$0xf]  ;;  %v8164_v3 = vld [vmem:[%s13007_s15 + $0x5dc] sm:$0xf0] }
 0x58c   : > { %5439 = vmatpush.bf16.msrb.mxu3 %v8083_v5  ;;  %5405 = vmatmul.bf16.vlgmr.msra.gmra.mxu1 %v12015_v17  ;;  %v7806_v5 = vld [vmem:[%s13007_s15 + $0x2f0] sm:$0xf]  ;;  %v8167_v7 = vor.u32 %v8887_v2, %v8164_v3 }
 0x58d   : > { %5453 = vmatpush.bf16.msrb.mxu1 %v8307_v42  ;;  %5391 = vmatmul.bf16.vlgmr.msra.gmra.mxu3 %v12007_v12  ;;  %v8800_v42 = vld [vmem:[%s13007_s15 + $0x308] sm:$0xf0]  ;;  %v8030_v2 = vld [vmem:[%s13007_s15 + $0x4b0] sm:$0xf] }
 0x58e   : > { %v7807_v11 = vor.u32 %v8800_v42, %v7806_v5  ;;  %v8912_v5 = vld [vmem:[%s13007_s15 + $0x688] sm:$0xf0] }
 0x58f   : > { %5416 = vmatpush.bf16.msra.mxu2 %v7495_v13  ;;  %5430 = vmatpush.bf16.msra.mxu0 %v7719_v14  ;;  %v8880_v13 = vld [vmem:[%s13007_s15 + $0x58c] sm:$0xf]  ;;  %v8136_v14 = vld [vmem:[%s13007_s15 + $0x5a4] sm:$0xf0] }
 0x590   : > { %5440 = vmatpush.bf16.msrb.mxu3 %v8055_v18  ;;  %v7778_v18 = vld [vmem:[%s13007_s15 + $0x2b8] sm:$0xf]  ;;  %v8139_v21 = vor.u32 %v8880_v13, %v8136_v14  ;;  %v8255_v13 = vor.u32 %v8912_v5, %v8254_v4 }
 0x591   : > { %5454 = vmatpush.bf16.msrb.mxu1 %v8279_v19  ;;  %v8793_v19 = vld [vmem:[%s13007_s15 + $0x2d0] sm:$0xf0]  ;;  %v7666_v14 = vld [vmem:[%s13007_s15 + $0x1d8] sm:$0xf] }
 0x592   : > { %v7667_v22 = vor.u32 %v8765_v15, %v7666_v14 }
 0x593   : > { %5417 = vmatpush.bf16.msra.mxu2 %v7467_v26  ;;  %5431 = vmatpush.bf16.msra.mxu0 %v7691_v50  ;;  %v7779_v26 = vor.u32 %v8793_v19, %v7778_v18  ;;  %v8108_v50 = vld [vmem:[%s13007_s15 + $0x56c] sm:$0xf0]  ;;  %v8849_v18 = vld [vmem:[%s13007_s15 + $0x490] sm:$0xf0]  ;;  %v8226_v19 = vld [vmem:[%s13007_s15 + $0x638] sm:$0xf] }
 0x594   : > { %5441 = vmatpush.bf16.msrb.mxu3 %v8027_v30  ;;  %v7750_v30 = vld [vmem:[%s13007_s15 + $0x280] sm:$0xf]  ;;  %v8111_v39 = vor.u32 %v8873_v24, %v8108_v50 }
 0x595   : > { %5455 = vmatpush.bf16.msrb.mxu1 %v8251_v31  ;;  %v8786_v31 = vld [vmem:[%s13007_s15 + $0x298] sm:$0xf0] }
 0x596   : > { %v7751_v41 = vor.u32 %v8786_v31, %v7750_v30  ;;  %v8198_v30 = vld [vmem:[%s13007_s15 + $0x600] sm:$0xf]  ;;  %v8898_v31 = vld [vmem:[%s13007_s15 + $0x618] sm:$0xf0] }
 0x597   : > { %5418 = vmatpush.bf16.msra.mxu2 %v7439_v43  ;;  %5432 = vmatpush.bf16.msra.mxu0 %v7663_v44  ;;  %v7498_v43 = vld [vmem:[%s13007_s15 + $0x88] sm:$0xf]  ;;  %v8723_v44 = vld [vmem:[%s13007_s15 + $0xa0] sm:$0xf0]  ;;  %v5154_v55 = vpop.f32.mrf.mxu0 }
 0x598   : > { %5442 = vmatpush.bf16.msrb.mxu3 %v7999_v45  ;;  %v8087_v45 = vor.u32 %v8870_v33, %v8086_v32  ;;  %v7499_v51 = vor.u32 %v8723_v44, %v7498_v43  ;;  %v8170_v44 = vld [vmem:[%s13007_s15 + $0x5c8] sm:$0xf] }
 0x599   : > { %5456 = vmatpush.bf16.msrb.mxu1 %v8223_v62  ;;  %v8311_v62 = vor.u32 %v8926_v36, %v8310_v34 }
 0x59a   : > { %5419 = vmatmul.bf16.vlgmr.msra.gmra.mxu2 %v11941_v8  ;;  %5433 = vmatmul.bf16.vlgmr.msra.gmra.mxu0 %v11949_v35 }
 0x59b   : > { %5467 = vmatpush.bf16.msrb.mxu2 %v7639_v48  ;;  %5481 = vmatpush.bf16.msrb.mxu0 %v7863_v49  ;;  %v8058_v48 = vld [vmem:[%s13007_s15 + $0x4e8] sm:$0xf]  ;;  %v8863_v49 = vld [vmem:[%s13007_s15 + $0x500] sm:$0xf0] }
 0x59c   : > { %5443 = vmatpush.bf16.msrb.mxu3 %v7971_v58  ;;  %v5140_v29 = vpop.f32.mrf.mxu2  ;;  %v7470_v58 = vld [vmem:[%s13007_s15 + $0x50] sm:$0xf]  ;;  %v8059_v60 = vor.u32 %v8863_v49, %v8058_v48 }
 0x59d   : > { %5457 = vmatpush.bf16.msrb.mxu1 %v8195_v59  ;;  %v8716_v59 = vld [vmem:[%s13007_s15 + $0x68] sm:$0xf0]  ;;  %v5141_v42 = vadd.f32 %v5140_v29, %v3965_v56  ;;  %v8842_v29 = vld [vmem:[%s13007_s15 + $0x458] sm:$0xf0] }
 0x59e   : > { %v7975_v36 = vor.u32 %v8842_v29, %v7974_v27 }
 0x59f   : > { %5468 = vmatpush.bf16.msrb.mxu2 %v7611_v0  ;;  %5482 = vmatpush.bf16.msrb.mxu0 %v7835_v1  ;;  %v7694_v0 = vld [vmem:[%s13007_s15 + $0x210] sm:$0xf]  ;;  %v8772_v1 = vld [vmem:[%s13007_s15 + $0x228] sm:$0xf0]  ;;  %v5155_v23 = vadd.f32 %v5154_v55, %v5141_v42  ;;  %v5156_v24 = vpop.f32.mrf.mxu0 }
 0x5a0   : > { %5444 = vmatpush.bf16.msrb.mxu3 %v7943_v6  ;;  %v7471_v6 = vor.u32 %v8716_v59, %v7470_v58  ;;  %v8884_v55 = vld [vmem:[%s13007_s15 + $0x5a8] sm:$0xf0] }
 0x5a1   : > { %5458 = vmatpush.bf16.msrb.mxu1 %v8167_v7  ;;  %v7695_v7 = vor.u32 %v8772_v1, %v7694_v0 }
 0x5a3   : > { %5469 = vmatpush.bf16.msrb.mxu2 %v7583_v61  ;;  %5483 = vmatpush.bf16.msrb.mxu0 %v7807_v11  ;;  %v8709_v61 = vld [vmem:[%s13007_s15 + $0x30] sm:$0xf0]  ;;  %v8031_v11 = vor.u32 %v8856_v37, %v8030_v2 }
 0x5a4   : > { %5445 = vmatpush.bf16.msrb.mxu3 %v7915_v20  ;;  %v5142_v3 = vpop.f32.mrf.mxu2  ;;  %v8905_v20 = vld [vmem:[%s13007_s15 + $0x650] sm:$0xf0] }
 0x5a5   : > { %5459 = vmatpush.bf16.msrb.mxu1 %v8139_v21  ;;  %v7443_v21 = vor.u32 %v8709_v61, %v7442_v10  ;;  %v5143_v32 = vadd.f32 %v5142_v3, %v3965_v56  ;;  %v8114_v3 = vld [vmem:[%s13007_s15 + $0x558] sm:$0xf]  ;;  %v8877_v37 = vld [vmem:[%s13007_s15 + $0x570] sm:$0xf0] }
 0x5a7   : > { %5470 = vmatpush.bf16.msrb.mxu2 %v7555_v25  ;;  %5484 = vmatpush.bf16.msrb.mxu0 %v7779_v26  ;;  %v5182_v9 = vpop.f32.mrf.mxu1  ;;  %v8003_v25 = vor.u32 %v8849_v18, %v8002_v16  ;;  %v8227_v26 = vor.u32 %v8905_v20, %v8226_v19  ;;  %v5210_v56 = vpop.f32.mrf.mxu0 }
 0x5a8   : > { %5446 = vmatpush.bf16.msrb.mxu3 %v7887_v38  ;;  %v8199_v38 = vor.u32 %v8898_v31, %v8198_v30 }
 0x5a9   : > { %5460 = vmatpush.bf16.msrb.mxu1 %v8111_v39 }
 0x5ab   : > { %5471 = vmatpush.bf16.msrb.mxu2 %v7527_v40  ;;  %5485 = vmatpush.bf16.msrb.mxu0 %v7751_v41  ;;  %v7946_v40 = vld [vmem:[%s13007_s15 + $0x408] sm:$0xf]  ;;  %v8835_v41 = vld [vmem:[%s13007_s15 + $0x420] sm:$0xf0] }
 0x5ac   : > { %5495 = vmatpush.bf16.msra.mxu3 %v8087_v45  ;;  %5461 = vmatmul.bf16.vlgmr.msrb.gmra.mxu1 %v12015_v17  ;;  %v5168_v50 = vpop.f32.mrf.mxu3  ;;  %v5196_v34 = vpop.f32.mrf.mxu2  ;;  %v8891_v45 = vld [vmem:[%s13007_s15 + $0x5e0] sm:$0xf0]  ;;  %v7947_v47 = vor.u32 %v8835_v41, %v7946_v40 }
 0x5ad   : > { %5509 = vmatpush.bf16.msra.mxu1 %v8311_v62  ;;  %5447 = vmatmul.bf16.vlgmr.msrb.gmra.mxu3 %v12007_v12  ;;  %v5169_v28 = vadd.f32 %v5168_v50, %v5155_v23  ;;  %v5157_v62 = vadd.f32 %v5156_v24, %v5143_v32  ;;  %v8171_v48 = vor.u32 %v8891_v45, %v8170_v44  ;;  %v3967_v24 = vperm.slane %v12802_v54, 2 }
 0x5af   : > { %5472 = vmatpush.bf16.msrb.mxu2 %v7499_v51  ;;  %5486 = vmatpush.bf16.msrb.mxu0 %v7723_v57  ;;  %v5183_v33 = vadd.f32 %v5182_v9, %v5169_v28  ;;  %v5184_v39 = vpop.f32.mrf.mxu1  ;;  %v5197_v57 = vadd.f32 %v5196_v34, %v3966_v46  ;;  %v5212_v61 = vpop.f32.mrf.mxu0 }
 0x5b0   : > { %5496 = vmatpush.bf16.msra.mxu3 %v8059_v60  ;;  %v7890_v60 = vld [vmem:[%s13007_s15 + $0x398] sm:$0xf] }
 0x5b1   : > { %5510 = vmatpush.bf16.msra.mxu1 %v8283_v63  ;;  %v8312_v43 = vmul.f32 -1.442695, %v5183_v33  ;;  %v8821_v63 = vld [vmem:[%s13007_s15 + $0x3b0] sm:$0xf0] }
 0x5b2   : > { %v7891_v42 = vor.u32 %v8821_v63, %v7890_v60 }
 0x5b3   : > { %5473 = vmatpush.bf16.msrb.mxu2 %v7471_v6  ;;  %5487 = vmatpush.bf16.msrb.mxu0 %v7695_v7  ;;  %9034 = vpow2.f32 %v8312_v43  ;;  %v8115_v6 = vor.u32 %v8877_v37, %v8114_v3  ;;  %v5211_v7 = vadd.f32 %v5210_v56, %v5197_v57 }
 0x5b4   : > { %5497 = vmatpush.bf16.msra.mxu3 %v8031_v11  ;;  %v5170_v49 = vpop.f32.mrf.mxu3  ;;  %v5198_v2 = vpop.f32.mrf.mxu2 }
 0x5b5   : > { %5511 = vmatpush.bf16.msra.mxu1 %v8255_v13  ;;  %v5171_v53 = vadd.f32 %v5170_v49, %v5157_v62  ;;  %v5199_v11 = vadd.f32 %v5198_v2, %v3966_v46 }
 0x5b7   : > { %5474 = vmatpush.bf16.msrb.mxu2 %v7443_v21  ;;  %5488 = vmatpush.bf16.msrb.mxu0 %v7667_v22  ;;  %v5185_v51 = vadd.f32 %v5184_v39, %v5171_v53  ;;  %v5238_v5 = vpop.f32.mrf.mxu1  ;;  %v5213_v22 = vadd.f32 %v5212_v61, %v5199_v11 }
 0x5b8   : > { %5498 = vmatpush.bf16.msra.mxu3 %v8003_v25 }
 0x5b9   : > { %5512 = vmatpush.bf16.msra.mxu1 %v8227_v26  ;;  %v9035_v0 = vpop.eup %9034  ;;  %v8319_v1 = vmul.f32 -1.442695, %v5185_v51  ;;  %v5266_v32 = vpop.f32.mrf.mxu0 }
 0x5ba   : > { %5475 = vmatmul.bf16.vlgmr.msrb.gmra.mxu2 %v11941_v8  ;;  %5489 = vmatmul.bf16.vlgmr.msrb.gmra.mxu0 %v11949_v35  ;;  %v8828_v8 = vld [vmem:[%s13007_s15 + $0x3e8] sm:$0xf0]  ;;  %v8142_v35 = vld [vmem:[%s13007_s15 + $0x590] sm:$0xf]  ;;  %v5565_v4 = vadd.f32 1.0, %v9035_v0 }
 0x5bb   : > { %v7919_v58 = vor.u32 %v8828_v8, %v7918_v52  ;;  %v8143_v59 = vor.u32 %v8884_v55, %v8142_v35  ;;  %9036 = vpow2.f32 %v8319_v1 }
 0x5bc   : > { %5499 = vmatpush.bf16.msra.mxu3 %v7975_v36  ;;  %9038 = vrcp.f32 %v5565_v4  ;;  %v5224_v9 = vpop.f32.mrf.mxu3  ;;  %v5590_v26 = vand.u32 2147483648, %v5565_v4  ;;  %v5588_v28 = vand.u32 2147483647, %v5565_v4  ;;  %vm5584_vm2 = vweird.f32 %v5565_v4 }
 0x5bd   : > { %5513 = vmatpush.bf16.msra.mxu1 %v8199_v38  ;;  %v5225_v10 = vadd.f32 %v5224_v9, %v5211_v7  ;;  %v5252_v20 = vpop.f32.mrf.mxu2 }
 0x5be   : > { %v5591_v31 = vor.u32 1.1754944e-38, %v5590_v26  ;;  %vm5589_vm4 = vcmp.eq.f32.partialorder %v5588_v28, 8.507059e+37  ;;  %v3968_v26 = vperm.slane %v12802_v54, 3 }
 0x5bf   : > { %v5239_v13 = vadd.f32 %v5238_v5, %v5225_v10  ;;  %v5240_v21 = vpop.f32.mrf.mxu1 }
 0x5c0   : > { %5500 = vmatpush.bf16.msra.mxu3 %v7947_v47 }
 0x5c1   : > { %5514 = vmatpush.bf16.msra.mxu1 %v8171_v48  ;;  %v9037_v14 = vpop.eup %9036  ;;  %v8313_v18 = vmul.f32 -1.442695, %v5239_v13  ;;  %v5268_v60 = vpop.f32.mrf.mxu0 }
 0x5c2   : > { %v9039_v15 = vpop.eup %9038  ;;  %v5572_v16 = vadd.f32 1.0, %v9037_v14 }
 0x5c3   : > { %v5580_v19 = vmul.f32 %v9039_v15, %v5565_v4  ;;  %vm5585_vm1 = vweird.f32 %v9039_v15 }
 0x5c4   : > { %5501 = vmatpush.bf16.msra.mxu3 %v7919_v58  ;;  %9040 = vrcp.f32 %v5572_v16  ;;  %v5226_v25 = vpop.f32.mrf.mxu3  ;;  %vm5586_vm3 = vmor %vm5584_vm2, %vm5585_vm1  ;;  %v5695_v45 = vand.u32 2147483648, %v5572_v16  ;;  %v5693_v48 = vand.u32 2147483647, %v5572_v16  ;;  %vm5689_vm6 = vweird.f32 %v5572_v16 }
 0x5c5   : > { %5515 = vmatpush.bf16.msra.mxu1 %v8143_v59  ;;  %v5581_v23 = vsub.f32 1.0, %v5580_v19  ;;  %9042 = vpow2.f32 %v8313_v18  ;;  %v5227_v50 = vadd.f32 %v5226_v25, %v5213_v22  ;;  %v5254_v43 = vpop.f32.mrf.mxu2 }
 0x5c6   : > { %v5255_v53 = vadd.f32 %v5254_v43, %v3967_v24  ;;  %v5696_v55 = vor.u32 1.1754944e-38, %v5695_v45  ;;  %vm5694_vm8 = vcmp.eq.f32.partialorder %v5693_v48, 8.507059e+37 }
 0x5c7   : > { %v5582_v27 = vmul.f32 %v9039_v15, %v5581_v23  ;;  %v5241_v29 = vadd.f32 %v5240_v21, %v5227_v50 }
 0x5c8   : > { %5502 = vmatpush.bf16.msra.mxu3 %v7891_v42  ;;  %v5269_v0 = vadd.f32 %v5268_v60, %v5255_v53 }
 0x5c9   : > { %5516 = vmatpush.bf16.msra.mxu1 %v8115_v6  ;;  %v5583_v30 = vadd.f32 %v9039_v15, %v5582_v27  ;;  %v8320_v33 = vmul.f32 -1.442695, %v5241_v29  ;;  %v5294_v62 = vpop.f32.mrf.mxu1 }
 0x5cb   : > { %5503 = vmatmul.bf16.vlgmr.msra.gmra.mxu3 %v12007_v12  ;;  %v5253_v12 = vadd.f32 %v5252_v20, %v3967_v24  ;;  %v5587_v36 = vsel %vm5586_vm3, %v9039_v15, %v5583_v30  ;;  %9044 = vpow2.f32 %v8320_v33 }
 0x5cc   : > { %5517 = vmatmul.bf16.vlgmr.msra.gmra.mxu1 %v12015_v17  ;;  %v9041_v17 = vpop.eup %9040  ;;  %v5592_v39 = vsel %vm5589_vm4, %v5591_v31, %v5587_v36 }
 0x5cd   : > { %v9043_v34 = vpop.eup %9042  ;;  %v5685_v38 = vmul.f32 %v9041_v17, %v5572_v16  ;;  %5789 = vst [vmem:[%s12936_s18] sm:$0xff] %v5592_v39  ;;  %v5267_v44 = vadd.f32 %v5266_v32, %v5253_v12  ;;  %vm5690_vm5 = vweird.f32 %v9041_v17 }
 0x5ce   : > { %v5566_v40 = vadd.f32 1.0, %v9043_v34  ;;  %vm5691_vm7 = vmor %vm5689_vm6, %vm5690_vm5 }
 0x5cf   : > { %v5686_v41 = vsub.f32 1.0, %v5685_v38 }
 0x5d0   : > { %9046 = vrcp.f32 %v5566_v40  ;;  %v5280_v46 = vpop.f32.mrf.mxu3  ;;  %v5605_v37 = vand.u32 2147483648, %v5566_v40  ;;  %v5603_v42 = vand.u32 2147483647, %v5566_v40  ;;  %vm5599_vm10 = vweird.f32 %v5566_v40 }
 0x5d1   : > { %v5687_v47 = vmul.f32 %v9041_v17, %v5686_v41  ;;  %v5281_v49 = vadd.f32 %v5280_v46, %v5267_v44  ;;  %v9045_v35 = vpop.eup %9044  ;;  %v5296_v4 = vpop.f32.mrf.mxu1 }
 0x5d2   : > { %v5573_v51 = vadd.f32 1.0, %v9045_v35  ;;  %v5606_v11 = vor.u32 1.1754944e-38, %v5605_v37  ;;  %vm5604_vm12 = vcmp.eq.f32.partialorder %v5603_v42, 8.507059e+37 }
 0x5d3   : > { %v5688_v52 = vadd.f32 %v9041_v17, %v5687_v47  ;;  %v5295_v8 = vadd.f32 %v5294_v62, %v5281_v49 }
 0x5d4   : > { %9048 = vrcp.f32 %v5573_v51  ;;  %v5710_v19 = vand.u32 2147483648, %v5573_v51  ;;  %v5708_v21 = vand.u32 2147483647, %v5573_v51  ;;  %vm5704_vm14 = vweird.f32 %v5573_v51 }
 0x5d5   : > { %v5692_v56 = vsel %vm5691_vm7, %v9041_v17, %v5688_v52  ;;  %v8314_v57 = vmul.f32 -1.442695, %v5295_v8 }
 0x5d6   : > { %v9047_v58 = vpop.eup %9046  ;;  %v5697_v59 = vsel %vm5694_vm8, %v5696_v55, %v5692_v56  ;;  %v5711_v25 = vor.u32 1.1754944e-38, %v5710_v19  ;;  %vm5709_vm1 = vcmp.eq.f32.partialorder %v5708_v21, 8.507059e+37 }
 0x5d7   : > { %5796 = vst [vmem:[%s12936_s18 + $0x38] sm:$0xff] %v5697_v59  ;;  %v5595_v63 = vmul.f32 %v9047_v58, %v5566_v40  ;;  %9050 = vpow2.f32 %v8314_v57  ;;  %vm5600_vm9 = vweird.f32 %v9047_v58  ;;  %v5322_v31 = vpop.f32.mrf.mxu0 }
 0x5d8   : > { %v5282_v1 = vpop.f32.mrf.mxu3  ;;  %vm5601_vm11 = vmor %vm5599_vm10, %vm5600_vm9 }
 0x5d9   : > { %v5596_v2 = vsub.f32 1.0, %v5595_v63  ;;  %v5283_v3 = vadd.f32 %v5282_v1, %v5269_v0 }
 0x5da   : > { %v9049_v7 = vpop.eup %9048 }
 0x5db   : > { %v5597_v5 = vmul.f32 %v9047_v58, %v5596_v2  ;;  %v5297_v6 = vadd.f32 %v5296_v4, %v5283_v3  ;;  %v5700_v13 = vmul.f32 %v9049_v7, %v5573_v51  ;;  %vm5705_vm13 = vweird.f32 %v9049_v7 }
 0x5dc   : > { %vm5706_vm15 = vmor %vm5704_vm14, %vm5705_vm13 }
 0x5dd   : > { %v5598_v9 = vadd.f32 %v9047_v58, %v5597_v5  ;;  %v8321_v10 = vmul.f32 -1.442695, %v5297_v6  ;;  %v9051_v61 = vpop.eup %9050  ;;  %v5701_v18 = vsub.f32 1.0, %v5700_v13  ;;  %v5308_v22 = vpop.f32.mrf.mxu2  ;;  %v3969_v6 = vperm.slane %v12802_v54, 4 }
 0x5de   : > { %v5567_v15 = vadd.f32 1.0, %v9051_v61  ;;  %v5309_v12 = vadd.f32 %v5308_v22, %v3968_v26 }
 0x5df   : > { %v5602_v14 = vsel %vm5601_vm11, %v9047_v58, %v5598_v9  ;;  %9052 = vpow2.f32 %v8321_v10  ;;  %v5702_v20 = vmul.f32 %v9049_v7, %v5701_v18  ;;  %v5324_v56 = vpop.f32.mrf.mxu0 }
 0x5e0   : > { %v5607_v16 = vsel %vm5604_vm12, %v5606_v11, %v5602_v14  ;;  %9054 = vrcp.f32 %v5567_v15  ;;  %v5620_v32 = vand.u32 2147483648, %v5567_v15  ;;  %v5618_v34 = vand.u32 2147483647, %v5567_v15 }
 0x5e1   : > { %5790 = vst [vmem:[%s12936_s18 + $0x8] sm:$0xff] %v5607_v16  ;;  %v5703_v23 = vadd.f32 %v9049_v7, %v5702_v20  ;;  %v5323_v38 = vadd.f32 %v5322_v31, %v5309_v12  ;;  %vm5614_vm3 = vweird.f32 %v5567_v15 }
 0x5e2   : > { %v5621_v44 = vor.u32 1.1754944e-38, %v5620_v32  ;;  %vm5619_vm5 = vcmp.eq.f32.partialorder %v5618_v34, 8.507059e+37 }
 0x5e3   : > { %v5707_v50 = vsel %vm5706_vm15, %v9049_v7, %v5703_v23 }
 0x5e4   : > { %v5712_v29 = vsel %vm5709_vm1, %v5711_v25, %v5707_v50 }
 0x5e5   : > { %v9053_v24 = vpop.eup %9052  ;;  %5797 = vst [vmem:[%s12936_s18 + $0x40] sm:$0xff] %v5712_v29  ;;  %v5310_v36 = vpop.f32.mrf.mxu2 }
 0x5e6   : > { %v5574_v27 = vadd.f32 1.0, %v9053_v24  ;;  %v9055_v28 = vpop.eup %9054  ;;  %v5311_v49 = vadd.f32 %v5310_v36, %v3968_v26 }
 0x5e7   : > { %v5610_v30 = vmul.f32 %v9055_v28, %v5567_v15  ;;  %vm5615_vm2 = vweird.f32 %v9055_v28 }
 0x5e8   : > { %9056 = vrcp.f32 %v5574_v27  ;;  %vm5616_vm4 = vmor %vm5614_vm3, %vm5615_vm2  ;;  %v5725_v53 = vand.u32 2147483648, %v5574_v27  ;;  %v5723_v35 = vand.u32 2147483647, %v5574_v27  ;;  %vm5719_vm7 = vweird.f32 %v5574_v27 }
 0x5e9   : > { %v5611_v17 = vsub.f32 1.0, %v5610_v30  ;;  %v5350_v41 = vpop.f32.mrf.mxu1  ;;  %v5325_v57 = vadd.f32 %v5324_v56, %v5311_v49 }
 0x5ea   : > { %v5726_v58 = vor.u32 1.1754944e-38, %v5725_v53  ;;  %vm5724_vm9 = vcmp.eq.f32.partialorder %v5723_v35, 8.507059e+37 }
 0x5eb   : > { %v5612_v33 = vmul.f32 %v9055_v28, %v5611_v17 }
 0x5ed   : > { %v5613_v40 = vadd.f32 %v9055_v28, %v5612_v33 }
 0x5ee   : > { %v9057_v39 = vpop.eup %9056 }
 0x5ef   : > { %v5715_v45 = vmul.f32 %v9057_v39, %v5574_v27  ;;  %v5617_v46 = vsel %vm5616_vm4, %v9055_v28, %v5613_v40  ;;  %vm5720_vm6 = vweird.f32 %v9057_v39 }
 0x5f0   : > { %v5336_v43 = vpop.f32.mrf.mxu3  ;;  %v5622_v47 = vsel %vm5619_vm5, %v5621_v44, %v5617_v46  ;;  %vm5721_vm8 = vmor %vm5719_vm7, %vm5720_vm6 }
 0x5f1   : > { %v5337_v62 = vadd.f32 %v5336_v43, %v5323_v38  ;;  %v5716_v48 = vsub.f32 1.0, %v5715_v45  ;;  %5791 = vst [vmem:[%s12936_s18 + $0x10] sm:$0xff] %v5622_v47  ;;  %v5352_v1 = vpop.f32.mrf.mxu1 }
 0x5f3   : > { %v5351_v52 = vadd.f32 %v5350_v41, %v5337_v62  ;;  %v5717_v8 = vmul.f32 %v9057_v39, %v5716_v48 }
 0x5f5   : > { %v8315_v55 = vmul.f32 -1.442695, %v5351_v52  ;;  %v5718_v51 = vadd.f32 %v9057_v39, %v5717_v8  ;;  %v3970_v52 = vperm.slane %v12802_v54, 5 }
 0x5f7   : > { %9058 = vpow2.f32 %v8315_v55  ;;  %v5722_v60 = vsel %vm5721_vm8, %v9057_v39, %v5718_v51  ;;  %v5378_v14 = vpop.f32.mrf.mxu0 }
 0x5f8   : > { %v5338_v59 = vpop.f32.mrf.mxu3  ;;  %v5727_v0 = vsel %vm5724_vm9, %v5726_v58, %v5722_v60 }
 0x5f9   : > { %v5339_v63 = vadd.f32 %v5338_v59, %v5325_v57  ;;  %5798 = vst [vmem:[%s12936_s18 + $0x48] sm:$0xff] %v5727_v0 }
 0x5fb   : > { %v5353_v2 = vadd.f32 %v5352_v1, %v5339_v63 }
 0x5fd   : > { %v9059_v3 = vpop.eup %9058  ;;  %v8322_v37 = vmul.f32 -1.442695, %v5353_v2  ;;  %v5364_v5 = vpop.f32.mrf.mxu2 }
 0x5fe   : > { %v5568_v4 = vadd.f32 1.0, %v9059_v3  ;;  %v5365_v11 = vadd.f32 %v5364_v5, %v3969_v6 }
 0x5ff   : > { %9060 = vpow2.f32 %v8322_v37  ;;  %v5380_v33 = vpop.f32.mrf.mxu0 }
 0x600   : > { %9062 = vrcp.f32 %v5568_v4  ;;  %v5635_v13 = vand.u32 2147483648, %v5568_v4  ;;  %v5633_v16 = vand.u32 2147483647, %v5568_v4  ;;  %vm5629_vm11 = vweird.f32 %v5568_v4 }
 0x601   : > { %v5379_v20 = vadd.f32 %v5378_v14, %v5365_v11 }
 0x602   : > { %v5636_v22 = vor.u32 1.1754944e-38, %v5635_v13  ;;  %vm5634_vm13 = vcmp.eq.f32.partialorder %v5633_v16, 8.507059e+37 }
 0x605   : > { %v9061_v42 = vpop.eup %9060  ;;  %v5366_v19 = vpop.f32.mrf.mxu2 }
 0x606   : > { %v9063_v7 = vpop.eup %9062  ;;  %v5575_v9 = vadd.f32 1.0, %v9061_v42  ;;  %v5367_v29 = vadd.f32 %v5366_v19, %v3969_v6 }
 0x607   : > { %v5625_v10 = vmul.f32 %v9063_v7, %v5568_v4  ;;  %vm5630_vm10 = vweird.f32 %v9063_v7 }
 0x608   : > { %9064 = vrcp.f32 %v5575_v9  ;;  %vm5631_vm12 = vmor %vm5629_vm11, %vm5630_vm10  ;;  %v5740_v12 = vand.u32 2147483648, %v5575_v9  ;;  %v5738_v31 = vand.u32 2147483647, %v5575_v9  ;;  %vm5734_vm15 = vweird.f32 %v5575_v9 }
 0x609   : > { %v5626_v61 = vsub.f32 1.0, %v5625_v10  ;;  %v5406_v23 = vpop.f32.mrf.mxu1  ;;  %v5381_v36 = vadd.f32 %v5380_v33, %v5367_v29 }
 0x60a   : > { %v5741_v38 = vor.u32 1.1754944e-38, %v5740_v12  ;;  %vm5739_vm2 = vcmp.eq.f32.partialorder %v5738_v31, 8.507059e+37 }
 0x60b   : > { %v5627_v15 = vmul.f32 %v9063_v7, %v5626_v61 }
 0x60d   : > { %v5628_v18 = vadd.f32 %v9063_v7, %v5627_v15 }
 0x60e   : > { %v9065_v21 = vpop.eup %9064 }
 0x60f   : > { %v5632_v25 = vsel %vm5631_vm12, %v9063_v7, %v5628_v18  ;;  %v5730_v26 = vmul.f32 %v9065_v21, %v5575_v9  ;;  %vm5735_vm14 = vweird.f32 %v9065_v21 }
 0x610   : > { %v5392_v24 = vpop.f32.mrf.mxu3  ;;  %v5637_v27 = vsel %vm5634_vm13, %v5636_v22, %v5632_v25  ;;  %vm5736_vm1 = vmor %vm5734_vm15, %vm5735_vm14 }
 0x611   : > { %v5393_v50 = vadd.f32 %v5392_v24, %v5379_v20  ;;  %5792 = vst [vmem:[%s12936_s18 + $0x18] sm:$0xff] %v5637_v27  ;;  %v5731_v28 = vsub.f32 1.0, %v5730_v26  ;;  %v5408_v44 = vpop.f32.mrf.mxu1 }
 0x613   : > { %v5407_v30 = vadd.f32 %v5406_v23, %v5393_v50  ;;  %v5732_v17 = vmul.f32 %v9065_v21, %v5731_v28 }
 0x615   : > { %v8316_v32 = vmul.f32 -1.442695, %v5407_v30  ;;  %v5733_v34 = vadd.f32 %v9065_v21, %v5732_v17  ;;  %v3971_v30 = vperm.slane %v12802_v54, 6 }
 0x617   : > { %9066 = vpow2.f32 %v8316_v32  ;;  %v5737_v40 = vsel %vm5736_vm1, %v9065_v21, %v5733_v34  ;;  %v5434_v57 = vpop.f32.mrf.mxu0 }
 0x618   : > { %v5394_v39 = vpop.f32.mrf.mxu3  ;;  %v5742_v43 = vsel %vm5739_vm2, %v5741_v38, %v5737_v40 }
 0x619   : > { %v5395_v41 = vadd.f32 %v5394_v39, %v5381_v36  ;;  %5799 = vst [vmem:[%s12936_s18 + $0x50] sm:$0xff] %v5742_v43 }
 0x61b   : > { %v5409_v45 = vadd.f32 %v5408_v44, %v5395_v41 }
 0x61d   : > { %v9067_v62 = vpop.eup %9066  ;;  %v8323_v46 = vmul.f32 -1.442695, %v5409_v45  ;;  %v5420_v48 = vpop.f32.mrf.mxu2 }
 0x61e   : > { %v5569_v47 = vadd.f32 1.0, %v9067_v62  ;;  %v5421_v56 = vadd.f32 %v5420_v48, %v3970_v52 }
 0x61f   : > { %9068 = vpow2.f32 %v8323_v46  ;;  %v5436_v15 = vpop.f32.mrf.mxu0 }
 0x620   : > { %9070 = vrcp.f32 %v5569_v47  ;;  %v5650_v51 = vand.u32 2147483648, %v5569_v47  ;;  %v5648_v59 = vand.u32 2147483647, %v5569_v47  ;;  %vm5644_vm4 = vweird.f32 %v5569_v47 }
 0x621   : > { %v5435_v0 = vadd.f32 %v5434_v57, %v5421_v56 }
 0x622   : > { %v5651_v2 = vor.u32 1.1754944e-38, %v5650_v51  ;;  %vm5649_vm6 = vcmp.eq.f32.partialorder %v5648_v59, 8.507059e+37 }
 0x625   : > { %v9069_v49 = vpop.eup %9068  ;;  %v5422_v63 = vpop.f32.mrf.mxu2 }
 0x626   : > { %v9071_v53 = vpop.eup %9070  ;;  %v5576_v8 = vadd.f32 1.0, %v9069_v49  ;;  %v5423_v9 = vadd.f32 %v5422_v63, %v3970_v52 }
 0x627   : > { %v5640_v35 = vmul.f32 %v9071_v53, %v5569_v47  ;;  %vm5645_vm3 = vweird.f32 %v9071_v53 }
 0x628   : > { %9072 = vrcp.f32 %v5576_v8  ;;  %vm5646_vm5 = vmor %vm5644_vm4, %vm5645_vm3  ;;  %v5755_v61 = vand.u32 2147483648, %v5576_v8  ;;  %v5753_v13 = vand.u32 2147483647, %v5576_v8  ;;  %vm5749_vm8 = vweird.f32 %v5576_v8 }
 0x629   : > { %v5641_v55 = vsub.f32 1.0, %v5640_v35  ;;  %v5462_v3 = vpop.f32.mrf.mxu1  ;;  %v5437_v18 = vadd.f32 %v5436_v15, %v5423_v9 }
 0x62a   : > { %v5756_v19 = vor.u32 1.1754944e-38, %v5755_v61  ;;  %vm5754_vm10 = vcmp.eq.f32.partialorder %v5753_v13, 8.507059e+37 }
 0x62b   : > { %v5642_v58 = vmul.f32 %v9071_v53, %v5641_v55 }
 0x62d   : > { %v5643_v60 = vadd.f32 %v9071_v53, %v5642_v58 }
 0x62e   : > { %v9073_v1 = vpop.eup %9072 }
 0x62f   : > { %v5647_v4 = vsel %vm5646_vm5, %v9071_v53, %v5643_v60  ;;  %v5745_v5 = vmul.f32 %v9073_v1, %v5576_v8  ;;  %vm5750_vm7 = vweird.f32 %v9073_v1 }
 0x630   : > { %v5448_v37 = vpop.f32.mrf.mxu3  ;;  %v5652_v6 = vsel %vm5649_vm6, %v5651_v2, %v5647_v4  ;;  %vm5751_vm9 = vmor %vm5749_vm8, %vm5750_vm7 }
 0x631   : > { %v5449_v42 = vadd.f32 %v5448_v37, %v5435_v0  ;;  %5793 = vst [vmem:[%s12936_s18 + $0x20] sm:$0xff] %v5652_v6  ;;  %v5746_v7 = vsub.f32 1.0, %v5745_v5  ;;  %v5464_v24 = vpop.f32.mrf.mxu1 }
 0x633   : > { %v5463_v10 = vadd.f32 %v5462_v3, %v5449_v42  ;;  %v5747_v11 = vmul.f32 %v9073_v1, %v5746_v7 }
 0x635   : > { %v8317_v14 = vmul.f32 -1.442695, %v5463_v10  ;;  %v5748_v16 = vadd.f32 %v9073_v1, %v5747_v11 }
 0x637   : > { %9074 = vpow2.f32 %v8317_v14  ;;  %v5752_v21 = vsel %vm5751_vm9, %v9073_v1, %v5748_v16  ;;  %v5490_v36 = vpop.f32.mrf.mxu0 }
 0x638   : > { %v5450_v20 = vpop.f32.mrf.mxu3  ;;  %v5757_v23 = vsel %vm5754_vm10, %v5756_v19, %v5752_v21 }
 0x639   : > { %v5451_v22 = vadd.f32 %v5450_v20, %v5437_v18  ;;  %5800 = vst [vmem:[%s12936_s18 + $0x58] sm:$0xff] %v5757_v23 }
 0x63b   : > { %v5465_v25 = vadd.f32 %v5464_v24, %v5451_v22 }
 0x63d   : > { %v9075_v26 = vpop.eup %9074  ;;  %v8324_v50 = vmul.f32 -1.442695, %v5465_v25  ;;  %v5476_v28 = vpop.f32.mrf.mxu2 }
 0x63e   : > { %v5570_v27 = vadd.f32 1.0, %v9075_v26  ;;  %v5477_v33 = vadd.f32 %v5476_v28, %v3971_v30 }
 0x63f   : > { %9076 = vpow2.f32 %v8324_v50  ;;  %v5492_v57 = vpop.f32.mrf.mxu0 }
 0x640   : > { %9078 = vrcp.f32 %v5570_v27  ;;  %v5665_v34 = vand.u32 2147483648, %v5570_v27  ;;  %v5663_v39 = vand.u32 2147483647, %v5570_v27  ;;  %vm5659_vm12 = vweird.f32 %v5570_v27 }
 0x641   : > { %v5491_v43 = vadd.f32 %v5490_v36, %v5477_v33 }
 0x642   : > { %v5666_v45 = vor.u32 1.1754944e-38, %v5665_v34  ;;  %vm5664_vm14 = vcmp.eq.f32.partialorder %v5663_v39, 8.507059e+37 }
 0x645   : > { %v9077_v29 = vpop.eup %9076  ;;  %v5478_v41 = vpop.f32.mrf.mxu2 }
 0x646   : > { %v9079_v12 = vpop.eup %9078  ;;  %v5577_v17 = vadd.f32 1.0, %v9077_v29  ;;  %v5479_v53 = vadd.f32 %v5478_v41, %v3971_v30 }
 0x647   : > { %v5655_v31 = vmul.f32 %v9079_v12, %v5570_v27  ;;  %vm5660_vm11 = vweird.f32 %v9079_v12 }
 0x648   : > { %9080 = vrcp.f32 %v5577_v17  ;;  %vm5661_vm13 = vmor %vm5659_vm12, %vm5660_vm11  ;;  %v5770_v35 = vand.u32 2147483648, %v5577_v17  ;;  %v5768_v56 = vand.u32 2147483647, %v5577_v17  ;;  %vm5764_vm1 = vweird.f32 %v5577_v17 }
 0x649   : > { %v5656_v32 = vsub.f32 1.0, %v5655_v31  ;;  %v5518_v54 = vpop.f32.mrf.mxu1  ;;  %v5493_v59 = vadd.f32 %v5492_v57, %v5479_v53 }
 0x64a   : > { %v5771_v60 = vor.u32 1.1754944e-38, %v5770_v35  ;;  %vm5769_vm3 = vcmp.eq.f32.partialorder %v5768_v56, 8.507059e+37 }
 0x64b   : > { %v5657_v38 = vmul.f32 %v9079_v12, %v5656_v32 }
 0x64d   : > { %v5658_v40 = vadd.f32 %v9079_v12, %v5657_v38 }
 0x64e   : > { %v9081_v44 = vpop.eup %9080  ;;  %v5504_v62 = vpop.f32.mrf.mxu3 }
 0x64f   : > { %v5662_v46 = vsel %vm5661_vm13, %v9079_v12, %v5658_v40  ;;  %v5760_v47 = vmul.f32 %v9081_v44, %v5577_v17  ;;  %v5505_v48 = vadd.f32 %v5504_v62, %v5491_v43  ;;  %vm5765_vm15 = vweird.f32 %v9081_v44 }
 0x650   : > { %v5667_v49 = vsel %vm5664_vm14, %v5666_v45, %v5662_v46  ;;  %vm5766_vm2 = vmor %vm5764_vm1, %vm5765_vm15 }
 0x651   : > { %5794 = vst [vmem:[%s12936_s18 + $0x28] sm:$0xff] %v5667_v49  ;;  %v5761_v52 = vsub.f32 1.0, %v5760_v47  ;;  %v5519_v8 = vadd.f32 %v5518_v54, %v5505_v48  ;;  %v5520_v3 = vpop.f32.mrf.mxu1 }
 0x653   : > { %v5762_v55 = vmul.f32 %v9081_v44, %v5761_v52  ;;  %v8318_v51 = vmul.f32 -1.442695, %v5519_v8 }
 0x655   : > { %v5763_v58 = vadd.f32 %v9081_v44, %v5762_v55  ;;  %9082 = vpow2.f32 %v8318_v51 }
 0x656   : > { %v5506_v63 = vpop.f32.mrf.mxu3 }
 0x657   : > { %v5767_v0 = vsel %vm5766_vm2, %v9081_v44, %v5763_v58  ;;  %v5507_v1 = vadd.f32 %v5506_v63, %v5493_v59 }
 0x658   : > { %v5772_v2 = vsel %vm5769_vm3, %v5771_v60, %v5767_v0 }
 0x659   : > { %5801 = vst [vmem:[%s12936_s18 + $0x60] sm:$0xff] %v5772_v2  ;;  %v5521_v37 = vadd.f32 %v5520_v3, %v5507_v1 }
 0x65b   : > { %v9083_v4 = vpop.eup %9082  ;;  %v8325_v5 = vmul.f32 -1.442695, %v5521_v37 }
 0x65c   : > { %v5571_v42 = vadd.f32 1.0, %v9083_v4 }
 0x65d   : > { %9084 = vpow2.f32 %v8325_v5 }
 0x65e   : > { %9086 = vrcp.f32 %v5571_v42  ;;  %v5680_v11 = vand.u32 2147483648, %v5571_v42  ;;  %v5678_v14 = vand.u32 2147483647, %v5571_v42  ;;  %vm5674_vm5 = vweird.f32 %v5571_v42 }
 0x660   : > { %v5681_v18 = vor.u32 1.1754944e-38, %v5680_v11  ;;  %vm5679_vm7 = vcmp.eq.f32.partialorder %v5678_v14, 8.507059e+37 }
 0x663   : > { %v9085_v6 = vpop.eup %9084 }
 0x664   : > { %v9087_v7 = vpop.eup %9086  ;;  %v5578_v9 = vadd.f32 1.0, %v9085_v6 }
 0x665   : > { %v5670_v10 = vmul.f32 %v9087_v7, %v5571_v42  ;;  %vm5675_vm4 = vweird.f32 %v9087_v7 }
 0x666   : > { %9088 = vrcp.f32 %v5578_v9  ;;  %vm5676_vm6 = vmor %vm5674_vm5, %vm5675_vm4  ;;  %v5785_v23 = vand.u32 2147483648, %v5578_v9  ;;  %v5783_v25 = vand.u32 2147483647, %v5578_v9  ;;  %vm5779_vm9 = vweird.f32 %v5578_v9 }
 0x667   : > { %v5671_v61 = vsub.f32 1.0, %v5670_v10 }
 0x668   : > { %v5786_v50 = vor.u32 1.1754944e-38, %v5785_v23  ;;  %vm5784_vm11 = vcmp.eq.f32.partialorder %v5783_v25, 8.507059e+37 }
 0x669   : > { %v5672_v13 = vmul.f32 %v9087_v7, %v5671_v61 }
 0x66b   : > { %v5673_v15 = vadd.f32 %v9087_v7, %v5672_v13 }
 0x66c   : > { %v9089_v16 = vpop.eup %9088 }
 0x66d   : > { %v5677_v19 = vsel %vm5676_vm6, %v9087_v7, %v5673_v15  ;;  %v5775_v20 = vmul.f32 %v9089_v16, %v5578_v9  ;;  %vm5780_vm8 = vweird.f32 %v9089_v16 }
 0x66e   : > { %v5682_v21 = vsel %vm5679_vm7, %v5681_v18, %v5677_v19  ;;  %vm5781_vm10 = vmor %vm5779_vm9, %vm5780_vm8 }
 0x66f   : > { %5795 = vst.msk [vmem:[%s12936_s18 + $0x30] sm:$0xff] %vm1802_vm0, %v5682_v21  ;;  %v5776_v22 = vsub.f32 1.0, %v5775_v20 }
 0x671   : > { %v5777_v24 = vmul.f32 %v9089_v16, %v5776_v22 }
 0x673   : > { %v5778_v26 = vadd.f32 %v9089_v16, %v5777_v24 }
 0x675   : > { %v5782_v27 = vsel %vm5781_vm10, %v9089_v16, %v5778_v26 }
 0x676   : > { %v5787_v28 = vsel %vm5784_vm11, %v5786_v50, %v5782_v27 }
 0x677   : > { %5802 = vst.msk [vmem:[%s12936_s18 + $0x68] sm:$0xff] %vm1802_vm0, %v5787_v28 }
 0x678   : > { %9117 = shalt.err (!%p9114_p3)
}
 0x679   : > { %s9154_s23 = smov 896   ;;  %s9155_s18 = smov 56  }
 0x67a   : > { %8930 = dma.vmem_to_hbm [thread:$0]  (%p9289_p5), %s5827_s21, 1792, %s5829_s22, %s5809_s1, %s9154_s23, %s9154_s23, %s9155_s18  }
 0x67b PF: > { %s13048_s3 = sld [smem:[#allocation7_spill]] }
 0x67c   : > { %s13049_s4 = sld [smem:[#allocation5_spill]] }
 0x681   : > { %p8936_p4 = scmp.ge.s32.totalorder %s13048_s3, 2 }
 0x682   : > { %s5851_s0 = sand.u32 1, %s13049_s4  }
 0x683   : > { %p8933_p7 = pnand %p8936_p4, %p9293_p6  ;;  %s5852_s24 = scalar_lea.sflag [#allocation3], %s5851_s0 }
 0x685   : > { %p8934_p8 = pneg %p8933_p7 }
 0x687   : > { %9135 = dma.done.wait (%p8934_p8), %s5852_s24, 1792  }
 0x688   : > { %9137 = vsyncadd (%p8934_p8), %s5852_s24, 4294965504  ;;  %s13051_s30 = sld [smem:[#allocation9_spill]]  ;;  %s13054_s27 = smov %s9144_s28 }
 0x689   : > { %s13052_s19 = sld [smem:[#allocation6_spill]] }
 0x68a   : > { %s13053_s29 = sld [smem:[#allocation10_spill]] }
 0x68e   : > { %p29_p9 = scmp.ge.s32.totalorder %s13051_s30, 5  }
 0x68f   : > { %s13055_s28 = smov %s13052_s19 }
 0x690   :  { %31 = sbr.rel (!%p29_p9) target bundleno = 11 (0xb), region = 135 }
 0x695   :  { %5858 = vsyncpa [#allocation3], 1 }
 0x696   :  { %5860 = vsyncpa [#allocation3 + $0x1], 1 }

</bundles_post_ra>
